<compile_context>
chip_gen: v7x
topology: tpu7x:2x2x1
jax: 0.10.0
libtpu: 0.0.40
codegen_flags: <defaults>
</compile_context>

<pallas_src>
import jax
import jax.numpy as jnp
from jax.experimental import pallas as pl
from jax.experimental.pallas import tpu as pltpu

PAD_OFF = 8   # sublane-aligned offset of the conv interior inside the padded scratch


# ----------------------------------------------------------------------------- kernels

def _conv3x3_body(x, w_ref, y_ref, s_ref, ss_ref, pad_ref):
    """x: (H, W, Cin) f32 value already resident in VMEM/vregs.

    Writes the 3x3 same-padded conv output plus per-channel sum / sum-of-squares
    (per-grid-step partials, reduced outside the kernel for training-mode BN).
    """
    H, W, cin = x.shape
    cout = w_ref.shape[3]

    # In-kernel zero padding: pre-zeroed scratch, interior stored at a sublane-aligned
    # offset so all ref stores are aligned; the halo columns/rows stay zero.
    pad_ref[...] = jnp.zeros_like(pad_ref)
    pad_ref[1:H + 1, PAD_OFF:PAD_OFF + W, :] = x
    xp = pad_ref[...]                                   # (H+2, W+2*PAD_OFF, Cin)

    acc = jnp.zeros((H * W, cout), jnp.float32)
    # 3x3 conv as 9 shifted matmuls on the MXU (K = Cin).
    # TODO(synk): a single im2col matmul (K=9*Cin) would cut MXU pushes 9x, but the
    # lane-dim concatenate it needs is a lowering risk at Cin<128; kept as 9 taps.
    for dy in range(3):
        for dx in range(3):
            patch = xp[dy:dy + H, PAD_OFF - 1 + dx:PAD_OFF - 1 + dx + W, :]
            acc = acc + jnp.dot(patch.reshape(H * W, cin), w_ref[dy, dx],
                                preferred_element_type=jnp.float32)

    y_ref[...] = acc.reshape(1, H, W, cout)
    # Per-step partial statistics -> batch grid axis stays "parallel".
    s_ref[...] = jnp.sum(acc, axis=0).reshape(1, 1, cout)
    ss_ref[...] = jnp.sum(acc * acc, axis=0).reshape(1, 1, cout)


def conv_stats_kernel(x_ref, w_ref, y_ref, s_ref, ss_ref, pad_ref):
    _conv3x3_body(x_ref[0], w_ref, y_ref, s_ref, ss_ref, pad_ref)


def bnrelu_conv_stats_kernel(x_ref, scale_ref, shift_ref, w_ref, y_ref, s_ref, ss_ref,
                             pad_ref):
    # Fused BatchNorm+ReLU of the previous layer, applied to the input tile in VMEM.
    h = jnp.maximum(x_ref[0] * scale_ref[...] + shift_ref[...], 0.0)
    _conv3x3_body(h, w_ref, y_ref, s_ref, ss_ref, pad_ref)


def bn_relu_pool_kernel(y_ref, scale_ref, shift_ref, u_ref, p_ref, row_ref):
    """Fused BN2 + ReLU + 2x2/stride-2 max-pool.

    y_ref / u_ref blocks: (1, H//2, 2, W, C) -- H pre-split into row pairs by a free
    row-major reshape in the wrapper, so the row-pair max is a plain static index.
    """
    W = y_ref.shape[3]
    Wh = W // 2
    u = jnp.maximum(y_ref[...] * scale_ref[...] + shift_ref[...], 0.0)
    u_ref[...] = u
    # row-pair max, then column-pair max via stride-2 sublane loads of the scratch.
    row_ref[...] = jnp.maximum(u[:, :, 0], u[:, :, 1])          # (1, H/2, W, C)
    c0 = row_ref[:, :, pl.ds(0, Wh, 2), :]                      # even columns
    c1 = row_ref[:, :, pl.ds(1, Wh, 2), :]                      # odd columns
    p_ref[...] = jnp.maximum(c0, c1)                            # (1, H/2, W/2, C)


# ----------------------------------------------------------------------------- wrappers

def conv3x3_stats(x, w, scale=None, shift=None):
    """3x3 same conv (optionally with fused BN+ReLU applied to the input) + BN partials."""
    N, H, W, cin = x.shape
    cout = w.shape[-1]

    in_specs = [pl.BlockSpec((1, H, W, cin), lambda n: (n, 0, 0, 0))]
    args = [x]
    if scale is None:
        kernel = conv_stats_kernel
    else:
        kernel = bnrelu_conv_stats_kernel
        in_specs += [pl.BlockSpec((1, cin), lambda n: (0, 0)),
                     pl.BlockSpec((1, cin), lambda n: (0, 0))]
        args += [scale, shift]
    in_specs.append(pl.BlockSpec((3, 3, cin, cout), lambda n: (0, 0, 0, 0)))
    args.append(w)

    y, s, ss = pl.pallas_call(
        kernel,
        out_shape=(jax.ShapeDtypeStruct((N, H, W, cout), jnp.float32),
                   jax.ShapeDtypeStruct((N, 1, cout), jnp.float32),
                   jax.ShapeDtypeStruct((N, 1, cout), jnp.float32)),
        grid=(N,),
        in_specs=in_specs,
        out_specs=(pl.BlockSpec((1, H, W, cout), lambda n: (n, 0, 0, 0)),
                   pl.BlockSpec((1, 1, cout), lambda n: (n, 0, 0)),
                   pl.BlockSpec((1, 1, cout), lambda n: (n, 0, 0))),
        scratch_shapes=[pltpu.VMEM((H + 2, W + 2 * PAD_OFF, cin), jnp.float32)],
        compiler_params=pltpu.CompilerParams(dimension_semantics=("parallel",)),
    )(*args)
    return y, s, ss


def bn_fold(s_part, ss_part, count, gamma, beta, eps=1e-5):
    """Fold training-mode BN (biased batch variance) into per-channel scale/shift."""
    s = jnp.sum(s_part, axis=(0, 1))
    ss = jnp.sum(ss_part, axis=(0, 1))
    mean = s / count
    var = jnp.maximum(ss / count - mean * mean, 0.0)
    scale = gamma / jnp.sqrt(var + eps)
    shift = beta - mean * scale
    return (scale.reshape(1, -1).astype(jnp.float32),
            shift.reshape(1, -1).astype(jnp.float32))


def bn_relu_pool(y, scale, shift):
    N, H, W, C = y.shape
    Hh, Wh = H // 2, W // 2
    y5 = y.reshape(N, Hh, 2, W, C)          # free row-major split of H into row pairs
    u5, p = pl.pallas_call(
        bn_relu_pool_kernel,
        out_shape=(jax.ShapeDtypeStruct((N, Hh, 2, W, C), jnp.float32),
                   jax.ShapeDtypeStruct((N, Hh, Wh, C), jnp.float32)),
        grid=(N,),
        in_specs=[pl.BlockSpec((1, Hh, 2, W, C), lambda n: (n, 0, 0, 0, 0)),
                  pl.BlockSpec((1, C), lambda n: (0, 0)),
                  pl.BlockSpec((1, C), lambda n: (0, 0))],
        out_specs=(pl.BlockSpec((1, Hh, 2, W, C), lambda n: (n, 0, 0, 0, 0)),
                   pl.BlockSpec((1, Hh, Wh, C), lambda n: (n, 0, 0, 0))),
        scratch_shapes=[pltpu.VMEM((1, Hh, W, C), jnp.float32)],
        compiler_params=pltpu.CompilerParams(dimension_semantics=("parallel",)),
    )(y5, scale, shift)
    return u5.reshape(N, H, W, C), p


@jax.jit
def encoder_forward(x_nchw, params):
    """Pallas Encoder forward. Returns (U_E, P) in NCHW, matching the PyTorch module."""
    w1, b1, g1, be1, w2, b2, g2, be2 = params
    # b1/b2 are unused on purpose: a per-channel conv bias cancels exactly through the
    # training-mode BatchNorm that immediately follows each conv.
    x = jnp.transpose(x_nchw, (0, 2, 3, 1)).astype(jnp.float32)   # NCHW -> NHWC
    N, H, W, _ = x.shape
    count = N * H * W

    y1, s1, ss1 = conv3x3_stats(x, w1)                  # conv1 + BN1 partial stats
    sc1, sh1 = bn_fold(s1, ss1, count, g1, be1)
    y2, s2, ss2 = conv3x3_stats(y1, w2, sc1, sh1)       # BN1+ReLU fused into conv2 + stats
    sc2, sh2 = bn_fold(s2, ss2, count, g2, be2)
    u, p = bn_relu_pool(y2, sc2, sh2)                   # BN2+ReLU fused with 2x2 max-pool

    U_E = jnp.transpose(u, (0, 3, 1, 2))                # back to NCHW
    P = jnp.transpose(p, (0, 3, 1, 2))
    return U_E, P
    # TODO(synk): BatchNorm running_mean/running_var buffer updates are training-time
    # bookkeeping, not part of the returned forward tensors; omitted.


# ----------------------------------------------------------------------------- reference

def reference_forward(x_nchw, params):
    """Pure-JAX (XLA) reference mirroring the PyTorch forward (training-mode BN)."""
    w1, b1, g1, be1, w2, b2, g2, be2 = params

    def conv(x, w_hwio, b):
        w_oihw = jnp.transpose(w_hwio, (3, 2, 0, 1))
        y = jax.lax.conv_general_dilated(
            x, w_oihw, window_strides=(1, 1), padding=((1, 1), (1, 1)),
            dimension_numbers=("NCHW", "OIHW", "NCHW"))
        return y + b[None, :, None, None]

    def bn_relu_ref(y, gamma, beta, eps=1e-5):
        mean = y.mean(axis=(0, 2, 3), keepdims=True)
        var = y.var(axis=(0, 2, 3), keepdims=True)          # biased
        yhat = (y - mean) / jnp.sqrt(var + eps)
        return jnp.maximum(yhat * gamma[None, :, None, None] + beta[None, :, None, None],
                           0.0)

    h = bn_relu_ref(conv(x_nchw, w1, b1), g1, be1)
    u = bn_relu_ref(conv(h, w2, b2), g2, be2)
    N, C, H, W = u.shape
    p = u.reshape(N, C, H // 2, 2, W // 2, 2).max(axis=(3, 5))
    return u, p


# ----------------------------------------------------------------------------- params / main

def init_params(key, cin, filters):
    ks = jax.random.split(key, 8)
    w1 = jax.random.normal(ks[0], (3, 3, cin, filters), jnp.float32) / jnp.sqrt(9.0 * cin)
    b1 = 0.05 * jax.random.normal(ks[1], (filters,), jnp.float32)
    w2 = jax.random.normal(ks[2], (3, 3, filters, filters), jnp.float32) / jnp.sqrt(9.0 * filters)
    b2 = 0.05 * jax.random.normal(ks[3], (filters,), jnp.float32)
    g1 = 1.0 + 0.1 * jax.random.normal(ks[4], (filters,), jnp.float32)
    be1 = 0.1 * jax.random.normal(ks[5], (filters,), jnp.float32)
    g2 = 1.0 + 0.1 * jax.random.normal(ks[6], (filters,), jnp.float32)
    be2 = 0.1 * jax.random.normal(ks[7], (filters,), jnp.float32)
    return (w1, b1, g1, be1, w2, b2, g2, be2)


if __name__ == "__main__":
    N, CIN, H, W, FILTERS = 2, 4, 16, 16, 8
    key = jax.random.PRNGKey(0)
    kx, kp = jax.random.split(key)
    x = jax.random.normal(kx, (N, CIN, H, W), jnp.float32)
    params = init_params(kp, CIN, FILTERS)

    U_E, P = encoder_forward(x, params)
    jax.block_until_ready((U_E, P))

    assert U_E.shape == (N, FILTERS, H, W), U_E.shape
    assert P.shape == (N, FILTERS, H // 2, W // 2), P.shape

    U_ref, P_ref = reference_forward(x, params)
    err_u = float(jnp.max(jnp.abs(U_E - U_ref)))
    err_p = float(jnp.max(jnp.abs(P - P_ref)))
    assert err_u < 1e-3 and err_p < 1e-3, (err_u, err_p)

    print("KERNEL_OK")
</pallas_src>

<mosaic_0001>
module attributes {stable_mosaic.version = 11 : i64} {
  func.func @conv_stats_kernel(%arg0: i32, %arg1: memref<1x16x16x4xf32, #tpu.memory_space<vmem>>, %arg2: memref<3x3x4x8xf32, #tpu.memory_space<vmem>>, %arg3: memref<1x16x16x8xf32, #tpu.memory_space<vmem>>, %arg4: memref<1x1x8xf32, #tpu.memory_space<vmem>>, %arg5: memref<1x1x8xf32, #tpu.memory_space<vmem>>, %arg6: memref<18x32x4xf32, #tpu.memory_space<vmem>>) attributes {dimension_semantics = [#tpu.dimension_semantics<parallel>], iteration_bounds = array<i64: 2>, scalar_prefetch = 0 : i64, scratch_operands = 1 : i64, tpu.core_type = #tpu.core_type<tc>, window_params = [{transform_indices = @transform_0, window_bounds = array<i64: 1, 16, 16, 4>}, {pipeline_mode = #tpu.pipeline_mode<synchronous>, transform_indices = @transform_1, window_bounds = array<i64: 3, 3, 4, 8>}, {transform_indices = @transform_2, window_bounds = array<i64: 1, 16, 16, 8>}, {transform_indices = @transform_3, window_bounds = array<i64: 1, 1, 8>}, {transform_indices = @transform_4, window_bounds = array<i64: 1, 1, 8>}]} {
    %c0 = arith.constant 0 : index
    %c0_0 = arith.constant 0 : index
    %c0_1 = arith.constant 0 : index
    %c0_2 = arith.constant 0 : index
    %0 = vector.load %arg1[%c0, %c0_0, %c0_1, %c0_2] : memref<1x16x16x4xf32, #tpu.memory_space<vmem>>, vector<1x16x16x4xf32>
    %1 = vector.shape_cast %0 : vector<1x16x16x4xf32> to vector<16x16x4xf32>
    %cst = arith.constant 0.000000e+00 : f32
    %2 = vector.broadcast %cst : f32 to vector<18x32x4xf32>
    %c0_3 = arith.constant 0 : index
    %c0_4 = arith.constant 0 : index
    %c0_5 = arith.constant 0 : index
    %3 = vector.load %arg6[%c0_3, %c0_4, %c0_5] : memref<18x32x4xf32, #tpu.memory_space<vmem>>, vector<18x32x4xf32>
    tpu.vector_store %arg6[%c0_3, %c0_4, %c0_5], %2 {strides = array<i32>} : memref<18x32x4xf32, #tpu.memory_space<vmem>>, vector<18x32x4xf32>,
    %c1 = arith.constant 1 : index
    %c8 = arith.constant 8 : index
    %c0_6 = arith.constant 0 : index
    %4 = vector.load %arg6[%c1, %c8, %c0_6] : memref<18x32x4xf32, #tpu.memory_space<vmem>>, vector<16x16x4xf32>
    tpu.vector_store %arg6[%c1, %c8, %c0_6], %1 {strides = array<i32>} : memref<18x32x4xf32, #tpu.memory_space<vmem>>, vector<16x16x4xf32>,
    %c0_7 = arith.constant 0 : index
    %c0_8 = arith.constant 0 : index
    %c0_9 = arith.constant 0 : index
    %5 = vector.load %arg6[%c0_7, %c0_8, %c0_9] : memref<18x32x4xf32, #tpu.memory_space<vmem>>, vector<18x32x4xf32>
    %cst_10 = arith.constant 0.000000e+00 : f32
    %6 = vector.broadcast %cst_10 : f32 to vector<256x8xf32>
    %7 = vector.extract_strided_slice %5 {offsets = [0, 7, 0], sizes = [16, 16, 4], strides = [1, 1, 1]} : vector<18x32x4xf32> to vector<16x16x4xf32>
    %8 = vector.shape_cast %7 : vector<16x16x4xf32> to vector<256x4xf32>
    %c0_11 = arith.constant 0 : index
    %c0_12 = arith.constant 0 : index
    %c0_13 = arith.constant 0 : index
    %c0_14 = arith.constant 0 : index
    %9 = vector.load %arg2[%c0_11, %c0_12, %c0_13, %c0_14] : memref<3x3x4x8xf32, #tpu.memory_space<vmem>>, vector<1x1x4x8xf32>
    %10 = vector.shape_cast %9 : vector<1x1x4x8xf32> to vector<4x8xf32>
    %cst_15 = arith.constant dense<0.000000e+00> : vector<256x8xf32>
    %11 = tpu.matmul %8, %10, %cst_15 {dimension_numbers = #tpu.dot_dimension_numbers<[1], [0], [0], [1], [0, 0, 1, 1], [], []>} : vector<256x4xf32>, vector<4x8xf32>, vector<256x8xf32> -> vector<256x8xf32>
    %12 = arith.addf %6, %11 : vector<256x8xf32>
    %13 = vector.extract_strided_slice %5 {offsets = [0, 8, 0], sizes = [16, 16, 4], strides = [1, 1, 1]} : vector<18x32x4xf32> to vector<16x16x4xf32>
    %14 = vector.shape_cast %13 : vector<16x16x4xf32> to vector<256x4xf32>
    %c0_16 = arith.constant 0 : index
    %c1_17 = arith.constant 1 : index
    %c0_18 = arith.constant 0 : index
    %c0_19 = arith.constant 0 : index
    %15 = vector.load %arg2[%c0_16, %c1_17, %c0_18, %c0_19] : memref<3x3x4x8xf32, #tpu.memory_space<vmem>>, vector<1x1x4x8xf32>
    %16 = vector.shape_cast %15 : vector<1x1x4x8xf32> to vector<4x8xf32>
    %cst_20 = arith.constant dense<0.000000e+00> : vector<256x8xf32>
    %17 = tpu.matmul %14, %16, %cst_20 {dimension_numbers = #tpu.dot_dimension_numbers<[1], [0], [0], [1], [0, 0, 1, 1], [], []>} : vector<256x4xf32>, vector<4x8xf32>, vector<256x8xf32> -> vector<256x8xf32>
    %18 = arith.addf %12, %17 : vector<256x8xf32>
    %19 = vector.extract_strided_slice %5 {offsets = [0, 9, 0], sizes = [16, 16, 4], strides = [1, 1, 1]} : vector<18x32x4xf32> to vector<16x16x4xf32>
    %20 = vector.shape_cast %19 : vector<16x16x4xf32> to vector<256x4xf32>
    %c0_21 = arith.constant 0 : index
    %c2 = arith.constant 2 : index
    %c0_22 = arith.constant 0 : index
    %c0_23 = arith.constant 0 : index
    %21 = vector.load %arg2[%c0_21, %c2, %c0_22, %c0_23] : memref<3x3x4x8xf32, #tpu.memory_space<vmem>>, vector<1x1x4x8xf32>
    %22 = vector.shape_cast %21 : vector<1x1x4x8xf32> to vector<4x8xf32>
    %cst_24 = arith.constant dense<0.000000e+00> : vector<256x8xf32>
    %23 = tpu.matmul %20, %22, %cst_24 {dimension_numbers = #tpu.dot_dimension_numbers<[1], [0], [0], [1], [0, 0, 1, 1], [], []>} : vector<256x4xf32>, vector<4x8xf32>, vector<256x8xf32> -> vector<256x8xf32>
    %24 = arith.addf %18, %23 : vector<256x8xf32>
    %25 = vector.extract_strided_slice %5 {offsets = [1, 7, 0], sizes = [16, 16, 4], strides = [1, 1, 1]} : vector<18x32x4xf32> to vector<16x16x4xf32>
    %26 = vector.shape_cast %25 : vector<16x16x4xf32> to vector<256x4xf32>
    %c1_25 = arith.constant 1 : index
    %c0_26 = arith.constant 0 : index
    %c0_27 = arith.constant 0 : index
    %c0_28 = arith.constant 0 : index
    %27 = vector.load %arg2[%c1_25, %c0_26, %c0_27, %c0_28] : memref<3x3x4x8xf32, #tpu.memory_space<vmem>>, vector<1x1x4x8xf32>
    %28 = vector.shape_cast %27 : vector<1x1x4x8xf32> to vector<4x8xf32>
    %cst_29 = arith.constant dense<0.000000e+00> : vector<256x8xf32>
    %29 = tpu.matmul %26, %28, %cst_29 {dimension_numbers = #tpu.dot_dimension_numbers<[1], [0], [0], [1], [0, 0, 1, 1], [], []>} : vector<256x4xf32>, vector<4x8xf32>, vector<256x8xf32> -> vector<256x8xf32>
    %30 = arith.addf %24, %29 : vector<256x8xf32>
    %31 = vector.extract_strided_slice %5 {offsets = [1, 8, 0], sizes = [16, 16, 4], strides = [1, 1, 1]} : vector<18x32x4xf32> to vector<16x16x4xf32>
    %32 = vector.shape_cast %31 : vector<16x16x4xf32> to vector<256x4xf32>
    %c1_30 = arith.constant 1 : index
    %c1_31 = arith.constant 1 : index
    %c0_32 = arith.constant 0 : index
    %c0_33 = arith.constant 0 : index
    %33 = vector.load %arg2[%c1_30, %c1_31, %c0_32, %c0_33] : memref<3x3x4x8xf32, #tpu.memory_space<vmem>>, vector<1x1x4x8xf32>
    %34 = vector.shape_cast %33 : vector<1x1x4x8xf32> to vector<4x8xf32>
    %cst_34 = arith.constant dense<0.000000e+00> : vector<256x8xf32>
    %35 = tpu.matmul %32, %34, %cst_34 {dimension_numbers = #tpu.dot_dimension_numbers<[1], [0], [0], [1], [0, 0, 1, 1], [], []>} : vector<256x4xf32>, vector<4x8xf32>, vector<256x8xf32> -> vector<256x8xf32>
    %36 = arith.addf %30, %35 : vector<256x8xf32>
    %37 = vector.extract_strided_slice %5 {offsets = [1, 9, 0], sizes = [16, 16, 4], strides = [1, 1, 1]} : vector<18x32x4xf32> to vector<16x16x4xf32>
    %38 = vector.shape_cast %37 : vector<16x16x4xf32> to vector<256x4xf32>
    %c1_35 = arith.constant 1 : index
    %c2_36 = arith.constant 2 : index
    %c0_37 = arith.constant 0 : index
    %c0_38 = arith.constant 0 : index
    %39 = vector.load %arg2[%c1_35, %c2_36, %c0_37, %c0_38] : memref<3x3x4x8xf32, #tpu.memory_space<vmem>>, vector<1x1x4x8xf32>
    %40 = vector.shape_cast %39 : vector<1x1x4x8xf32> to vector<4x8xf32>
    %cst_39 = arith.constant dense<0.000000e+00> : vector<256x8xf32>
    %41 = tpu.matmul %38, %40, %cst_39 {dimension_numbers = #tpu.dot_dimension_numbers<[1], [0], [0], [1], [0, 0, 1, 1], [], []>} : vector<256x4xf32>, vector<4x8xf32>, vector<256x8xf32> -> vector<256x8xf32>
    %42 = arith.addf %36, %41 : vector<256x8xf32>
    %43 = vector.extract_strided_slice %5 {offsets = [2, 7, 0], sizes = [16, 16, 4], strides = [1, 1, 1]} : vector<18x32x4xf32> to vector<16x16x4xf32>
    %44 = vector.shape_cast %43 : vector<16x16x4xf32> to vector<256x4xf32>
    %c2_40 = arith.constant 2 : index
    %c0_41 = arith.constant 0 : index
    %c0_42 = arith.constant 0 : index
    %c0_43 = arith.constant 0 : index
    %45 = vector.load %arg2[%c2_40, %c0_41, %c0_42, %c0_43] : memref<3x3x4x8xf32, #tpu.memory_space<vmem>>, vector<1x1x4x8xf32>
    %46 = vector.shape_cast %45 : vector<1x1x4x8xf32> to vector<4x8xf32>
    %cst_44 = arith.constant dense<0.000000e+00> : vector<256x8xf32>
    %47 = tpu.matmul %44, %46, %cst_44 {dimension_numbers = #tpu.dot_dimension_numbers<[1], [0], [0], [1], [0, 0, 1, 1], [], []>} : vector<256x4xf32>, vector<4x8xf32>, vector<256x8xf32> -> vector<256x8xf32>
    %48 = arith.addf %42, %47 : vector<256x8xf32>
    %49 = vector.extract_strided_slice %5 {offsets = [2, 8, 0], sizes = [16, 16, 4], strides = [1, 1, 1]} : vector<18x32x4xf32> to vector<16x16x4xf32>
    %50 = vector.shape_cast %49 : vector<16x16x4xf32> to vector<256x4xf32>
    %c2_45 = arith.constant 2 : index
    %c1_46 = arith.constant 1 : index
    %c0_47 = arith.constant 0 : index
    %c0_48 = arith.constant 0 : index
    %51 = vector.load %arg2[%c2_45, %c1_46, %c0_47, %c0_48] : memref<3x3x4x8xf32, #tpu.memory_space<vmem>>, vector<1x1x4x8xf32>
    %52 = vector.shape_cast %51 : vector<1x1x4x8xf32> to vector<4x8xf32>
    %cst_49 = arith.constant dense<0.000000e+00> : vector<256x8xf32>
    %53 = tpu.matmul %50, %52, %cst_49 {dimension_numbers = #tpu.dot_dimension_numbers<[1], [0], [0], [1], [0, 0, 1, 1], [], []>} : vector<256x4xf32>, vector<4x8xf32>, vector<256x8xf32> -> vector<256x8xf32>
    %54 = arith.addf %48, %53 : vector<256x8xf32>
    %55 = vector.extract_strided_slice %5 {offsets = [2, 9, 0], sizes = [16, 16, 4], strides = [1, 1, 1]} : vector<18x32x4xf32> to vector<16x16x4xf32>
    %56 = vector.shape_cast %55 : vector<16x16x4xf32> to vector<256x4xf32>
    %c2_50 = arith.constant 2 : index
    %c2_51 = arith.constant 2 : index
    %c0_52 = arith.constant 0 : index
    %c0_53 = arith.constant 0 : index
    %57 = vector.load %arg2[%c2_50, %c2_51, %c0_52, %c0_53] : memref<3x3x4x8xf32, #tpu.memory_space<vmem>>, vector<1x1x4x8xf32>
    %58 = vector.shape_cast %57 : vector<1x1x4x8xf32> to vector<4x8xf32>
    %cst_54 = arith.constant dense<0.000000e+00> : vector<256x8xf32>
    %59 = tpu.matmul %56, %58, %cst_54 {dimension_numbers = #tpu.dot_dimension_numbers<[1], [0], [0], [1], [0, 0, 1, 1], [], []>} : vector<256x4xf32>, vector<4x8xf32>, vector<256x8xf32> -> vector<256x8xf32>
    %60 = arith.addf %54, %59 : vector<256x8xf32>
    %61 = vector.shape_cast %60 : vector<256x8xf32> to vector<1x16x16x8xf32>
    %c0_55 = arith.constant 0 : index
    %c0_56 = arith.constant 0 : index
    %c0_57 = arith.constant 0 : index
    %c0_58 = arith.constant 0 : index
    %62 = vector.load %arg3[%c0_55, %c0_56, %c0_57, %c0_58] : memref<1x16x16x8xf32, #tpu.memory_space<vmem>>, vector<1x16x16x8xf32>
    tpu.vector_store %arg3[%c0_55, %c0_56, %c0_57, %c0_58], %61 {strides = array<i32>} : memref<1x16x16x8xf32, #tpu.memory_space<vmem>>, vector<1x16x16x8xf32>,
    %cst_59 = arith.constant dense<0.000000e+00> : vector<8xf32>
    %63 = vector.multi_reduction <add>, %60, %cst_59 [0] : vector<256x8xf32> to vector<8xf32>
    %64 = vector.shape_cast %63 : vector<8xf32> to vector<1x1x8xf32>
    %c0_60 = arith.constant 0 : index
    %c0_61 = arith.constant 0 : index
    %c0_62 = arith.constant 0 : index
    %65 = vector.load %arg4[%c0_60, %c0_61, %c0_62] : memref<1x1x8xf32, #tpu.memory_space<vmem>>, vector<1x1x8xf32>
    tpu.vector_store %arg4[%c0_60, %c0_61, %c0_62], %64 {strides = array<i32>} : memref<1x1x8xf32, #tpu.memory_space<vmem>>, vector<1x1x8xf32>,
    %66 = arith.mulf %60, %60 : vector<256x8xf32>
    %cst_63 = arith.constant dense<0.000000e+00> : vector<8xf32>
    %67 = vector.multi_reduction <add>, %66, %cst_63 [0] : vector<256x8xf32> to vector<8xf32>
    %68 = vector.shape_cast %67 : vector<8xf32> to vector<1x1x8xf32>
    %c0_64 = arith.constant 0 : index
    %c0_65 = arith.constant 0 : index
    %c0_66 = arith.constant 0 : index
    %69 = vector.load %arg5[%c0_64, %c0_65, %c0_66] : memref<1x1x8xf32, #tpu.memory_space<vmem>>, vector<1x1x8xf32>
    tpu.vector_store %arg5[%c0_64, %c0_65, %c0_66], %68 {strides = array<i32>} : memref<1x1x8xf32, #tpu.memory_space<vmem>>, vector<1x1x8xf32>,
    return
  }
  func.func @transform_0(%arg0: i32) -> (i32, i32, i32, i32) {
    %c0_i32 = arith.constant 0 : i32
    %c0_i32_0 = arith.constant 0 : i32
    %c0_i32_1 = arith.constant 0 : i32
    %c0_i32_2 = arith.constant 0 : i32
    return %arg0, %c0_i32, %c0_i32_0, %c0_i32_1 : i32, i32, i32, i32
  }
  func.func @transform_1(%arg0: i32) -> (i32, i32, i32, i32) {
    %c0_i32 = arith.constant 0 : i32
    %c0_i32_0 = arith.constant 0 : i32
    %c0_i32_1 = arith.constant 0 : i32
    %c0_i32_2 = arith.constant 0 : i32
    %c0_i32_3 = arith.constant 0 : i32
    return %c0_i32, %c0_i32_0, %c0_i32_1, %c0_i32_2 : i32, i32, i32, i32
  }
  func.func @transform_2(%arg0: i32) -> (i32, i32, i32, i32) {
    %c0_i32 = arith.constant 0 : i32
    %c0_i32_0 = arith.constant 0 : i32
    %c0_i32_1 = arith.constant 0 : i32
    %c0_i32_2 = arith.constant 0 : i32
    return %arg0, %c0_i32, %c0_i32_0, %c0_i32_1 : i32, i32, i32, i32
  }
  func.func @transform_3(%arg0: i32) -> (i32, i32, i32) {
    %c0_i32 = arith.constant 0 : i32
    %c0_i32_0 = arith.constant 0 : i32
    %c0_i32_1 = arith.constant 0 : i32
    return %arg0, %c0_i32, %c0_i32_0 : i32, i32, i32
  }
  func.func @transform_4(%arg0: i32) -> (i32, i32, i32) {
    %c0_i32 = arith.constant 0 : i32
    %c0_i32_0 = arith.constant 0 : i32
    %c0_i32_1 = arith.constant 0 : i32
    return %arg0, %c0_i32, %c0_i32_0 : i32, i32, i32
  }
}

module attributes {stable_mosaic.version = 11 : i64} {
  func.func @bn_relu_pool_kernel(%arg0: i32, %arg1: memref<1x8x2x16x8xf32, #tpu.memory_space<vmem>>, %arg2: memref<1x8xf32, #tpu.memory_space<vmem>>, %arg3: memref<1x8xf32, #tpu.memory_space<vmem>>, %arg4: memref<1x8x2x16x8xf32, #tpu.memory_space<vmem>>, %arg5: memref<1x8x8x8xf32, #tpu.memory_space<vmem>>, %arg6: memref<1x8x16x8xf32, #tpu.memory_space<vmem>>) attributes {dimension_semantics = [#tpu.dimension_semantics<parallel>], iteration_bounds = array<i64: 2>, scalar_prefetch = 0 : i64, scratch_operands = 1 : i64, tpu.core_type = #tpu.core_type<tc>, window_params = [{transform_indices = @transform_0, window_bounds = array<i64: 1, 8, 2, 16, 8>}, {pipeline_mode = #tpu.pipeline_mode<synchronous>, transform_indices = @transform_1, window_bounds = array<i64: 1, 8>}, {pipeline_mode = #tpu.pipeline_mode<synchronous>, transform_indices = @transform_2, window_bounds = array<i64: 1, 8>}, {transform_indices = @transform_3, window_bounds = array<i64: 1, 8, 2, 16, 8>}, {transform_indices = @transform_4, window_bounds = array<i64: 1, 8, 8, 8>}]} {
    %c0 = arith.constant 0 : index
    %c0_0 = arith.constant 0 : index
    %c0_1 = arith.constant 0 : index
    %c0_2 = arith.constant 0 : index
    %c0_3 = arith.constant 0 : index
    %0 = vector.load %arg1[%c0, %c0_0, %c0_1, %c0_2, %c0_3] : memref<1x8x2x16x8xf32, #tpu.memory_space<vmem>>, vector<1x8x2x16x8xf32>
    %c0_4 = arith.constant 0 : index
    %c0_5 = arith.constant 0 : index
    %1 = vector.load %arg2[%c0_4, %c0_5] : memref<1x8xf32, #tpu.memory_space<vmem>>, vector<1x8xf32>
    %2 = vector.shape_cast %1 : vector<1x8xf32> to vector<1x1x1x1x8xf32>
    %3 = vector.broadcast %2 : vector<1x1x1x1x8xf32> to vector<1x8x2x16x8xf32>
    %4 = arith.mulf %0, %3 : vector<1x8x2x16x8xf32>
    %c0_6 = arith.constant 0 : index
    %c0_7 = arith.constant 0 : index
    %5 = vector.load %arg3[%c0_6, %c0_7] : memref<1x8xf32, #tpu.memory_space<vmem>>, vector<1x8xf32>
    %6 = vector.shape_cast %5 : vector<1x8xf32> to vector<1x1x1x1x8xf32>
    %7 = vector.broadcast %6 : vector<1x1x1x1x8xf32> to vector<1x8x2x16x8xf32>
    %8 = arith.addf %4, %7 : vector<1x8x2x16x8xf32>
    %cst = arith.constant 0.000000e+00 : f32
    %9 = vector.broadcast %cst : f32 to vector<1x8x2x16x8xf32>
    %10 = arith.maximumf %8, %9 : vector<1x8x2x16x8xf32>
    %c0_8 = arith.constant 0 : index
    %c0_9 = arith.constant 0 : index
    %c0_10 = arith.constant 0 : index
    %c0_11 = arith.constant 0 : index
    %c0_12 = arith.constant 0 : index
    %11 = vector.load %arg4[%c0_8, %c0_9, %c0_10, %c0_11, %c0_12] : memref<1x8x2x16x8xf32, #tpu.memory_space<vmem>>, vector<1x8x2x16x8xf32>
    tpu.vector_store %arg4[%c0_8, %c0_9, %c0_10, %c0_11, %c0_12], %10 {strides = array<i32>} : memref<1x8x2x16x8xf32, #tpu.memory_space<vmem>>, vector<1x8x2x16x8xf32>,
    %12 = vector.extract_strided_slice %10 {offsets = [0, 0, 0, 0, 0], sizes = [1, 8, 1, 16, 8], strides = [1, 1, 1, 1, 1]} : vector<1x8x2x16x8xf32> to vector<1x8x1x16x8xf32>
    %13 = vector.shape_cast %12 : vector<1x8x1x16x8xf32> to vector<1x8x16x8xf32>
    %14 = vector.extract_strided_slice %10 {offsets = [0, 0, 1, 0, 0], sizes = [1, 8, 1, 16, 8], strides = [1, 1, 1, 1, 1]} : vector<1x8x2x16x8xf32> to vector<1x8x1x16x8xf32>
    %15 = vector.shape_cast %14 : vector<1x8x1x16x8xf32> to vector<1x8x16x8xf32>
    %16 = arith.maximumf %13, %15 : vector<1x8x16x8xf32>
    %c0_13 = arith.constant 0 : index
    %c0_14 = arith.constant 0 : index
    %c0_15 = arith.constant 0 : index
    %c0_16 = arith.constant 0 : index
    %17 = vector.load %arg6[%c0_13, %c0_14, %c0_15, %c0_16] : memref<1x8x16x8xf32, #tpu.memory_space<vmem>>, vector<1x8x16x8xf32>
    tpu.vector_store %arg6[%c0_13, %c0_14, %c0_15, %c0_16], %16 {strides = array<i32>} : memref<1x8x16x8xf32, #tpu.memory_space<vmem>>, vector<1x8x16x8xf32>,
    %c0_17 = arith.constant 0 : index
    %c0_18 = arith.constant 0 : index
    %c0_19 = arith.constant 0 : index
    %c0_20 = arith.constant 0 : index
    %18 = tpu.strided_load %arg6[%c0_17, %c0_18, %c0_19, %c0_20] {strides = array<i32: 1, 1, 2, 1>} : memref<1x8x16x8xf32, #tpu.memory_space<vmem>>, vector<1x8x8x8xf32>
    %c0_21 = arith.constant 0 : index
    %c0_22 = arith.constant 0 : index
    %c1 = arith.constant 1 : index
    %c0_23 = arith.constant 0 : index
    %19 = tpu.strided_load %arg6[%c0_21, %c0_22, %c1, %c0_23] {strides = array<i32: 1, 1, 2, 1>} : memref<1x8x16x8xf32, #tpu.memory_space<vmem>>, vector<1x8x8x8xf32>
    %20 = arith.maximumf %18, %19 : vector<1x8x8x8xf32>
    %c0_24 = arith.constant 0 : index
    %c0_25 = arith.constant 0 : index
    %c0_26 = arith.constant 0 : index
    %c0_27 = arith.constant 0 : index
    %21 = vector.load %arg5[%c0_24, %c0_25, %c0_26, %c0_27] : memref<1x8x8x8xf32, #tpu.memory_space<vmem>>, vector<1x8x8x8xf32>
    tpu.vector_store %arg5[%c0_24, %c0_25, %c0_26, %c0_27], %20 {strides = array<i32>} : memref<1x8x8x8xf32, #tpu.memory_space<vmem>>, vector<1x8x8x8xf32>,
    return
  }
  func.func @transform_0(%arg0: i32) -> (i32, i32, i32, i32, i32) {
    %c0_i32 = arith.constant 0 : i32
    %c0_i32_0 = arith.constant 0 : i32
    %c0_i32_1 = arith.constant 0 : i32
    %c0_i32_2 = arith.constant 0 : i32
    %c0_i32_3 = arith.constant 0 : i32
    return %arg0, %c0_i32, %c0_i32_0, %c0_i32_1, %c0_i32_2 : i32, i32, i32, i32, i32
  }
  func.func @transform_1(%arg0: i32) -> (i32, i32) {
    %c0_i32 = arith.constant 0 : i32
    %c0_i32_0 = arith.constant 0 : i32
    %c0_i32_1 = arith.constant 0 : i32
    return %c0_i32, %c0_i32_0 : i32, i32
  }
  func.func @transform_2(%arg0: i32) -> (i32, i32) {
    %c0_i32 = arith.constant 0 : i32
    %c0_i32_0 = arith.constant 0 : i32
    %c0_i32_1 = arith.constant 0 : i32
    return %c0_i32, %c0_i32_0 : i32, i32
  }
  func.func @transform_3(%arg0: i32) -> (i32, i32, i32, i32, i32) {
    %c0_i32 = arith.constant 0 : i32
    %c0_i32_0 = arith.constant 0 : i32
    %c0_i32_1 = arith.constant 0 : i32
    %c0_i32_2 = arith.constant 0 : i32
    %c0_i32_3 = arith.constant 0 : i32
    return %arg0, %c0_i32, %c0_i32_0, %c0_i32_1, %c0_i32_2 : i32, i32, i32, i32, i32
  }
  func.func @transform_4(%arg0: i32) -> (i32, i32, i32, i32) {
    %c0_i32 = arith.constant 0 : i32
    %c0_i32_0 = arith.constant 0 : i32
    %c0_i32_1 = arith.constant 0 : i32
    %c0_i32_2 = arith.constant 0 : i32
    return %arg0, %c0_i32, %c0_i32_0, %c0_i32_1 : i32, i32, i32, i32
  }
}

module attributes {stable_mosaic.version = 11 : i64} {
  func.func @bnrelu_conv_stats_kernel(%arg0: i32, %arg1: memref<1x16x16x8xf32, #tpu.memory_space<vmem>>, %arg2: memref<1x8xf32, #tpu.memory_space<vmem>>, %arg3: memref<1x8xf32, #tpu.memory_space<vmem>>, %arg4: memref<3x3x8x8xf32, #tpu.memory_space<vmem>>, %arg5: memref<1x16x16x8xf32, #tpu.memory_space<vmem>>, %arg6: memref<1x1x8xf32, #tpu.memory_space<vmem>>, %arg7: memref<1x1x8xf32, #tpu.memory_space<vmem>>, %arg8: memref<18x32x8xf32, #tpu.memory_space<vmem>>) attributes {dimension_semantics = [#tpu.dimension_semantics<parallel>], iteration_bounds = array<i64: 2>, scalar_prefetch = 0 : i64, scratch_operands = 1 : i64, tpu.core_type = #tpu.core_type<tc>, window_params = [{transform_indices = @transform_0, window_bounds = array<i64: 1, 16, 16, 8>}, {pipeline_mode = #tpu.pipeline_mode<synchronous>, transform_indices = @transform_1, window_bounds = array<i64: 1, 8>}, {pipeline_mode = #tpu.pipeline_mode<synchronous>, transform_indices = @transform_2, window_bounds = array<i64: 1, 8>}, {pipeline_mode = #tpu.pipeline_mode<synchronous>, transform_indices = @transform_3, window_bounds = array<i64: 3, 3, 8, 8>}, {transform_indices = @transform_4, window_bounds = array<i64: 1, 16, 16, 8>}, {transform_indices = @transform_5, window_bounds = array<i64: 1, 1, 8>}, {transform_indices = @transform_6, window_bounds = array<i64: 1, 1, 8>}]} {
    %c0 = arith.constant 0 : index
    %c0_0 = arith.constant 0 : index
    %c0_1 = arith.constant 0 : index
    %c0_2 = arith.constant 0 : index
    %0 = vector.load %arg1[%c0, %c0_0, %c0_1, %c0_2] : memref<1x16x16x8xf32, #tpu.memory_space<vmem>>, vector<1x16x16x8xf32>
    %1 = vector.shape_cast %0 : vector<1x16x16x8xf32> to vector<16x16x8xf32>
    %c0_3 = arith.constant 0 : index
    %c0_4 = arith.constant 0 : index
    %2 = vector.load %arg2[%c0_3, %c0_4] : memref<1x8xf32, #tpu.memory_space<vmem>>, vector<1x8xf32>
    %3 = vector.shape_cast %2 : vector<1x8xf32> to vector<1x1x8xf32>
    %4 = vector.broadcast %3 : vector<1x1x8xf32> to vector<16x16x8xf32>
    %5 = arith.mulf %1, %4 : vector<16x16x8xf32>
    %c0_5 = arith.constant 0 : index
    %c0_6 = arith.constant 0 : index
    %6 = vector.load %arg3[%c0_5, %c0_6] : memref<1x8xf32, #tpu.memory_space<vmem>>, vector<1x8xf32>
    %7 = vector.shape_cast %6 : vector<1x8xf32> to vector<1x1x8xf32>
    %8 = vector.broadcast %7 : vector<1x1x8xf32> to vector<16x16x8xf32>
    %9 = arith.addf %5, %8 : vector<16x16x8xf32>
    %cst = arith.constant 0.000000e+00 : f32
    %10 = vector.broadcast %cst : f32 to vector<16x16x8xf32>
    %11 = arith.maximumf %9, %10 : vector<16x16x8xf32>
    %cst_7 = arith.constant 0.000000e+00 : f32
    %12 = vector.broadcast %cst_7 : f32 to vector<18x32x8xf32>
    %c0_8 = arith.constant 0 : index
    %c0_9 = arith.constant 0 : index
    %c0_10 = arith.constant 0 : index
    %13 = vector.load %arg8[%c0_8, %c0_9, %c0_10] : memref<18x32x8xf32, #tpu.memory_space<vmem>>, vector<18x32x8xf32>
    tpu.vector_store %arg8[%c0_8, %c0_9, %c0_10], %12 {strides = array<i32>} : memref<18x32x8xf32, #tpu.memory_space<vmem>>, vector<18x32x8xf32>,
    %c1 = arith.constant 1 : index
    %c8 = arith.constant 8 : index
    %c0_11 = arith.constant 0 : index
    %14 = vector.load %arg8[%c1, %c8, %c0_11] : memref<18x32x8xf32, #tpu.memory_space<vmem>>, vector<16x16x8xf32>
    tpu.vector_store %arg8[%c1, %c8, %c0_11], %11 {strides = array<i32>} : memref<18x32x8xf32, #tpu.memory_space<vmem>>, vector<16x16x8xf32>,
    %c0_12 = arith.constant 0 : index
    %c0_13 = arith.constant 0 : index
    %c0_14 = arith.constant 0 : index
    %15 = vector.load %arg8[%c0_12, %c0_13, %c0_14] : memref<18x32x8xf32, #tpu.memory_space<vmem>>, vector<18x32x8xf32>
    %cst_15 = arith.constant 0.000000e+00 : f32
    %16 = vector.broadcast %cst_15 : f32 to vector<256x8xf32>
    %17 = vector.extract_strided_slice %15 {offsets = [0, 7, 0], sizes = [16, 16, 8], strides = [1, 1, 1]} : vector<18x32x8xf32> to vector<16x16x8xf32>
    %18 = vector.shape_cast %17 : vector<16x16x8xf32> to vector<256x8xf32>
    %c0_16 = arith.constant 0 : index
    %c0_17 = arith.constant 0 : index
    %c0_18 = arith.constant 0 : index
    %c0_19 = arith.constant 0 : index
    %19 = vector.load %arg4[%c0_16, %c0_17, %c0_18, %c0_19] : memref<3x3x8x8xf32, #tpu.memory_space<vmem>>, vector<1x1x8x8xf32>
    %20 = vector.shape_cast %19 : vector<1x1x8x8xf32> to vector<8x8xf32>
    %cst_20 = arith.constant dense<0.000000e+00> : vector<256x8xf32>
    %21 = tpu.matmul %18, %20, %cst_20 {dimension_numbers = #tpu.dot_dimension_numbers<[1], [0], [0], [1], [0, 0, 1, 1], [], []>} : vector<256x8xf32>, vector<8x8xf32>, vector<256x8xf32> -> vector<256x8xf32>
    %22 = arith.addf %16, %21 : vector<256x8xf32>
    %23 = vector.extract_strided_slice %15 {offsets = [0, 8, 0], sizes = [16, 16, 8], strides = [1, 1, 1]} : vector<18x32x8xf32> to vector<16x16x8xf32>
    %24 = vector.shape_cast %23 : vector<16x16x8xf32> to vector<256x8xf32>
    %c0_21 = arith.constant 0 : index
    %c1_22 = arith.constant 1 : index
    %c0_23 = arith.constant 0 : index
    %c0_24 = arith.constant 0 : index
    %25 = vector.load %arg4[%c0_21, %c1_22, %c0_23, %c0_24] : memref<3x3x8x8xf32, #tpu.memory_space<vmem>>, vector<1x1x8x8xf32>
    %26 = vector.shape_cast %25 : vector<1x1x8x8xf32> to vector<8x8xf32>
    %cst_25 = arith.constant dense<0.000000e+00> : vector<256x8xf32>
    %27 = tpu.matmul %24, %26, %cst_25 {dimension_numbers = #tpu.dot_dimension_numbers<[1], [0], [0], [1], [0, 0, 1, 1], [], []>} : vector<256x8xf32>, vector<8x8xf32>, vector<256x8xf32> -> vector<256x8xf32>
    %28 = arith.addf %22, %27 : vector<256x8xf32>
    %29 = vector.extract_strided_slice %15 {offsets = [0, 9, 0], sizes = [16, 16, 8], strides = [1, 1, 1]} : vector<18x32x8xf32> to vector<16x16x8xf32>
    %30 = vector.shape_cast %29 : vector<16x16x8xf32> to vector<256x8xf32>
    %c0_26 = arith.constant 0 : index
    %c2 = arith.constant 2 : index
    %c0_27 = arith.constant 0 : index
    %c0_28 = arith.constant 0 : index
    %31 = vector.load %arg4[%c0_26, %c2, %c0_27, %c0_28] : memref<3x3x8x8xf32, #tpu.memory_space<vmem>>, vector<1x1x8x8xf32>
    %32 = vector.shape_cast %31 : vector<1x1x8x8xf32> to vector<8x8xf32>
    %cst_29 = arith.constant dense<0.000000e+00> : vector<256x8xf32>
    %33 = tpu.matmul %30, %32, %cst_29 {dimension_numbers = #tpu.dot_dimension_numbers<[1], [0], [0], [1], [0, 0, 1, 1], [], []>} : vector<256x8xf32>, vector<8x8xf32>, vector<256x8xf32> -> vector<256x8xf32>
    %34 = arith.addf %28, %33 : vector<256x8xf32>
    %35 = vector.extract_strided_slice %15 {offsets = [1, 7, 0], sizes = [16, 16, 8], strides = [1, 1, 1]} : vector<18x32x8xf32> to vector<16x16x8xf32>
    %36 = vector.shape_cast %35 : vector<16x16x8xf32> to vector<256x8xf32>
    %c1_30 = arith.constant 1 : index
    %c0_31 = arith.constant 0 : index
    %c0_32 = arith.constant 0 : index
    %c0_33 = arith.constant 0 : index
    %37 = vector.load %arg4[%c1_30, %c0_31, %c0_32, %c0_33] : memref<3x3x8x8xf32, #tpu.memory_space<vmem>>, vector<1x1x8x8xf32>
    %38 = vector.shape_cast %37 : vector<1x1x8x8xf32> to vector<8x8xf32>
    %cst_34 = arith.constant dense<0.000000e+00> : vector<256x8xf32>
    %39 = tpu.matmul %36, %38, %cst_34 {dimension_numbers = #tpu.dot_dimension_numbers<[1], [0], [0], [1], [0, 0, 1, 1], [], []>} : vector<256x8xf32>, vector<8x8xf32>, vector<256x8xf32> -> vector<256x8xf32>
    %40 = arith.addf %34, %39 : vector<256x8xf32>
    %41 = vector.extract_strided_slice %15 {offsets = [1, 8, 0], sizes = [16, 16, 8], strides = [1, 1, 1]} : vector<18x32x8xf32> to vector<16x16x8xf32>
    %42 = vector.shape_cast %41 : vector<16x16x8xf32> to vector<256x8xf32>
    %c1_35 = arith.constant 1 : index
    %c1_36 = arith.constant 1 : index
    %c0_37 = arith.constant 0 : index
    %c0_38 = arith.constant 0 : index
    %43 = vector.load %arg4[%c1_35, %c1_36, %c0_37, %c0_38] : memref<3x3x8x8xf32, #tpu.memory_space<vmem>>, vector<1x1x8x8xf32>
    %44 = vector.shape_cast %43 : vector<1x1x8x8xf32> to vector<8x8xf32>
    %cst_39 = arith.constant dense<0.000000e+00> : vector<256x8xf32>
    %45 = tpu.matmul %42, %44, %cst_39 {dimension_numbers = #tpu.dot_dimension_numbers<[1], [0], [0], [1], [0, 0, 1, 1], [], []>} : vector<256x8xf32>, vector<8x8xf32>, vector<256x8xf32> -> vector<256x8xf32>
    %46 = arith.addf %40, %45 : vector<256x8xf32>
    %47 = vector.extract_strided_slice %15 {offsets = [1, 9, 0], sizes = [16, 16, 8], strides = [1, 1, 1]} : vector<18x32x8xf32> to vector<16x16x8xf32>
    %48 = vector.shape_cast %47 : vector<16x16x8xf32> to vector<256x8xf32>
    %c1_40 = arith.constant 1 : index
    %c2_41 = arith.constant 2 : index
    %c0_42 = arith.constant 0 : index
    %c0_43 = arith.constant 0 : index
    %49 = vector.load %arg4[%c1_40, %c2_41, %c0_42, %c0_43] : memref<3x3x8x8xf32, #tpu.memory_space<vmem>>, vector<1x1x8x8xf32>
    %50 = vector.shape_cast %49 : vector<1x1x8x8xf32> to vector<8x8xf32>
    %cst_44 = arith.constant dense<0.000000e+00> : vector<256x8xf32>
    %51 = tpu.matmul %48, %50, %cst_44 {dimension_numbers = #tpu.dot_dimension_numbers<[1], [0], [0], [1], [0, 0, 1, 1], [], []>} : vector<256x8xf32>, vector<8x8xf32>, vector<256x8xf32> -> vector<256x8xf32>
    %52 = arith.addf %46, %51 : vector<256x8xf32>
    %53 = vector.extract_strided_slice %15 {offsets = [2, 7, 0], sizes = [16, 16, 8], strides = [1, 1, 1]} : vector<18x32x8xf32> to vector<16x16x8xf32>
    %54 = vector.shape_cast %53 : vector<16x16x8xf32> to vector<256x8xf32>
    %c2_45 = arith.constant 2 : index
    %c0_46 = arith.constant 0 : index
    %c0_47 = arith.constant 0 : index
    %c0_48 = arith.constant 0 : index
    %55 = vector.load %arg4[%c2_45, %c0_46, %c0_47, %c0_48] : memref<3x3x8x8xf32, #tpu.memory_space<vmem>>, vector<1x1x8x8xf32>
    %56 = vector.shape_cast %55 : vector<1x1x8x8xf32> to vector<8x8xf32>
    %cst_49 = arith.constant dense<0.000000e+00> : vector<256x8xf32>
    %57 = tpu.matmul %54, %56, %cst_49 {dimension_numbers = #tpu.dot_dimension_numbers<[1], [0], [0], [1], [0, 0, 1, 1], [], []>} : vector<256x8xf32>, vector<8x8xf32>, vector<256x8xf32> -> vector<256x8xf32>
    %58 = arith.addf %52, %57 : vector<256x8xf32>
    %59 = vector.extract_strided_slice %15 {offsets = [2, 8, 0], sizes = [16, 16, 8], strides = [1, 1, 1]} : vector<18x32x8xf32> to vector<16x16x8xf32>
    %60 = vector.shape_cast %59 : vector<16x16x8xf32> to vector<256x8xf32>
    %c2_50 = arith.constant 2 : index
    %c1_51 = arith.constant 1 : index
    %c0_52 = arith.constant 0 : index
    %c0_53 = arith.constant 0 : index
    %61 = vector.load %arg4[%c2_50, %c1_51, %c0_52, %c0_53] : memref<3x3x8x8xf32, #tpu.memory_space<vmem>>, vector<1x1x8x8xf32>
    %62 = vector.shape_cast %61 : vector<1x1x8x8xf32> to vector<8x8xf32>
    %cst_54 = arith.constant dense<0.000000e+00> : vector<256x8xf32>
    %63 = tpu.matmul %60, %62, %cst_54 {dimension_numbers = #tpu.dot_dimension_numbers<[1], [0], [0], [1], [0, 0, 1, 1], [], []>} : vector<256x8xf32>, vector<8x8xf32>, vector<256x8xf32> -> vector<256x8xf32>
    %64 = arith.addf %58, %63 : vector<256x8xf32>
    %65 = vector.extract_strided_slice %15 {offsets = [2, 9, 0], sizes = [16, 16, 8], strides = [1, 1, 1]} : vector<18x32x8xf32> to vector<16x16x8xf32>
    %66 = vector.shape_cast %65 : vector<16x16x8xf32> to vector<256x8xf32>
    %c2_55 = arith.constant 2 : index
    %c2_56 = arith.constant 2 : index
    %c0_57 = arith.constant 0 : index
    %c0_58 = arith.constant 0 : index
    %67 = vector.load %arg4[%c2_55, %c2_56, %c0_57, %c0_58] : memref<3x3x8x8xf32, #tpu.memory_space<vmem>>, vector<1x1x8x8xf32>
    %68 = vector.shape_cast %67 : vector<1x1x8x8xf32> to vector<8x8xf32>
    %cst_59 = arith.constant dense<0.000000e+00> : vector<256x8xf32>
    %69 = tpu.matmul %66, %68, %cst_59 {dimension_numbers = #tpu.dot_dimension_numbers<[1], [0], [0], [1], [0, 0, 1, 1], [], []>} : vector<256x8xf32>, vector<8x8xf32>, vector<256x8xf32> -> vector<256x8xf32>
    %70 = arith.addf %64, %69 : vector<256x8xf32>
    %71 = vector.shape_cast %70 : vector<256x8xf32> to vector<1x16x16x8xf32>
    %c0_60 = arith.constant 0 : index
    %c0_61 = arith.constant 0 : index
    %c0_62 = arith.constant 0 : index
    %c0_63 = arith.constant 0 : index
    %72 = vector.load %arg5[%c0_60, %c0_61, %c0_62, %c0_63] : memref<1x16x16x8xf32, #tpu.memory_space<vmem>>, vector<1x16x16x8xf32>
    tpu.vector_store %arg5[%c0_60, %c0_61, %c0_62, %c0_63], %71 {strides = array<i32>} : memref<1x16x16x8xf32, #tpu.memory_space<vmem>>, vector<1x16x16x8xf32>,
    %cst_64 = arith.constant dense<0.000000e+00> : vector<8xf32>
    %73 = vector.multi_reduction <add>, %70, %cst_64 [0] : vector<256x8xf32> to vector<8xf32>
    %74 = vector.shape_cast %73 : vector<8xf32> to vector<1x1x8xf32>
    %c0_65 = arith.constant 0 : index
    %c0_66 = arith.constant 0 : index
    %c0_67 = arith.constant 0 : index
    %75 = vector.load %arg6[%c0_65, %c0_66, %c0_67] : memref<1x1x8xf32, #tpu.memory_space<vmem>>, vector<1x1x8xf32>
    tpu.vector_store %arg6[%c0_65, %c0_66, %c0_67], %74 {strides = array<i32>} : memref<1x1x8xf32, #tpu.memory_space<vmem>>, vector<1x1x8xf32>,
    %76 = arith.mulf %70, %70 : vector<256x8xf32>
    %cst_68 = arith.constant dense<0.000000e+00> : vector<8xf32>
    %77 = vector.multi_reduction <add>, %76, %cst_68 [0] : vector<256x8xf32> to vector<8xf32>
    %78 = vector.shape_cast %77 : vector<8xf32> to vector<1x1x8xf32>
    %c0_69 = arith.constant 0 : index
    %c0_70 = arith.constant 0 : index
    %c0_71 = arith.constant 0 : index
    %79 = vector.load %arg7[%c0_69, %c0_70, %c0_71] : memref<1x1x8xf32, #tpu.memory_space<vmem>>, vector<1x1x8xf32>
    tpu.vector_store %arg7[%c0_69, %c0_70, %c0_71], %78 {strides = array<i32>} : memref<1x1x8xf32, #tpu.memory_space<vmem>>, vector<1x1x8xf32>,
    return
  }
  func.func @transform_0(%arg0: i32) -> (i32, i32, i32, i32) {
    %c0_i32 = arith.constant 0 : i32
    %c0_i32_0 = arith.constant 0 : i32
    %c0_i32_1 = arith.constant 0 : i32
    %c0_i32_2 = arith.constant 0 : i32
    return %arg0, %c0_i32, %c0_i32_0, %c0_i32_1 : i32, i32, i32, i32
  }
  func.func @transform_1(%arg0: i32) -> (i32, i32) {
    %c0_i32 = arith.constant 0 : i32
    %c0_i32_0 = arith.constant 0 : i32
    %c0_i32_1 = arith.constant 0 : i32
    return %c0_i32, %c0_i32_0 : i32, i32
  }
  func.func @transform_2(%arg0: i32) -> (i32, i32) {
    %c0_i32 = arith.constant 0 : i32
    %c0_i32_0 = arith.constant 0 : i32
    %c0_i32_1 = arith.constant 0 : i32
    return %c0_i32, %c0_i32_0 : i32, i32
  }
  func.func @transform_3(%arg0: i32) -> (i32, i32, i32, i32) {
    %c0_i32 = arith.constant 0 : i32
    %c0_i32_0 = arith.constant 0 : i32
    %c0_i32_1 = arith.constant 0 : i32
    %c0_i32_2 = arith.constant 0 : i32
    %c0_i32_3 = arith.constant 0 : i32
    return %c0_i32, %c0_i32_0, %c0_i32_1, %c0_i32_2 : i32, i32, i32, i32
  }
  func.func @transform_4(%arg0: i32) -> (i32, i32, i32, i32) {
    %c0_i32 = arith.constant 0 : i32
    %c0_i32_0 = arith.constant 0 : i32
    %c0_i32_1 = arith.constant 0 : i32
    %c0_i32_2 = arith.constant 0 : i32
    return %arg0, %c0_i32, %c0_i32_0, %c0_i32_1 : i32, i32, i32, i32
  }
  func.func @transform_5(%arg0: i32) -> (i32, i32, i32) {
    %c0_i32 = arith.constant 0 : i32
    %c0_i32_0 = arith.constant 0 : i32
    %c0_i32_1 = arith.constant 0 : i32
    return %arg0, %c0_i32, %c0_i32_0 : i32, i32, i32
  }
  func.func @transform_6(%arg0: i32) -> (i32, i32, i32) {
    %c0_i32 = arith.constant 0 : i32
    %c0_i32_0 = arith.constant 0 : i32
    %c0_i32_1 = arith.constant 0 : i32
    return %arg0, %c0_i32, %c0_i32_0 : i32, i32, i32
  }
}

</mosaic_0001>

<bundles_post_ra>
// kernel: encoder_forward.5
= control target key start
LH: loop header
LB: loop body
LE: loop exit
PB: predicated region body
PF: predicated region fallthrough
CT: control target
= control target key end

     0   :  { %s612_s15 = smov 0   ;;  %s848_s0 = inlined_call_operand.vmem [shape: f32[2,8,2,16,8], index: 0, kind: input, shape index: {}]   ;;  %s849_s1 = inlined_call_operand.vmem [shape: f32[1,8], index: 1, kind: input, shape index: {}]   ;;  %s850_s2 = inlined_call_operand.vmem [shape: f32[1,8], index: 2, kind: input, shape index: {}]   ;;  %s851_s3 = inlined_call_operand.vmem [shape: f32[2,8,2,16,8], index: 3, kind: output, shape index: {0}]   ;;  %s852_s4 = inlined_call_operand.vmem [shape: f32[2,8,8,8], index: 4, kind: output, shape index: {1}]  }
   0x1 LB: > { %s553_s16 = sadd.s32 4294967295, %s585_s15   ;;  %p557_p0 = scmp.ge.s32.totalorder %s585_s15, 1  ;;  %s585_s15 = sphi %s612_s15, %s15_s15  }
   0x2   : > { %p165_p1 = scmp.lt.s32.totalorder %s585_s15, 3 }
   0x4   : > { %p166_p2 = pnand %p557_p0, %p165_p1 }
   0x5   : > { %p196_p3 = scmp.lt.s32.totalorder (!%p166_p2), %s553_s16, 1  ;;  %v626_v0 = vld [vmem:[%s849_s1] ss:$0 sm:$0xff] (!%p166_p2)  ;;  %vm353_vm0 = vcmask (!%p166_p2), 64512  }
   0x6   : > { %169 = sbr.rel (%p166_p2) target bundleno = 62 (0x3e), region = 32  ;;  %v638_v1 = vld [vmem:[%s850_s2] ss:$0 sm:$0xff] (!%p166_p2) }
   0xd   : > { %s854_s16 = smov (!%p196_p3, %s553_s16), 1 }
   0xe   : > { %s568_s17 = sshll.u32 %s854_s16, 8  ;;  %s570_s28 = sshll.u32 %s854_s16, 6 }
   0xf   : > { %s633_s22 = scalar_lea.vmem %s848_s0, %s568_s17  ;;  %s669_s27 = scalar_lea.vmem %s851_s3, %s568_s17 }
  0x10   : > { %v211_v2 = vld [vmem:[%s633_s22] sm:$0xff]  ;;  %v213_v3 = vld [vmem:[%s633_s22 + $0x10] sm:$0xff]  ;;  %v212_v4 = vld [vmem:[%s633_s22 + $0x8] sm:$0xff]  ;;  %s806_s5 = scalar_lea.vmem %s852_s4, %s570_s28 }
  0x11   : > { %v250_v5 = vmul.f32 %v626_v0, %v211_v2  ;;  %v252_v6 = vmul.f32 %v626_v0, %v213_v3  ;;  %v214_v7 = vld [vmem:[%s633_s22 + $0x18] sm:$0xff]  ;;  %v251_v8 = vmul.f32 %v626_v0, %v212_v4  ;;  %v215_v9 = vld [vmem:[%s633_s22 + $0x20] sm:$0xff]  ;;  %v217_v10 = vld [vmem:[%s633_s22 + $0x30] sm:$0xff] }
  0x12   : > { %v253_v11 = vmul.f32 %v626_v0, %v214_v7  ;;  %v254_v12 = vmul.f32 %v626_v0, %v215_v9  ;;  %v256_v13 = vmul.f32 %v626_v0, %v217_v10  ;;  %v216_v14 = vld [vmem:[%s633_s22 + $0x28] sm:$0xff]  ;;  %v218_v15 = vld [vmem:[%s633_s22 + $0x38] sm:$0xff]  ;;  %v219_v24 = vld [vmem:[%s633_s22 + $0x40] sm:$0xff] }
  0x13   : > { %v289_v16 = vadd.f32 %v638_v1, %v250_v5  ;;  %v291_v17 = vadd.f32 %v638_v1, %v252_v6  ;;  %v290_v18 = vadd.f32 %v638_v1, %v251_v8  ;;  %v255_v19 = vmul.f32 %v626_v0, %v216_v14  ;;  %v221_v25 = vld [vmem:[%s633_s22 + $0x50] sm:$0xff]  ;;  %v220_v30 = vld [vmem:[%s633_s22 + $0x48] sm:$0xff]  ;;  %v222_v35 = vld [vmem:[%s633_s22 + $0x58] sm:$0xff] }
  0x14   : > { %v292_v20 = vadd.f32 %v638_v1, %v253_v11  ;;  %v293_v21 = vadd.f32 %v638_v1, %v254_v12  ;;  %v295_v22 = vadd.f32 %v638_v1, %v256_v13  ;;  %v257_v23 = vmul.f32 %v626_v0, %v218_v15  ;;  %v223_v36 = vld [vmem:[%s633_s22 + $0x60] sm:$0xff]  ;;  %v225_v41 = vld [vmem:[%s633_s22 + $0x70] sm:$0xff]  ;;  %v224_v42 = vld [vmem:[%s633_s22 + $0x68] sm:$0xff] }
  0x15   : > { %v321_v26 = vmax.f32 %v289_v16, 0.0  ;;  %v323_v27 = vmax.f32 %v291_v17, 0.0  ;;  %v322_v28 = vmax.f32 %v290_v18, 0.0  ;;  %v294_v29 = vadd.f32 %v638_v1, %v255_v19  ;;  %v226_v51 = vld [vmem:[%s633_s22 + $0x78] sm:$0xff]  ;;  %v227_v56 = vld [vmem:[%s633_s22 + $0x80] sm:$0xff]  ;;  %v229_v61 = vld [vmem:[%s633_s22 + $0x90] sm:$0xff] }
  0x16   : > { %v324_v31 = vmax.f32 %v292_v20, 0.0  ;;  %v325_v32 = vmax.f32 %v293_v21, 0.0  ;;  %v327_v33 = vmax.f32 %v295_v22, 0.0  ;;  %v296_v34 = vadd.f32 %v638_v1, %v257_v23  ;;  %v228_v4 = vld [vmem:[%s633_s22 + $0x88] sm:$0xff]  ;;  %v230_v5 = vld [vmem:[%s633_s22 + $0x98] sm:$0xff]  ;;  %v231_v10 = vld [vmem:[%s633_s22 + $0xa0] sm:$0xff] }
  0x17   : > { %v386_v37 = vmax.f32 %v321_v26, %v323_v27  ;;  %v326_v38 = vmax.f32 %v294_v29, 0.0  ;;  %v258_v39 = vmul.f32 %v626_v0, %v219_v24  ;;  %v260_v40 = vmul.f32 %v626_v0, %v221_v25  ;;  %354 = vst.msk [vmem:[%s669_s27] sm:$0xff] %vm353_vm0, %v321_v26  ;;  %355 = vst.msk [vmem:[%s669_s27 + $0x8] sm:$0xff] %vm353_vm0, %v322_v28  ;;  %v233_v15 = vld [vmem:[%s633_s22 + $0xb0] sm:$0xff]  ;;  %v232_v20 = vld [vmem:[%s633_s22 + $0xa8] sm:$0xff] }
  0x18   : > { %356 = vst.msk [vmem:[%s669_s27 + $0x10] sm:$0xff] %vm353_vm0, %v323_v27  ;;  %v387_v43 = vmax.f32 %v322_v28, %v324_v31  ;;  %v388_v44 = vmax.f32 %v325_v32, %v327_v33  ;;  %v328_v45 = vmax.f32 %v296_v34, 0.0  ;;  %v259_v46 = vmul.f32 %v626_v0, %v220_v30  ;;  %357 = vst.msk [vmem:[%s669_s27 + $0x18] sm:$0xff] %vm353_vm0, %v324_v31  ;;  %v234_v25 = vld [vmem:[%s633_s22 + $0xb8] sm:$0xff]  ;;  %v235_v30 = vld [vmem:[%s633_s22 + $0xc0] sm:$0xff] }
  0x19   : > { %358 = vst.msk [vmem:[%s669_s27 + $0x20] sm:$0xff] %vm353_vm0, %v325_v32  ;;  %360 = vst.msk [vmem:[%s669_s27 + $0x30] sm:$0xff] %vm353_vm0, %v327_v33  ;;  %v297_v47 = vadd.f32 %v638_v1, %v258_v39  ;;  %v299_v48 = vadd.f32 %v638_v1, %v260_v40  ;;  %v261_v49 = vmul.f32 %v626_v0, %v222_v35  ;;  %v237_v35 = vld [vmem:[%s633_s22 + $0xd0] sm:$0xff]  ;;  %v236_v40 = vld [vmem:[%s633_s22 + $0xc8] sm:$0xff] }
  0x1a   : > { %402 = vst.msk [vmem:[#allocation2] sm:$0xff] %vm353_vm0, %v386_v37  ;;  %v262_v50 = vmul.f32 %v626_v0, %v223_v36  ;;  %359 = vst.msk [vmem:[%s669_s27 + $0x28] sm:$0xff] %vm353_vm0, %v326_v38  ;;  %v389_v52 = vmax.f32 %v326_v38, %v328_v45  ;;  %v298_v53 = vadd.f32 %v638_v1, %v259_v46  ;;  %v239_v46 = vld [vmem:[%s633_s22 + $0xe0] sm:$0xff] }
  0x1b   : > { %403 = vst.msk [vmem:[#allocation2 + $0x8] sm:$0xff] %vm353_vm0, %v387_v43  ;;  %404 = vst.msk [vmem:[#allocation2 + $0x10] sm:$0xff] %vm353_vm0, %v388_v44  ;;  %v264_v54 = vmul.f32 %v626_v0, %v225_v41  ;;  %v263_v55 = vmul.f32 %v626_v0, %v224_v42  ;;  %v329_v57 = vmax.f32 %v297_v47, 0.0  ;;  %v331_v58 = vmax.f32 %v299_v48, 0.0  ;;  %v238_v41 = vld [vmem:[%s633_s22 + $0xd8] sm:$0xff] }
  0x1c   : > { %361 = vst.msk [vmem:[%s669_s27 + $0x38] sm:$0xff] %vm353_vm0, %v328_v45  ;;  %v300_v59 = vadd.f32 %v638_v1, %v261_v49  ;;  %v301_v60 = vadd.f32 %v638_v1, %v262_v50  ;;  %405 = vst.msk [vmem:[#allocation2 + $0x18] sm:$0xff] %vm353_vm0, %v389_v52  ;;  %v330_v62 = vmax.f32 %v298_v53, 0.0  ;;  %v265_v2 = vmul.f32 %v626_v0, %v226_v51  ;;  %v241_v51 = vld [vmem:[%s633_s22 + $0xf0] sm:$0xff] }
  0x1d   : > { %v303_v63 = vadd.f32 %v638_v1, %v264_v54  ;;  %v302_v3 = vadd.f32 %v638_v1, %v263_v55  ;;  %v390_v6 = vmax.f32 %v329_v57, %v331_v58  ;;  %v266_v9 = vmul.f32 %v626_v0, %v227_v56  ;;  %362 = vst.msk [vmem:[%s669_s27 + $0x40] sm:$0xff] %vm353_vm0, %v329_v57  ;;  %v240_v56 = vld [vmem:[%s633_s22 + $0xe8] sm:$0xff] }
  0x1e   : > { %v332_v7 = vmax.f32 %v300_v59, 0.0  ;;  %v333_v8 = vmax.f32 %v301_v60, 0.0  ;;  %364 = vst.msk [vmem:[%s669_s27 + $0x50] sm:$0xff] %vm353_vm0, %v331_v58  ;;  %v304_v12 = vadd.f32 %v638_v1, %v265_v2  ;;  %v268_v14 = vmul.f32 %v626_v0, %v229_v61  ;;  %363 = vst.msk [vmem:[%s669_s27 + $0x48] sm:$0xff] %vm353_vm0, %v330_v62  ;;  %v242_v61 = vld [vmem:[%s633_s22 + $0xf8] sm:$0xff] }
  0x1f   : > { %v335_v11 = vmax.f32 %v303_v63, 0.0  ;;  %v334_v13 = vmax.f32 %v302_v3, 0.0  ;;  %406 = vst.msk [vmem:[#allocation2 + $0x20] sm:$0xff] %vm353_vm0, %v390_v6  ;;  %v305_v17 = vadd.f32 %v638_v1, %v266_v9  ;;  %v267_v18 = vmul.f32 %v626_v0, %v228_v4 }
  0x20   : > { %v391_v16 = vmax.f32 %v330_v62, %v332_v7  ;;  %v269_v19 = vmul.f32 %v626_v0, %v230_v5  ;;  %365 = vst.msk [vmem:[%s669_s27 + $0x58] sm:$0xff] %vm353_vm0, %v332_v7  ;;  %366 = vst.msk [vmem:[%s669_s27 + $0x60] sm:$0xff] %vm353_vm0, %v333_v8  ;;  %v336_v22 = vmax.f32 %v304_v12, 0.0  ;;  %v307_v23 = vadd.f32 %v638_v1, %v268_v14 }
  0x21   : > { %v392_v21 = vmax.f32 %v333_v8, %v335_v11  ;;  %v270_v24 = vmul.f32 %v626_v0, %v231_v10  ;;  %367 = vst.msk [vmem:[%s669_s27 + $0x68] sm:$0xff] %vm353_vm0, %v334_v13  ;;  %368 = vst.msk [vmem:[%s669_s27 + $0x70] sm:$0xff] %vm353_vm0, %v335_v11  ;;  %v337_v26 = vmax.f32 %v305_v17, 0.0  ;;  %v306_v27 = vadd.f32 %v638_v1, %v267_v18 }
  0x22   : > { %407 = vst.msk [vmem:[#allocation2 + $0x28] sm:$0xff] %vm353_vm0, %v391_v16  ;;  %v308_v28 = vadd.f32 %v638_v1, %v269_v19  ;;  %v272_v29 = vmul.f32 %v626_v0, %v233_v15  ;;  %v393_v31 = vmax.f32 %v334_v13, %v336_v22  ;;  %v339_v32 = vmax.f32 %v307_v23, 0.0  ;;  %369 = vst.msk [vmem:[%s669_s27 + $0x78] sm:$0xff] %vm353_vm0, %v336_v22  ;;  %v418_v4 = vld [vmem:[#allocation2] ss:$2 sm:$0xff] }
  0x23   : > { %408 = vst.msk [vmem:[#allocation2 + $0x30] sm:$0xff] %vm353_vm0, %v392_v21  ;;  %v309_v33 = vadd.f32 %v638_v1, %v270_v24  ;;  %v271_v34 = vmul.f32 %v626_v0, %v232_v20  ;;  %v338_v36 = vmax.f32 %v306_v27, 0.0  ;;  %v273_v39 = vmul.f32 %v626_v0, %v234_v25  ;;  %370 = vst.msk [vmem:[%s669_s27 + $0x80] sm:$0xff] %vm353_vm0, %v337_v26  ;;  %v434_v5 = vld [vmem:[#allocation2 + $0x1] ss:$2 sm:$0xff] }
  0x24   : > { %v340_v37 = vmax.f32 %v308_v28, 0.0  ;;  %v311_v38 = vadd.f32 %v638_v1, %v272_v29  ;;  %409 = vst.msk [vmem:[#allocation2 + $0x38] sm:$0xff] %vm353_vm0, %v393_v31  ;;  %v394_v42 = vmax.f32 %v337_v26, %v339_v32  ;;  %v274_v45 = vmul.f32 %v626_v0, %v235_v30  ;;  %372 = vst.msk [vmem:[%s669_s27 + $0x90] sm:$0xff] %vm353_vm0, %v339_v32  ;;  %v420_v10 = vld [vmem:[#allocation2 + $0x10] ss:$2 sm:$0xff] }
  0x25   : > { %v341_v43 = vmax.f32 %v309_v33, 0.0  ;;  %v310_v44 = vadd.f32 %v638_v1, %v271_v34  ;;  %v312_v49 = vadd.f32 %v638_v1, %v273_v39  ;;  %v276_v50 = vmul.f32 %v626_v0, %v237_v35  ;;  %371 = vst.msk [vmem:[%s669_s27 + $0x88] sm:$0xff] %vm353_vm0, %v338_v36  ;;  %v436_v11 = vld [vmem:[#allocation2 + $0x11] ss:$2 sm:$0xff] }
  0x26   : > { %v395_v47 = vmax.f32 %v338_v36, %v340_v37  ;;  %v343_v48 = vmax.f32 %v311_v38, 0.0  ;;  %373 = vst.msk [vmem:[%s669_s27 + $0x98] sm:$0xff] %vm353_vm0, %v340_v37  ;;  %410 = vst.msk [vmem:[#allocation2 + $0x40] sm:$0xff] %vm353_vm0, %v394_v42  ;;  %v313_v53 = vadd.f32 %v638_v1, %v274_v45  ;;  %v275_v54 = vmul.f32 %v626_v0, %v236_v40 }
  0x27   : > { %v342_v52 = vmax.f32 %v310_v44, 0.0  ;;  %v277_v55 = vmul.f32 %v626_v0, %v238_v41  ;;  %374 = vst.msk [vmem:[%s669_s27 + $0xa0] sm:$0xff] %vm353_vm0, %v341_v43  ;;  %v344_v58 = vmax.f32 %v312_v49, 0.0  ;;  %v315_v59 = vadd.f32 %v638_v1, %v276_v50 }
  0x28   : > { %411 = vst.msk [vmem:[#allocation2 + $0x48] sm:$0xff] %vm353_vm0, %v395_v47  ;;  %v396_v57 = vmax.f32 %v341_v43, %v343_v48  ;;  %v278_v60 = vmul.f32 %v626_v0, %v239_v46  ;;  %376 = vst.msk [vmem:[%s669_s27 + $0xb0] sm:$0xff] %vm353_vm0, %v343_v48  ;;  %v345_v62 = vmax.f32 %v313_v53, 0.0  ;;  %v314_v63 = vadd.f32 %v638_v1, %v275_v54 }
  0x29   : > { %v316_v2 = vadd.f32 %v638_v1, %v277_v55  ;;  %v280_v3 = vmul.f32 %v626_v0, %v241_v51  ;;  %375 = vst.msk [vmem:[%s669_s27 + $0xa8] sm:$0xff] %vm353_vm0, %v342_v52  ;;  %v397_v6 = vmax.f32 %v342_v52, %v344_v58  ;;  %v347_v7 = vmax.f32 %v315_v59, 0.0  ;;  %377 = vst.msk [vmem:[%s669_s27 + $0xb8] sm:$0xff] %vm353_vm0, %v344_v58  ;;  %v422_v16 = vld [vmem:[#allocation2 + $0x20] ss:$2 sm:$0xff] }
  0x2a   : > { %412 = vst.msk [vmem:[#allocation2 + $0x50] sm:$0xff] %vm353_vm0, %v396_v57  ;;  %v317_v8 = vadd.f32 %v638_v1, %v278_v60  ;;  %v279_v9 = vmul.f32 %v626_v0, %v240_v56  ;;  %v346_v12 = vmax.f32 %v314_v63, 0.0  ;;  %v281_v15 = vmul.f32 %v626_v0, %v242_v61  ;;  %378 = vst.msk [vmem:[%s669_s27 + $0xc0] sm:$0xff] %vm353_vm0, %v345_v62  ;;  %v438_v17 = vld [vmem:[#allocation2 + $0x21] ss:$2 sm:$0xff] }
  0x2b   : > { %v348_v13 = vmax.f32 %v316_v2, 0.0  ;;  %v319_v14 = vadd.f32 %v638_v1, %v280_v3  ;;  %413 = vst.msk [vmem:[#allocation2 + $0x58] sm:$0xff] %vm353_vm0, %v397_v6  ;;  %v398_v18 = vmax.f32 %v345_v62, %v347_v7  ;;  %380 = vst.msk [vmem:[%s669_s27 + $0xd0] sm:$0xff] %vm353_vm0, %v347_v7  ;;  %v449_v0 = vmax.f32 %v418_v4, %v434_v5  ;;  %v424_v21 = vld [vmem:[#allocation2 + $0x30] ss:$2 sm:$0xff] }
  0x2c   : > { %v349_v19 = vmax.f32 %v317_v8, 0.0  ;;  %v318_v20 = vadd.f32 %v638_v1, %v279_v9  ;;  %v440_v22 = vld [vmem:[#allocation2 + $0x31] ss:$2 sm:$0xff]  ;;  %v320_v25 = vadd.f32 %v638_v1, %v281_v15  ;;  %379 = vst.msk [vmem:[%s669_s27 + $0xc8] sm:$0xff] %vm353_vm0, %v346_v12  ;;  %v450_v26 = vmax.f32 %v420_v10, %v436_v11 }
  0x2d   : > { %v399_v23 = vmax.f32 %v346_v12, %v348_v13  ;;  %v351_v24 = vmax.f32 %v319_v14, 0.0  ;;  %381 = vst.msk [vmem:[%s669_s27 + $0xd8] sm:$0xff] %vm353_vm0, %v348_v13  ;;  %414 = vst.msk [vmem:[#allocation2 + $0x60] sm:$0xff] %vm353_vm0, %v398_v18  ;;  %v451_v28 = vmax.f32 %v422_v16, %v438_v17  ;;  %v452_v29 = vmax.f32 %v424_v21, %v440_v22 }
  0x2e   : > { %v350_v27 = vmax.f32 %v318_v20, 0.0  ;;  %382 = vst.msk [vmem:[%s669_s27 + $0xe0] sm:$0xff] %vm353_vm0, %v349_v19  ;;  %457 = vst.msk [vmem:[%s806_s5] sm:$0xff] %vm353_vm0, %v449_v0  ;;  %v352_v30 = vmax.f32 %v320_v25, 0.0 }
  0x2f   : > { %415 = vst.msk [vmem:[#allocation2 + $0x68] sm:$0xff] %vm353_vm0, %v399_v23  ;;  %v400_v1 = vmax.f32 %v349_v19, %v351_v24  ;;  %384 = vst.msk [vmem:[%s669_s27 + $0xf0] sm:$0xff] %vm353_vm0, %v351_v24  ;;  %v426_v31 = vld [vmem:[#allocation2 + $0x40] ss:$2 sm:$0xff]  ;;  %v442_v32 = vld [vmem:[#allocation2 + $0x41] ss:$2 sm:$0xff] }
  0x30   : > { %458 = vst.msk [vmem:[%s806_s5 + $0x8] sm:$0xff] %vm353_vm0, %v450_v26  ;;  %383 = vst.msk [vmem:[%s669_s27 + $0xe8] sm:$0xff] %vm353_vm0, %v350_v27  ;;  %v453_v33 = vmax.f32 %v426_v31, %v442_v32  ;;  %v401_v34 = vmax.f32 %v350_v27, %v352_v30 }
  0x31   : > { %459 = vst.msk [vmem:[%s806_s5 + $0x10] sm:$0xff] %vm353_vm0, %v451_v28  ;;  %460 = vst.msk [vmem:[%s806_s5 + $0x18] sm:$0xff] %vm353_vm0, %v452_v29 }
  0x32   : > { %416 = vst.msk [vmem:[#allocation2 + $0x70] sm:$0xff] %vm353_vm0, %v400_v1  ;;  %385 = vst.msk [vmem:[%s669_s27 + $0xf8] sm:$0xff] %vm353_vm0, %v352_v30  ;;  %v428_v35 = vld [vmem:[#allocation2 + $0x50] ss:$2 sm:$0xff]  ;;  %v444_v36 = vld [vmem:[#allocation2 + $0x51] ss:$2 sm:$0xff] }
  0x33   : > { %461 = vst.msk [vmem:[%s806_s5 + $0x20] sm:$0xff] %vm353_vm0, %v453_v33  ;;  %417 = vst.msk [vmem:[#allocation2 + $0x78] sm:$0xff] %vm353_vm0, %v401_v34  ;;  %v454_v37 = vmax.f32 %v428_v35, %v444_v36 }
  0x35   : > { %462 = vst.msk [vmem:[%s806_s5 + $0x28] sm:$0xff] %vm353_vm0, %v454_v37 }
  0x36   : > { %v430_v38 = vld [vmem:[#allocation2 + $0x60] ss:$2 sm:$0xff]  ;;  %v446_v39 = vld [vmem:[#allocation2 + $0x61] ss:$2 sm:$0xff] }
  0x37   : > { %v455_v40 = vmax.f32 %v430_v38, %v446_v39 }
  0x39   : > { %463 = vst.msk [vmem:[%s806_s5 + $0x30] sm:$0xff] %vm353_vm0, %v455_v40 }
  0x3a   : > { %v432_v41 = vld [vmem:[#allocation2 + $0x70] ss:$2 sm:$0xff]  ;;  %v448_v42 = vld [vmem:[#allocation2 + $0x71] ss:$2 sm:$0xff] }
  0x3b   : > { %v456_v43 = vmax.f32 %v432_v41, %v448_v42 }
  0x3d   : > { %464 = vst.msk [vmem:[%s806_s5 + $0x38] sm:$0xff] %vm353_vm0, %v456_v43 }
  0x3e PF: > { %s15_s15 = sadd.s32 1, %s585_s15  }
  0x3f   : > { %p12_p4 = scmp.ge.s32.totalorder %s15_s15, 4  }
  0x41   :  { %14 = sbr.rel (!%p12_p4) target bundleno = 1 (0x1), region = 89 }

// kernel: encoder_forward.3
= control target key start
LH: loop header
LB: loop body
LE: loop exit
PB: predicated region body
PF: predicated region fallthrough
CT: control target
= control target key end

     0   :  { %s4867_s15 = smov 0   ;;  %s6275_s0 = inlined_call_operand.vmem [shape: f32[2,16,16,4], index: 0, kind: input, shape index: {}]   ;;  %s6276_s1 = inlined_call_operand.vmem [shape: f32[3,3,4,8], index: 1, kind: input, shape index: {}]   ;;  %s6277_s2 = inlined_call_operand.vmem [shape: f32[2,16,16,8], index: 2, kind: output, shape index: {0}]   ;;  %s6278_s3 = inlined_call_operand.vmem [shape: f32[2,1,8], index: 3, kind: output, shape index: {1}]   ;;  %s6279_s4 = inlined_call_operand.vmem [shape: f32[2,1,8], index: 4, kind: output, shape index: {2}]  }
   0x1 LB: > { %s3500_s16 = sadd.s32 4294967295, %s4839_s15   ;;  %p3504_p0 = scmp.ge.s32.totalorder %s4839_s15, 1  ;;  %s4839_s15 = sphi %s4867_s15, %s15_s15  }
   0x2   : > { %p167_p1 = scmp.lt.s32.totalorder %s4839_s15, 3 }
   0x4   : > { %p168_p2 = pnand %p3504_p0, %p167_p1 }
   0x6   : > { %171 = sbr.rel (%p168_p2) target bundleno = 578 (0x242), region = 28 }
   0xd   : > { %v4878_v0 = vld [vmem:[%s6276_s1 + $0x4] sm:$0xf]  ;;  %vm621_vm0 = vcmask 1043456   ;;  %vm247_vm1 = vcmask 31744   ;;  %p4882_p3 = scmp.lt.s32.totalorder %s3500_s16, 1  ;;  %v4841_v1 = vmov 0.0  }
   0xe   : > { %4115 = vmatprep.subr.msk.mxu1 %vm621_vm0, %v4878_v0  ;;  %249 = vst.msk [vmem:[#allocation2 + $0x8] sm:$0xff] %vm247_vm1, %v4841_v1  ;;  %248 = vst.msk [vmem:[#allocation2] sm:$0xff] %vm247_vm1, %v4841_v1  ;;  %v5035_v2 = vld [vmem:[%s6276_s1 + $0x10] sm:$0xf]  ;;  %v554_v3 = vld [vmem:[%s6276_s1] sm:$0xf] }
   0xf   : > { %250 = vst.msk [vmem:[#allocation2 + $0x10] sm:$0xff] %vm247_vm1, %v4841_v1  ;;  %251 = vst.msk [vmem:[#allocation2 + $0x18] sm:$0xff] %vm247_vm1, %v4841_v1  ;;  %v5043_v4 = vld [vmem:[%s6276_s1 + $0x14] sm:$0xf]  ;;  %4116 = vmatpush3.msk.msra.mxu1 %vm621_vm0, %v4878_v0  ;;  %4315 = vmatprep.subr.msk.mxu0 %vm621_vm0, %v5035_v2  ;;  %s6444_s16 = smov (!%p4882_p3, %s3500_s16), 1  ;;  %vm1158_vm2 = vcmask 1046528  }
  0x10   : > { %252 = vst.msk [vmem:[#allocation2 + $0x20] sm:$0xff] %vm247_vm1, %v4841_v1  ;;  %253 = vst.msk [vmem:[#allocation2 + $0x28] sm:$0xff] %vm247_vm1, %v4841_v1  ;;  %4316 = vmatpush3.msk.msra.mxu0 %vm621_vm0, %v5035_v2  ;;  %4165 = vmatprep.subr.msk.mxu1 %vm621_vm0, %v554_v3  ;;  %s3816_s26 = sshll.u32 %s6444_s16, 8  ;;  %v5095_v18 = vld [vmem:[%s6276_s1 + $0x8] sm:$0xf]  ;;  %vm473_vm3 = vcmask 1040384   ;;  %s211_s23 = scalar_lea.vmem %s6278_s3, %s6444_s16 }
  0x11   : > { %254 = vst.msk [vmem:[#allocation2 + $0x30] sm:$0xff] %vm247_vm1, %v4841_v1  ;;  %255 = vst.msk [vmem:[#allocation2 + $0x38] sm:$0xff] %vm247_vm1, %v4841_v1  ;;  %4365 = vmatprep.subr.msk.mxu0 %vm621_vm0, %v5043_v4  ;;  %s5066_s29 = scalar_lea.vmem %s6275_s0, %s3816_s26  ;;  %v5144_v34 = vld [vmem:[%s6276_s1 + $0x18] sm:$0xf]  ;;  %s6126_s20 = scalar_lea.vmem %s6277_s2, %s3816_s26  ;;  %vm3189_vm4 = vcmask 64512   ;;  %vm3291_vm5 = vcmask 57344  }
  0x12   : > { %256 = vst.msk [vmem:[#allocation2 + $0x40] sm:$0xff] %vm247_vm1, %v4841_v1  ;;  %257 = vst.msk [vmem:[#allocation2 + $0x48] sm:$0xff] %vm247_vm1, %v4841_v1  ;;  %v215_v5 = vld [vmem:[%s5066_s29] sm:$0xff]  ;;  %v216_v6 = vld [vmem:[%s5066_s29 + $0x8] sm:$0xff]  ;;  %s214_s26 = scalar_lea.vmem %s6279_s4, %s6444_s16 }
  0x13   : > { %258 = vst.msk [vmem:[#allocation2 + $0x50] sm:$0xff] %vm247_vm1, %v4841_v1  ;;  %259 = vst.msk [vmem:[#allocation2 + $0x58] sm:$0xff] %vm247_vm1, %v4841_v1  ;;  %v217_v7 = vld [vmem:[%s5066_s29 + $0x10] sm:$0xff]  ;;  %v218_v8 = vld [vmem:[%s5066_s29 + $0x18] sm:$0xff] }
  0x14   : > { %260 = vst.msk [vmem:[#allocation2 + $0x60] sm:$0xff] %vm247_vm1, %v4841_v1  ;;  %261 = vst.msk [vmem:[#allocation2 + $0x68] sm:$0xff] %vm247_vm1, %v4841_v1  ;;  %v219_v9 = vld [vmem:[%s5066_s29 + $0x20] sm:$0xff]  ;;  %v220_v10 = vld [vmem:[%s5066_s29 + $0x28] sm:$0xff] }
  0x15   : > { %262 = vst.msk [vmem:[#allocation2 + $0x70] sm:$0xff] %vm247_vm1, %v4841_v1  ;;  %263 = vst.msk [vmem:[#allocation2 + $0x78] sm:$0xff] %vm247_vm1, %v4841_v1  ;;  %v5077_v11 = vld [vmem:[#allocation2 + $0x8] sm:$0xff]  ;;  %v221_v13 = vld [vmem:[%s5066_s29 + $0x30] sm:$0xff] }
  0x16   : > { %264 = vst.msk [vmem:[#allocation2 + $0x80] sm:$0xff] %vm247_vm1, %v4841_v1  ;;  %265 = vst.msk [vmem:[#allocation2 + $0x88] sm:$0xff] %vm247_vm1, %v4841_v1  ;;  %v5079_v12 = vld [vmem:[#allocation2 + $0x10] sm:$0xff]  ;;  %4117 = vmatprep.mubr.msk.f32.mxu1 %vm247_vm1, %v5077_v11  ;;  %v1159_v14 = vrot.slane %v5077_v11, 1  ;;  %v222_v16 = vld [vmem:[%s5066_s29 + $0x38] sm:$0xff] }
  0x17   : > { %266 = vst.msk [vmem:[#allocation2 + $0x90] sm:$0xff] %vm247_vm1, %v4841_v1  ;;  %267 = vst.msk [vmem:[#allocation2 + $0x98] sm:$0xff] %vm247_vm1, %v4841_v1  ;;  %v6280_v15 = vrot.slane %v5079_v12, 1  ;;  %v223_v17 = vld [vmem:[%s5066_s29 + $0x40] sm:$0xff]  ;;  %4118 = vmatmul.mubr.msk.f32.vlgmr.msra.gmra.mrb[0].mxu1 %vm247_vm1, %v5079_v12  ;;  %v224_v19 = vld [vmem:[%s5066_s29 + $0x48] sm:$0xff] }
  0x18   : > { %268 = vst.msk [vmem:[#allocation2 + $0xa0] sm:$0xff] %vm247_vm1, %v4841_v1  ;;  %269 = vst.msk [vmem:[#allocation2 + $0xa8] sm:$0xff] %vm247_vm1, %v4841_v1  ;;  %v225_v20 = vld [vmem:[%s5066_s29 + $0x50] sm:$0xff]  ;;  %v226_v21 = vld [vmem:[%s5066_s29 + $0x58] sm:$0xff]  ;;  %4166 = vmatpush3.msk.msra.mxu1 %vm621_vm0, %v554_v3 }
  0x19   : > { %270 = vst.msk [vmem:[#allocation2 + $0xb0] sm:$0xff] %vm247_vm1, %v4841_v1  ;;  %271 = vst.msk [vmem:[#allocation2 + $0xb8] sm:$0xff] %vm247_vm1, %v4841_v1  ;;  %v227_v22 = vld [vmem:[%s5066_s29 + $0x60] sm:$0xff]  ;;  %v228_v23 = vld [vmem:[%s5066_s29 + $0x68] sm:$0xff]  ;;  %v5114_v25 = vsel %vm1158_vm2, %v1159_v14, %v6280_v15  ;;  %4215 = vmatprep.subr.msk.mxu1 %vm621_vm0, %v5095_v18 }
  0x1a   : > { %272 = vst.msk [vmem:[#allocation2 + $0xc0] sm:$0xff] %vm247_vm1, %v4841_v1  ;;  %273 = vst.msk [vmem:[#allocation2 + $0xc8] sm:$0xff] %vm247_vm1, %v4841_v1  ;;  %v229_v24 = vld [vmem:[%s5066_s29 + $0x70] sm:$0xff]  ;;  %v230_v26 = vld [vmem:[%s5066_s29 + $0x78] sm:$0xff] }
  0x1b   : > { %274 = vst.msk [vmem:[#allocation2 + $0xd0] sm:$0xff] %vm247_vm1, %v4841_v1  ;;  %275 = vst.msk [vmem:[#allocation2 + $0xd8] sm:$0xff] %vm247_vm1, %v4841_v1  ;;  %v231_v27 = vld [vmem:[%s5066_s29 + $0x80] sm:$0xff]  ;;  %v232_v28 = vld [vmem:[%s5066_s29 + $0x88] sm:$0xff] }
  0x1c   : > { %276 = vst.msk [vmem:[#allocation2 + $0xe0] sm:$0xff] %vm247_vm1, %v4841_v1  ;;  %277 = vst.msk [vmem:[#allocation2 + $0xe8] sm:$0xff] %vm247_vm1, %v4841_v1  ;;  %v233_v29 = vld [vmem:[%s5066_s29 + $0x90] sm:$0xff]  ;;  %v234_v30 = vld [vmem:[%s5066_s29 + $0x98] sm:$0xff] }
  0x1d   : > { %278 = vst.msk [vmem:[#allocation2 + $0xf0] sm:$0xff] %vm247_vm1, %v4841_v1  ;;  %279 = vst.msk [vmem:[#allocation2 + $0xf8] sm:$0xff] %vm247_vm1, %v4841_v1  ;;  %v235_v36 = vld [vmem:[%s5066_s29 + $0xa0] sm:$0xff]  ;;  %v236_v39 = vld [vmem:[%s5066_s29 + $0xa8] sm:$0xff] }
  0x1e   : > { %280 = vst.msk [vmem:[#allocation2 + $0x100] sm:$0xff] %vm247_vm1, %v4841_v1  ;;  %281 = vst.msk [vmem:[#allocation2 + $0x108] sm:$0xff] %vm247_vm1, %v4841_v1  ;;  %v237_v41 = vld [vmem:[%s5066_s29 + $0xb0] sm:$0xff]  ;;  %v238_v42 = vld [vmem:[%s5066_s29 + $0xb8] sm:$0xff] }
  0x1f   : > { %282 = vst.msk [vmem:[#allocation2 + $0x110] sm:$0xff] %vm247_vm1, %v4841_v1  ;;  %283 = vst.msk [vmem:[#allocation2 + $0x118] sm:$0xff] %vm247_vm1, %v4841_v1  ;;  %v239_v43 = vld [vmem:[%s5066_s29 + $0xc0] sm:$0xff]  ;;  %v240_v44 = vld [vmem:[%s5066_s29 + $0xc8] sm:$0xff] }
  0x20   : > { %284 = vst.msk [vmem:[#allocation2 + $0x120] sm:$0xff] %vm247_vm1, %v4841_v1  ;;  %285 = vst.msk [vmem:[#allocation2 + $0x128] sm:$0xff] %vm247_vm1, %v4841_v1  ;;  %v241_v45 = vld [vmem:[%s5066_s29 + $0xd0] sm:$0xff]  ;;  %v242_v46 = vld [vmem:[%s5066_s29 + $0xd8] sm:$0xff] }
  0x21   : > { %286 = vst.msk [vmem:[#allocation2 + $0x130] sm:$0xff] %vm247_vm1, %v4841_v1  ;;  %287 = vst.msk [vmem:[#allocation2 + $0x138] sm:$0xff] %vm247_vm1, %v4841_v1  ;;  %v243_v48 = vld [vmem:[%s5066_s29 + $0xe0] sm:$0xff]  ;;  %v244_v50 = vld [vmem:[%s5066_s29 + $0xe8] sm:$0xff] }
  0x22   : > { %288 = vst.msk [vmem:[#allocation2 + $0x140] sm:$0xff] %vm247_vm1, %v4841_v1  ;;  %289 = vst.msk [vmem:[#allocation2 + $0x148] sm:$0xff] %vm247_vm1, %v4841_v1  ;;  %v245_v55 = vld [vmem:[%s5066_s29 + $0xf0] sm:$0xff]  ;;  %v246_v56 = vld [vmem:[%s5066_s29 + $0xf8] sm:$0xff] }
  0x23   : > { %290 = vst.msk [vmem:[#allocation2 + $0x150] sm:$0xff] %vm247_vm1, %v4841_v1  ;;  %291 = vst.msk [vmem:[#allocation2 + $0x158] sm:$0xff] %vm247_vm1, %v4841_v1  ;;  %v360_v61 = vld [vmem:[#allocation2 + $0x38] sm:$0xff] }
  0x24   : > { %292 = vst.msk [vmem:[#allocation2 + $0x160] sm:$0xff] %vm247_vm1, %v4841_v1  ;;  %293 = vst.msk [vmem:[#allocation2 + $0x168] sm:$0xff] %vm247_vm1, %v4841_v1  ;;  %v1167_v63 = vrot.slane %v360_v61, 1  ;;  %v364_v3 = vld [vmem:[#allocation2 + $0x58] sm:$0xff] }
  0x25   : > { %294 = vst.msk [vmem:[#allocation2 + $0x170] sm:$0xff] %vm247_vm1, %v4841_v1  ;;  %295 = vst.msk [vmem:[#allocation2 + $0x178] sm:$0xff] %vm247_vm1, %v4841_v1  ;;  %v368_v14 = vld [vmem:[#allocation2 + $0x78] sm:$0xff] }
  0x26   : > { %296 = vst.msk [vmem:[#allocation2 + $0x180] sm:$0xff] %vm247_vm1, %v4841_v1  ;;  %297 = vst.msk [vmem:[#allocation2 + $0x188] sm:$0xff] %vm247_vm1, %v4841_v1 }
  0x27   : > { %298 = vst.msk [vmem:[#allocation2 + $0x190] sm:$0xff] %vm247_vm1, %v4841_v1  ;;  %299 = vst.msk [vmem:[#allocation2 + $0x198] sm:$0xff] %vm247_vm1, %v4841_v1 }
  0x28   : > { %300 = vst.msk [vmem:[#allocation2 + $0x1a0] sm:$0xff] %vm247_vm1, %v4841_v1  ;;  %301 = vst.msk [vmem:[#allocation2 + $0x1a8] sm:$0xff] %vm247_vm1, %v4841_v1 }
  0x29   : > { %302 = vst.msk [vmem:[#allocation2 + $0x1b0] sm:$0xff] %vm247_vm1, %v4841_v1  ;;  %303 = vst.msk [vmem:[#allocation2 + $0x1b8] sm:$0xff] %vm247_vm1, %v4841_v1 }
  0x2a   : > { %304 = vst.msk [vmem:[#allocation2 + $0x1c0] sm:$0xff] %vm247_vm1, %v4841_v1  ;;  %305 = vst.msk [vmem:[#allocation2 + $0x1c8] sm:$0xff] %vm247_vm1, %v4841_v1 }
  0x2b   : > { %306 = vst.msk [vmem:[#allocation2 + $0x1d0] sm:$0xff] %vm247_vm1, %v4841_v1  ;;  %307 = vst.msk [vmem:[#allocation2 + $0x1d8] sm:$0xff] %vm247_vm1, %v4841_v1 }
  0x2c   : > { %308 = vst.msk [vmem:[#allocation2 + $0x1e0] sm:$0xff] %vm247_vm1, %v4841_v1  ;;  %309 = vst.msk [vmem:[#allocation2 + $0x1e8] sm:$0xff] %vm247_vm1, %v4841_v1 }
  0x2d   : > { %310 = vst.msk [vmem:[#allocation2 + $0x1f0] sm:$0xff] %vm247_vm1, %v4841_v1  ;;  %311 = vst.msk [vmem:[#allocation2 + $0x1f8] sm:$0xff] %vm247_vm1, %v4841_v1 }
  0x2e   : > { %312 = vst.msk [vmem:[#allocation2 + $0x200] sm:$0xff] %vm247_vm1, %v4841_v1  ;;  %313 = vst.msk [vmem:[#allocation2 + $0x208] sm:$0xff] %vm247_vm1, %v4841_v1 }
  0x2f   : > { %314 = vst.msk [vmem:[#allocation2 + $0x210] sm:$0xff] %vm247_vm1, %v4841_v1  ;;  %315 = vst.msk [vmem:[#allocation2 + $0x218] sm:$0xff] %vm247_vm1, %v4841_v1 }
  0x30   : > { %316 = vst.msk [vmem:[#allocation2 + $0x220] sm:$0xff] %vm247_vm1, %v4841_v1  ;;  %317 = vst.msk [vmem:[#allocation2 + $0x228] sm:$0xff] %vm247_vm1, %v4841_v1 }
  0x31   : > { %318 = vst.msk [vmem:[#allocation2 + $0x230] sm:$0xff] %vm247_vm1, %v4841_v1  ;;  %319 = vst.msk [vmem:[#allocation2 + $0x238] sm:$0xff] %vm247_vm1, %v4841_v1 }
  0x32   : > { %321 = vst.msk [vmem:[#allocation2 + $0x28] sm:$0xff] %vm247_vm1, %v215_v5  ;;  %322 = vst.msk [vmem:[#allocation2 + $0x30] sm:$0xff] %vm247_vm1, %v216_v6 }
  0x33   : > { %323 = vst.msk [vmem:[#allocation2 + $0x48] sm:$0xff] %vm247_vm1, %v217_v7  ;;  %324 = vst.msk [vmem:[#allocation2 + $0x50] sm:$0xff] %vm247_vm1, %v218_v8  ;;  %v1172_v8 = vrot.slane %v364_v3, 1 }
  0x34   : > { %325 = vst.msk [vmem:[#allocation2 + $0x68] sm:$0xff] %vm247_vm1, %v219_v9  ;;  %326 = vst.msk [vmem:[#allocation2 + $0x70] sm:$0xff] %vm247_vm1, %v220_v10 }
  0x35   : > { %327 = vst.msk [vmem:[#allocation2 + $0x88] sm:$0xff] %vm247_vm1, %v221_v13  ;;  %328 = vst.msk [vmem:[#allocation2 + $0x90] sm:$0xff] %vm247_vm1, %v222_v16 }
  0x36   : > { %329 = vst.msk [vmem:[#allocation2 + $0xa8] sm:$0xff] %vm247_vm1, %v223_v17  ;;  %330 = vst.msk [vmem:[#allocation2 + $0xb0] sm:$0xff] %vm247_vm1, %v224_v19  ;;  %v5288_v17 = vld [vmem:[%s6276_s1 + $0x1c] sm:$0xf] }
  0x37   : > { %331 = vst.msk [vmem:[#allocation2 + $0xc8] sm:$0xff] %vm247_vm1, %v225_v20  ;;  %332 = vst.msk [vmem:[#allocation2 + $0xd0] sm:$0xff] %vm247_vm1, %v226_v21  ;;  %v1177_v21 = vrot.slane %v368_v14, 1 }
  0x38   : > { %333 = vst.msk [vmem:[#allocation2 + $0xe8] sm:$0xff] %vm247_vm1, %v227_v22  ;;  %334 = vst.msk [vmem:[#allocation2 + $0xf0] sm:$0xff] %vm247_vm1, %v228_v23 }
  0x39   : > { %335 = vst.msk [vmem:[#allocation2 + $0x108] sm:$0xff] %vm247_vm1, %v229_v24  ;;  %336 = vst.msk [vmem:[#allocation2 + $0x110] sm:$0xff] %vm247_vm1, %v230_v26  ;;  %v5129_v31 = vld [vmem:[#allocation2 + $0x28] sm:$0xff]  ;;  %v5131_v32 = vld [vmem:[#allocation2 + $0x30] sm:$0xff] }
  0x3a   : > { %337 = vst.msk [vmem:[#allocation2 + $0x128] sm:$0xff] %vm247_vm1, %v231_v27  ;;  %338 = vst.msk [vmem:[#allocation2 + $0x130] sm:$0xff] %vm247_vm1, %v232_v28  ;;  %v5133_v33 = vld [vmem:[#allocation2 + $0x48] sm:$0xff]  ;;  %4120 = vmatprep.mubr.msk.f32.mxu1 %vm247_vm1, %v5129_v31  ;;  %4317 = vmatprep.mubr.msk.f32.mxu0 %vm247_vm1, %v5129_v31  ;;  %v5154_v35 = vld [vmem:[#allocation2 + $0x50] sm:$0xff]  ;;  %v1164_v58 = vrot.slane %v5129_v31, 1  ;;  %v1165_v59 = vrot.slane %v5131_v32, 1 }
  0x3b   : > { %6347 = vst [vmem:[#allocation3_spill] sm:$0xff] %v5133_v33  ;;  %339 = vst.msk [vmem:[#allocation2 + $0x148] sm:$0xff] %vm247_vm1, %v233_v29  ;;  %4121 = vmatmul.mubr.msk.f32.gmra.mrb[2].mxu1 %vm247_vm1, %v5131_v32  ;;  %4318 = vmatmul.mubr.msk.f32.vlgmr.msra.gmra.mrb[0].mxu0 %vm247_vm1, %v5131_v32  ;;  %v5159_v37 = vld [vmem:[#allocation2 + $0x68] sm:$0xff]  ;;  %v5172_v38 = vld [vmem:[#allocation2 + $0x70] sm:$0xff]  ;;  %v1170_v5 = vrot.slane %v5154_v35, 1 }
  0x3c   : > { %340 = vst.msk [vmem:[#allocation2 + $0x150] sm:$0xff] %vm247_vm1, %v234_v30  ;;  %4366 = vmatpush3.msk.msra.mxu0 %vm621_vm0, %v5043_v4  ;;  %4123 = vmatprep.mubr.msk.f32.mxu1 %vm247_vm1, %v5133_v33  ;;  %6348 = vst [vmem:[#allocation4_spill] sm:$0xff] %v5154_v35  ;;  %v5175_v40 = vld [vmem:[#allocation2 + $0x88] sm:$0xff]  ;;  %v5196_v47 = vld [vmem:[#allocation2 + $0x90] sm:$0xff]  ;;  %v5261_v1 = vsel %vm1158_vm2, %v1164_v58, %v1165_v59  ;;  %v1169_v4 = vrot.slane %v5133_v33, 1  ;;  %v5276_v7 = vsel %vm1158_vm2, %v1165_v59, %v1167_v63 }
  0x3d   : > { %4320 = vmatprep.mubr.msk.f32.mxu0 %vm247_vm1, %v5133_v33  ;;  %6349 = vst [vmem:[#allocation5_spill] sm:$0xff] %v5159_v37  ;;  %4415 = vmatprep.subr.msk.mxu0 %vm621_vm0, %v5144_v34  ;;  %341 = vst.msk [vmem:[#allocation2 + $0x168] sm:$0xff] %vm247_vm1, %v235_v36  ;;  %v5201_v49 = vld [vmem:[#allocation2 + $0xa8] sm:$0xff]  ;;  %v5214_v51 = vld [vmem:[#allocation2 + $0xb0] sm:$0xff]  ;;  %v1174_v10 = vrot.slane %v5159_v37, 1  ;;  %v1175_v13 = vrot.slane %v5172_v38, 1  ;;  %v5301_v20 = vsel %vm1158_vm2, %v1170_v5, %v1172_v8 }
  0x3e   : > { %6350 = vst [vmem:[#allocation6_spill] sm:$0xff] %v5172_v38  ;;  %6351 = vst [vmem:[#allocation7_spill] sm:$0xff] %v5175_v40  ;;  %v5216_v52 = vld [vmem:[#allocation2 + $0xc8] sm:$0xff]  ;;  %v5226_v53 = vld [vmem:[#allocation2 + $0xd0] sm:$0xff]  ;;  %v5283_v16 = vsel %vm1158_vm2, %v1169_v4, %v1170_v5  ;;  %v1179_v24 = vrot.slane %v5175_v40, 1  ;;  %v1180_v26 = vrot.slane %v5196_v47, 1 }
  0x3f   : > { %4124 = vmatmul.mubr.msk.f32.gmra.mrb[4].mxu1 %vm247_vm1, %v5154_v35  ;;  %4321 = vmatmul.mubr.msk.f32.gmra.mrb[2].mxu0 %vm247_vm1, %v5154_v35  ;;  %342 = vst.msk [vmem:[#allocation2 + $0x170] sm:$0xff] %vm247_vm1, %v236_v39  ;;  %343 = vst.msk [vmem:[#allocation2 + $0x188] sm:$0xff] %vm247_vm1, %v237_v41  ;;  %v5228_v54 = vld [vmem:[#allocation2 + $0xe8] sm:$0xff]  ;;  %v5242_v57 = vld [vmem:[#allocation2 + $0xf0] sm:$0xff]  ;;  %v5308_v23 = vsel %vm1158_vm2, %v1174_v10, %v1175_v13  ;;  %v5325_v29 = vsel %vm1158_vm2, %v1175_v13, %v1177_v21  ;;  %v1184_v39 = vrot.slane %v5201_v49, 1 }
  0x40   : > { %4126 = vmatprep.mubr.msk.f32.mxu1 %vm247_vm1, %v5159_v37  ;;  %4323 = vmatprep.mubr.msk.f32.mxu0 %vm247_vm1, %v5159_v37  ;;  %344 = vst.msk [vmem:[#allocation2 + $0x190] sm:$0xff] %vm247_vm1, %v238_v42  ;;  %345 = vst.msk [vmem:[#allocation2 + $0x1a8] sm:$0xff] %vm247_vm1, %v239_v43  ;;  %v5246_v60 = vld [vmem:[#allocation2 + $0x108] sm:$0xff]  ;;  %v5256_v62 = vld [vmem:[#allocation2 + $0x110] sm:$0xff]  ;;  %v5330_v36 = vsel %vm1158_vm2, %v1179_v24, %v1180_v26  ;;  %v1185_v41 = vrot.slane %v5214_v51, 1  ;;  %v1194_v4 = vrot.slane %v5228_v54, 1 }
  0x41   : > { %346 = vst.msk [vmem:[#allocation2 + $0x1b0] sm:$0xff] %vm247_vm1, %v240_v44  ;;  %6352 = vst [vmem:[#allocation8_spill] sm:$0xff] %v5196_v47  ;;  %v5258_v0 = vld [vmem:[#allocation2 + $0x128] sm:$0xff]  ;;  %v5273_v6 = vld [vmem:[#allocation2 + $0x130] sm:$0xff]  ;;  %v1195_v5 = vrot.slane %v5242_v57, 1  ;;  %v475_v13 = vrot.slane %v5077_v11, 7 }
  0x42   : > { %347 = vst.msk [vmem:[#allocation2 + $0x1c8] sm:$0xff] %vm247_vm1, %v241_v45  ;;  %348 = vst.msk [vmem:[#allocation2 + $0x1d0] sm:$0xff] %vm247_vm1, %v242_v46  ;;  %v5278_v9 = vld [vmem:[#allocation2 + $0x148] sm:$0xff]  ;;  %v372_v27 = vld [vmem:[#allocation2 + $0x98] sm:$0xff]  ;;  %v1199_v11 = vrot.slane %v5246_v60, 1  ;;  %v1205_v15 = vrot.slane %v5273_v6, 1 }
  0x43   : > { %4127 = vmatmul.mubr.msk.f32.gmra.mrb[6].mxu1 %vm247_vm1, %v5172_v38  ;;  %4324 = vmatmul.mubr.msk.f32.gmra.mrb[4].mxu0 %vm247_vm1, %v5172_v38  ;;  %6353 = vst [vmem:[#allocation9_spill] sm:$0xff] %v5201_v49  ;;  %349 = vst.msk [vmem:[#allocation2 + $0x1e8] sm:$0xff] %vm247_vm1, %v243_v48  ;;  %v5298_v19 = vld [vmem:[#allocation2 + $0x150] sm:$0xff]  ;;  %v1182_v30 = vrot.slane %v372_v27, 1  ;;  %v376_v42 = vld [vmem:[#allocation2 + $0xb8] sm:$0xff]  ;;  %v5350_v48 = vsel %vm1158_vm2, %v1184_v39, %v1185_v41  ;;  %v5391_v27 = vsel %vm1158_vm2, %v1194_v4, %v1195_v5 }
  0x44   : > { %4129 = vmatprep.mubr.msk.f32.mxu1 %vm247_vm1, %v5175_v40  ;;  %4326 = vmatprep.mubr.msk.f32.mxu0 %vm247_vm1, %v5175_v40  ;;  %350 = vst.msk [vmem:[#allocation2 + $0x1f0] sm:$0xff] %vm247_vm1, %v244_v50  ;;  %6354 = vst [vmem:[#allocation10_spill] sm:$0xff] %v5214_v51  ;;  %v5305_v22 = vld [vmem:[#allocation2 + $0x168] sm:$0xff]  ;;  %v1187_v45 = vrot.slane %v376_v42, 1  ;;  %v1189_v50 = vrot.slane %v5216_v52, 1  ;;  %v384_v8 = vld [vmem:[#allocation2 + $0xf8] sm:$0xff] }
  0x45   : > { %6355 = vst [vmem:[#allocation11_spill] sm:$0xff] %v5216_v52  ;;  %6356 = vst [vmem:[#allocation12_spill] sm:$0xff] %v5226_v53  ;;  %v5345_v44 = vsel %vm1158_vm2, %v1180_v26, %v1182_v30  ;;  %v353_v10 = vld [vmem:[#allocation2] sm:$0xff]  ;;  %v1197_v24 = vrot.slane %v384_v8, 1  ;;  %v1200_v39 = vrot.slane %v5256_v62, 1  ;;  %v1204_v4 = vrot.slane %v5258_v0, 1 }
  0x46   : > { %6357 = vst [vmem:[#allocation13_spill] sm:$0xff] %v5228_v54  ;;  %351 = vst.msk [vmem:[#allocation2 + $0x208] sm:$0xff] %vm247_vm1, %v245_v55  ;;  %v5322_v28 = vld [vmem:[#allocation2 + $0x170] sm:$0xff]  ;;  %v1190_v55 = vrot.slane %v5226_v53, 1  ;;  %v5365_v59 = vsel %vm1158_vm2, %v1185_v41, %v1187_v45  ;;  %v474_v30 = vrot.slane %v353_v10, 7  ;;  %v388_v41 = vld [vmem:[#allocation2 + $0x118] sm:$0xff] }
  0x47   : > { %4130 = vmatmul.mubr.msk.f32.gmra.mrb[8].mxu1 %vm247_vm1, %v5196_v47  ;;  %4327 = vmatmul.mubr.msk.f32.gmra.mrb[6].mxu0 %vm247_vm1, %v5196_v47  ;;  %352 = vst.msk [vmem:[#allocation2 + $0x210] sm:$0xff] %vm247_vm1, %v246_v56  ;;  %6358 = vst [vmem:[#allocation14_spill] sm:$0xff] %v5242_v57  ;;  %v5342_v43 = vld [vmem:[#allocation2 + $0x190] sm:$0xff]  ;;  %v5347_v46 = vld [vmem:[#allocation2 + $0x1a8] sm:$0xff]  ;;  %v477_v45 = vrot.slane %v5079_v12, 7  ;;  %v5413_v10 = vsel %vm1158_vm2, %v1199_v11, %v1200_v39  ;;  %v485_v11 = vrot.slane %v5133_v33, 7 }
  0x48   : > { %4132 = vmatprep.mubr.msk.f32.mxu1 %vm247_vm1, %v5201_v49  ;;  %4329 = vmatprep.mubr.msk.f32.mxu0 %vm247_vm1, %v5201_v49  ;;  %6359 = vst [vmem:[#allocation15_spill] sm:$0xff] %v5246_v60  ;;  %6361 = vst [vmem:[#allocation17_spill] sm:$0xff] %v5342_v43  ;;  %v380_v56 = vld [vmem:[#allocation2 + $0xd8] sm:$0xff]  ;;  %v5362_v58 = vld [vmem:[#allocation2 + $0x1b0] sm:$0xff]  ;;  %v5370_v3 = vsel %vm1158_vm2, %v1189_v50, %v1190_v55  ;;  %v480_v50 = vrot.slane %v5129_v31, 7  ;;  %v476_v8 = vsel %vm473_vm3, %v474_v30, %v475_v13 }
  0x49   : > { %6362 = vst [vmem:[#allocation18_spill] sm:$0xff] %v5347_v46  ;;  %v1192_v61 = vrot.slane %v380_v56, 1  ;;  %v5367_v63 = vld [vmem:[#allocation2 + $0x1c8] sm:$0xff]  ;;  %6364 = vst [vmem:[#allocation20_spill] sm:$0xff] %v5370_v3  ;;  %v5383_v14 = vld [vmem:[#allocation2 + $0x1d0] sm:$0xff]  ;;  %v5408_v56 = vsel %vm1158_vm2, %v1195_v5, %v1197_v24  ;;  %v478_v5 = vsel %vm473_vm3, %v475_v13, %v477_v45  ;;  %v1210_v45 = vrot.slane %v5298_v19, 1 }
  0x4a   : > { %6363 = vst [vmem:[#allocation19_spill] sm:$0xff] %v5367_v63  ;;  %v5388_v26 = vld [vmem:[#allocation2 + $0x1e8] sm:$0xff]  ;;  %6366 = vst [vmem:[#allocation22_spill] sm:$0xff] %v5391_v27  ;;  %v357_v42 = vld [vmem:[#allocation2 + $0x20] sm:$0xff] }
  0x4b   : > { %4133 = vmatmul.mubr.msk.f32.gmra.mrb[10].mxu1 %vm247_vm1, %v5214_v51  ;;  %4330 = vmatmul.mubr.msk.f32.gmra.mrb[8].mxu0 %vm247_vm1, %v5214_v51  ;;  %v5386_v21 = vsel %vm1158_vm2, %v1190_v55, %v1192_v61  ;;  %v5405_v55 = vld [vmem:[#allocation2 + $0x1f0] sm:$0xff]  ;;  %6367 = vst [vmem:[#allocation23_spill] sm:$0xff] %v5408_v56  ;;  %v1202_v61 = vrot.slane %v388_v41, 1  ;;  %v479_v31 = vrot.slane %v357_v42, 7  ;;  %v5434_v42 = vsel %vm1158_vm2, %v1204_v4, %v1205_v15  ;;  %v400_v33 = vld [vmem:[#allocation2 + $0x178] sm:$0xff] }
  0x4c   : > { %4135 = vmatprep.mubr.msk.f32.mxu1 %vm247_vm1, %v5216_v52  ;;  %4332 = vmatprep.mubr.msk.f32.mxu0 %vm247_vm1, %v5216_v52  ;;  %6365 = vst [vmem:[#allocation21_spill] sm:$0xff] %v5386_v21  ;;  %6370 = vst [vmem:[#allocation26_spill] sm:$0xff] %v5434_v42 }
  0x4d   : > { %v5426_v24 = vsel %vm1158_vm2, %v1200_v39, %v1202_v61  ;;  %v5431_v41 = vsel %vm473_vm3, %v479_v31, %v480_v50  ;;  %v487_v39 = vrot.slane %v5154_v35, 7  ;;  %v5447_v61 = vld [vmem:[%s6276_s1 + $0xc] sm:$0xf]  ;;  %v1215_v35 = vrot.slane %v5322_v28, 1 }
  0x4e   : > { %6368 = vst [vmem:[#allocation24_spill] sm:$0xff] %v5426_v24  ;;  %6369 = vst [vmem:[#allocation25_spill] sm:$0xff] %v5431_v41 }
  0x4f   : > { %4136 = vmatmul.mubr.msk.f32.gmra.mrb[12].mxu1 %vm247_vm1, %v5226_v53  ;;  %4333 = vmatmul.mubr.msk.f32.gmra.mrb[10].mxu0 %vm247_vm1, %v5226_v53 }
  0x50   : > { %4138 = vmatprep.mubr.msk.f32.mxu1 %vm247_vm1, %v5228_v54  ;;  %4335 = vmatprep.mubr.msk.f32.mxu0 %vm247_vm1, %v5228_v54 }
  0x53   : > { %4139 = vmatmul.mubr.msk.f32.gmra.mrb[14].mxu1 %vm247_vm1, %v5242_v57  ;;  %4336 = vmatmul.mubr.msk.f32.gmra.mrb[12].mxu0 %vm247_vm1, %v5242_v57 }
  0x54   : > { %4141 = vmatprep.mubr.msk.f32.mxu1 %vm247_vm1, %v5246_v60  ;;  %4338 = vmatprep.mubr.msk.f32.mxu0 %vm247_vm1, %v5246_v60 }
  0x57   : > { %4142 = vmatmul.mubr.msk.f32.gmra.mrb[16].mxu1 %vm247_vm1, %v5256_v62  ;;  %4339 = vmatmul.mubr.msk.f32.gmra.mrb[14].mxu0 %vm247_vm1, %v5256_v62 }
  0x58   : > { %4144 = vmatprep.mubr.msk.f32.mxu1 %vm247_vm1, %v5258_v0  ;;  %4367 = vmatprep.mubr.msk.f32.mxu0 %vm247_vm1, %v5261_v1 }
  0x5b   : > { %4145 = vmatmul.mubr.msk.f32.gmra.mrb[18].mxu1 %vm247_vm1, %v5273_v6  ;;  %4368 = vmatmul.mubr.msk.f32.vlgmr.msra.gmra.mrb[0].mxu0 %vm247_vm1, %v5276_v7 }
  0x5c   : > { %4416 = vmatpush3.msk.msra.mxu0 %vm621_vm0, %v5144_v34  ;;  %4147 = vmatprep.mubr.msk.f32.mxu1 %vm247_vm1, %v5278_v9  ;;  %v5327_v34 = vld [vmem:[#allocation2 + $0x188] sm:$0xff] }
  0x5d   : > { %4370 = vmatprep.mubr.msk.f32.mxu0 %vm247_vm1, %v5283_v16  ;;  %4465 = vmatprep.subr.msk.mxu0 %vm621_vm0, %v5288_v17  ;;  %6360 = vst [vmem:[#allocation16_spill] sm:$0xff] %v5327_v34 }
  0x5f   : > { %4148 = vmatmul.mubr.msk.f32.gmra.mrb[20].mxu1 %vm247_vm1, %v5298_v19  ;;  %4371 = vmatmul.mubr.msk.f32.gmra.mrb[2].mxu0 %vm247_vm1, %v5301_v20 }
  0x60   : > { %4150 = vmatprep.mubr.msk.f32.mxu1 %vm247_vm1, %v5305_v22  ;;  %4373 = vmatprep.mubr.msk.f32.mxu0 %vm247_vm1, %v5308_v23 }
  0x63   : > { %4151 = vmatmul.mubr.msk.f32.gmra.mrb[22].mxu1 %vm247_vm1, %v5322_v28  ;;  %4374 = vmatmul.mubr.msk.f32.gmra.mrb[4].mxu0 %vm247_vm1, %v5325_v29 }
  0x64   : > { %4153 = vmatprep.mubr.msk.f32.mxu1 %vm247_vm1, %v5327_v34  ;;  %4376 = vmatprep.mubr.msk.f32.mxu0 %vm247_vm1, %v5330_v36 }
  0x67   : > { %4154 = vmatmul.mubr.msk.f32.gmra.mrb[24].mxu1 %vm247_vm1, %v5342_v43  ;;  %4377 = vmatmul.mubr.msk.f32.gmra.mrb[6].mxu0 %vm247_vm1, %v5345_v44 }
  0x68   : > { %4156 = vmatprep.mubr.msk.f32.mxu1 %vm247_vm1, %v5347_v46  ;;  %4379 = vmatprep.mubr.msk.f32.mxu0 %vm247_vm1, %v5350_v48 }
  0x6b   : > { %4157 = vmatmul.mubr.msk.f32.gmra.mrb[26].mxu1 %vm247_vm1, %v5362_v58  ;;  %4380 = vmatmul.mubr.msk.f32.gmra.mrb[8].mxu0 %vm247_vm1, %v5365_v59 }
  0x6c   : > { %4159 = vmatprep.mubr.msk.f32.mxu1 %vm247_vm1, %v5367_v63  ;;  %4382 = vmatprep.mubr.msk.f32.mxu0 %vm247_vm1, %v5370_v3  ;;  %v361_v3 = vld [vmem:[#allocation2 + $0x40] sm:$0xff] }
  0x6d   : > { %v484_v13 = vrot.slane %v361_v3, 7 }
  0x6f   : > { %4160 = vmatmul.mubr.msk.f32.gmra.mrb[28].mxu1 %vm247_vm1, %v5383_v14  ;;  %4383 = vmatmul.mubr.msk.f32.gmra.mrb[10].mxu0 %vm247_vm1, %v5386_v21  ;;  %v392_v21 = vld [vmem:[#allocation2 + $0x138] sm:$0xff] }
  0x70   : > { %4162 = vmatprep.mubr.msk.f32.mxu1 %vm247_vm1, %v5388_v26  ;;  %4385 = vmatprep.mubr.msk.f32.mxu0 %vm247_vm1, %v5391_v27  ;;  %v482_v27 = vrot.slane %v5131_v32, 7  ;;  %v1207_v30 = vrot.slane %v392_v21, 1  ;;  %v1209_v32 = vrot.slane %v5278_v9, 1 }
  0x72   : > { %v5441_v21 = vsel %vm473_vm3, %v480_v50, %v482_v27  ;;  %v5454_v3 = vsel %vm1158_vm2, %v1205_v15, %v1207_v30  ;;  %v490_v27 = vrot.slane %v5159_v37, 7  ;;  %v5460_v50 = vsel %vm473_vm3, %v484_v13, %v485_v11  ;;  %v369_v15 = vld [vmem:[#allocation2 + $0x80] sm:$0xff]  ;;  %v404_v37 = vld [vmem:[#allocation2 + $0x198] sm:$0xff] }
  0x73   : > { %4163 = vmatmul.mubr.msk.f32.gmra.mrb[30].mxu1 %vm247_vm1, %v5405_v55  ;;  %4386 = vmatmul.mubr.msk.f32.gmra.mrb[12].mxu0 %vm247_vm1, %v5408_v56  ;;  %v365_v56 = vld [vmem:[#allocation2 + $0x60] sm:$0xff]  ;;  %6371 = vst [vmem:[#allocation27_spill] sm:$0xff] %v5441_v21  ;;  %6372 = vst [vmem:[#allocation28_spill] sm:$0xff] %v5454_v3  ;;  %v1217_v13 = vrot.slane %v400_v33, 1 }
  0x74   : > { %4167 = vmatprep.mubr.msk.f32.mxu1 %vm247_vm1, %v476_v8  ;;  %4388 = vmatprep.mubr.msk.f32.mxu0 %vm247_vm1, %v5413_v10  ;;  %v396_v8 = vld [vmem:[#allocation2 + $0x158] sm:$0xff]  ;;  %v489_v31 = vrot.slane %v365_v56, 7  ;;  %v492_v56 = vrot.slane %v5172_v38, 7  ;;  %v1220_v38 = vrot.slane %v5342_v43, 1 }
  0x75   : > { %v1212_v4 = vrot.slane %v396_v8, 1  ;;  %v494_v8 = vrot.slane %v369_v15, 7  ;;  %v500_v15 = vrot.slane %v5201_v49, 7  ;;  %v412_v49 = vld [vmem:[#allocation2 + $0x1d8] sm:$0xff] }
  0x76   : > { %v5498_v33 = vsel %vm473_vm3, %v490_v27, %v492_v56  ;;  %v1224_v56 = vrot.slane %v5347_v46, 1 }
  0x77   : > { %4168 = vmatmul.mubr.msk.f32.vlgmr.msra.gmra.mrb[0].mxu1 %vm247_vm1, %v478_v5  ;;  %4389 = vmatmul.mubr.msk.f32.gmra.mrb[14].mxu0 %vm247_vm1, %v5426_v24  ;;  %v5463_v5 = vsel %vm1158_vm2, %v1209_v32, %v1210_v45  ;;  %v5482_v30 = vsel %vm1158_vm2, %v1210_v45, %v1212_v4  ;;  %v5485_v32 = vsel %vm473_vm3, %v489_v31, %v490_v27  ;;  %v1222_v4 = vrot.slane %v404_v37, 1  ;;  %v393_v24 = vld [vmem:[#allocation2 + $0x140] sm:$0xff] }
  0x78   : > { %4170 = vmatprep.mubr.msk.f32.mxu1 %vm247_vm1, %v5431_v41  ;;  %4391 = vmatprep.mubr.msk.f32.mxu0 %vm247_vm1, %v5434_v42  ;;  %6373 = vst [vmem:[#allocation29_spill] sm:$0xff] %v5463_v5  ;;  %v1214_v41 = vrot.slane %v5305_v22, 1  ;;  %6374 = vst [vmem:[#allocation30_spill] sm:$0xff] %v5482_v30  ;;  %v5506_v45 = vsel %vm1158_vm2, %v1215_v35, %v1217_v13  ;;  %v389_v42 = vld [vmem:[#allocation2 + $0x120] sm:$0xff] }
  0x79   : > { %4216 = vmatpush3.msk.msra.mxu1 %vm621_vm0, %v5095_v18  ;;  %v5474_v18 = vsel %vm473_vm3, %v485_v11, %v487_v39  ;;  %v495_v11 = vrot.slane %v5175_v40, 7  ;;  %v1219_v39 = vrot.slane %v5327_v34, 1  ;;  %6376 = vst [vmem:[#allocation32_spill] sm:$0xff] %v5506_v45  ;;  %v408_v40 = vld [vmem:[#allocation2 + $0x1b8] sm:$0xff]  ;;  %v5530_v13 = vsel %vm1158_vm2, %v1220_v38, %v1222_v4 }
  0x7a   : > { %4265 = vmatprep.subr.msk.mxu1 %vm621_vm0, %v5447_v61  ;;  %v1227_v37 = vrot.slane %v408_v40, 1  ;;  %6378 = vst [vmem:[#allocation34_spill] sm:$0xff] %v5530_v13  ;;  %v505_v40 = vrot.slane %v5216_v52, 7  ;;  %v5567_v52 = vld [vmem:[#allocation2 + $0x210] sm:$0xff] }
  0x7b   : > { %4171 = vmatmul.mubr.msk.f32.gmra.mrb[2].mxu1 %vm247_vm1, %v5441_v21  ;;  %4392 = vmatmul.mubr.msk.f32.gmra.mrb[16].mxu0 %vm247_vm1, %v5454_v3  ;;  %v5488_v21 = vsel %vm1158_vm2, %v1214_v41, %v1215_v35  ;;  %v373_v3 = vld [vmem:[#allocation2 + $0xa0] sm:$0xff]  ;;  %v497_v41 = vrot.slane %v5196_v47, 7  ;;  %v5513_v27 = vsel %vm1158_vm2, %v1219_v39, %v1220_v38  ;;  %v1225_v47 = vrot.slane %v5362_v58, 1 }
  0x7c   : > { %4173 = vmatprep.mubr.msk.f32.mxu1 %vm247_vm1, %v5460_v50  ;;  %4394 = vmatprep.mubr.msk.f32.mxu0 %vm247_vm1, %v5463_v5  ;;  %6375 = vst [vmem:[#allocation31_spill] sm:$0xff] %v5488_v21  ;;  %v499_v31 = vrot.slane %v373_v3, 7  ;;  %6377 = vst [vmem:[#allocation33_spill] sm:$0xff] %v5513_v27  ;;  %v377_v5 = vld [vmem:[#allocation2 + $0xc0] sm:$0xff]  ;;  %v502_v35 = vrot.slane %v5214_v51, 7 }
  0x7d   : > { %v5527_v3 = vsel %vm473_vm3, %v495_v11, %v497_v41  ;;  %v504_v39 = vrot.slane %v377_v5, 7  ;;  %v5536_v51 = vsel %vm1158_vm2, %v1224_v56, %v1225_v47  ;;  %v5549_v5 = vsel %vm1158_vm2, %v1225_v47, %v1227_v37  ;;  %v385_v37 = vld [vmem:[#allocation2 + $0x100] sm:$0xff] }
  0x7e   : > { %6379 = vst [vmem:[#allocation35_spill] sm:$0xff] %v5536_v51  ;;  %v5546_v38 = vsel %vm473_vm3, %v500_v15, %v502_v35  ;;  %6380 = vst [vmem:[#allocation36_spill] sm:$0xff] %v5549_v5  ;;  %v1232_v41 = vrot.slane %v412_v49, 1  ;;  %v1234_v56 = vrot.slane %v5388_v26, 1  ;;  %v416_v49 = vld [vmem:[#allocation2 + $0x1f8] sm:$0xff] }
  0x7f   : > { %4174 = vmatmul.mubr.msk.f32.gmra.mrb[4].mxu1 %vm247_vm1, %v5474_v18  ;;  %4395 = vmatmul.mubr.msk.f32.gmra.mrb[18].mxu0 %vm247_vm1, %v5482_v30  ;;  %v5510_v30 = vsel %vm473_vm3, %v494_v8, %v495_v11  ;;  %v5533_v8 = vsel %vm473_vm3, %v499_v31, %v500_v15  ;;  %v507_v11 = vrot.slane %v5226_v53, 7  ;;  %v510_v31 = vrot.slane %v5228_v54, 7  ;;  %v5565_v53 = vld [vmem:[#allocation2 + $0x208] sm:$0xff] }
  0x80   : > { %4176 = vmatprep.mubr.msk.f32.mxu1 %vm247_vm1, %v5485_v32  ;;  %4397 = vmatprep.mubr.msk.f32.mxu0 %vm247_vm1, %v5488_v21  ;;  %v381_v21 = vld [vmem:[#allocation2 + $0xe0] sm:$0xff]  ;;  %v1235_v15 = vrot.slane %v5405_v55, 1  ;;  %v5560_v35 = vsel %vm473_vm3, %v504_v39, %v505_v40 }
  0x81   : > { %v509_v4 = vrot.slane %v381_v21, 7  ;;  %v5574_v21 = vsel %vm473_vm3, %v505_v40, %v507_v11  ;;  %v514_v40 = vrot.slane %v385_v37, 7  ;;  %v515_v11 = vrot.slane %v5246_v60, 7 }
  0x82   : > { %v5587_v54 = vsel %vm1158_vm2, %v1234_v56, %v1235_v15 }
  0x83   : > { %4177 = vmatmul.mubr.msk.f32.gmra.mrb[6].mxu1 %vm247_vm1, %v5498_v33  ;;  %4398 = vmatmul.mubr.msk.f32.gmra.mrb[20].mxu0 %vm247_vm1, %v5506_v45  ;;  %v1229_v45 = vrot.slane %v5367_v63, 1  ;;  %v5609_v60 = vsel %vm473_vm3, %v514_v40, %v515_v11  ;;  %v397_v40 = vld [vmem:[#allocation2 + $0x160] sm:$0xff] }
  0x84   : > { %4179 = vmatprep.mubr.msk.f32.mxu1 %vm247_vm1, %v5510_v30  ;;  %4400 = vmatprep.mubr.msk.f32.mxu0 %vm247_vm1, %v5513_v27  ;;  %v1230_v27 = vrot.slane %v5383_v14, 1  ;;  %6383 = vst [vmem:[#allocation39_spill] sm:$0xff] %v5609_v60 }
  0x86   : > { %v5563_v47 = vsel %vm1158_vm2, %v1229_v45, %v1230_v27  ;;  %v5577_v39 = vsel %vm1158_vm2, %v1230_v27, %v1232_v41  ;;  %v5584_v45 = vsel %vm473_vm3, %v509_v4, %v510_v31  ;;  %v2106_v27 = vrot.slane %v5565_v53, 1 }
  0x87   : > { %4180 = vmatmul.mubr.msk.f32.gmra.mrb[8].mxu1 %vm247_vm1, %v5527_v3  ;;  %4401 = vmatmul.mubr.msk.f32.gmra.mrb[22].mxu0 %vm247_vm1, %v5530_v13  ;;  %6381 = vst [vmem:[#allocation37_spill] sm:$0xff] %v5563_v47  ;;  %6382 = vst [vmem:[#allocation38_spill] sm:$0xff] %v5577_v39  ;;  %v2107_v41 = vrot.slane %v5567_v52, 1  ;;  %v420_v13 = vld [vmem:[#allocation2 + $0x218] sm:$0xff] }
  0x88   : > { %4182 = vmatprep.mubr.msk.f32.mxu1 %vm247_vm1, %v5533_v8  ;;  %4403 = vmatprep.mubr.msk.f32.mxu0 %vm247_vm1, %v5536_v51  ;;  %v1237_v51 = vrot.slane %v416_v49, 1  ;;  %v517_v49 = vrot.slane %v5256_v62, 7  ;;  %v2109_v37 = vrot.slane %v420_v13, 1  ;;  %v522_v13 = vrot.slane %v5273_v6, 7 }
  0x8a   : > { %v5605_v56 = vsel %vm1158_vm2, %v1235_v15, %v1237_v51  ;;  %v5624_v51 = vsel %vm473_vm3, %v515_v11, %v517_v49  ;;  %v525_v15 = vrot.slane %v5278_v9, 7  ;;  %v401_v49 = vld [vmem:[#allocation2 + $0x180] sm:$0xff] }
  0x8b   : > { %4183 = vmatmul.mubr.msk.f32.gmra.mrb[10].mxu1 %vm247_vm1, %v5546_v38  ;;  %4404 = vmatmul.mubr.msk.f32.gmra.mrb[24].mxu0 %vm247_vm1, %v5549_v5  ;;  %v512_v5 = vrot.slane %v5242_v57, 7  ;;  %v5612_v57 = vsel %vm1158_vm2, %v2106_v27, %v2107_v41  ;;  %v529_v27 = vrot.slane %v397_v40, 7  ;;  %v534_v40 = vrot.slane %v401_v49, 7 }
  0x8c   : > { %4185 = vmatprep.mubr.msk.f32.mxu1 %vm247_vm1, %v5560_v35  ;;  %4406 = vmatprep.mubr.msk.f32.mxu0 %vm247_vm1, %v5563_v47  ;;  %6384 = vst [vmem:[#allocation40_spill] sm:$0xff] %v5612_v57  ;;  %v520_v47 = vrot.slane %v5258_v0, 7 }
  0x8d   : > { %v5602_v4 = vsel %vm473_vm3, %v510_v31, %v512_v5  ;;  %v524_v31 = vrot.slane %v393_v24, 7  ;;  %v527_v24 = vrot.slane %v5298_v19, 7 }
  0x8e   : > { %v5643_v11 = vsel %vm473_vm3, %v520_v47, %v522_v13  ;;  %v532_v13 = vrot.slane %v5322_v28, 7 }
  0x8f   : > { %4186 = vmatmul.mubr.msk.f32.gmra.mrb[12].mxu1 %vm247_vm1, %v5574_v21  ;;  %4407 = vmatmul.mubr.msk.f32.gmra.mrb[26].mxu0 %vm247_vm1, %v5577_v39  ;;  %v519_v39 = vrot.slane %v389_v42, 7  ;;  %v5627_v42 = vsel %vm1158_vm2, %v2107_v41, %v2109_v37  ;;  %v530_v41 = vrot.slane %v5305_v22, 7  ;;  %v5653_v37 = vld [vmem:[%s6276_s1 + $0x20] sm:$0xf] }
  0x90   : > { %4188 = vmatprep.mubr.msk.f32.mxu1 %vm247_vm1, %v5584_v45  ;;  %4409 = vmatprep.mubr.msk.f32.mxu0 %vm247_vm1, %v5587_v54  ;;  %6385 = vst [vmem:[#allocation41_spill] sm:$0xff] %v5627_v42 }
  0x91   : > { %v5631_v5 = vsel %vm473_vm3, %v519_v39, %v520_v47  ;;  %v5647_v39 = vsel %vm473_vm3, %v524_v31, %v525_v15  ;;  %v5664_v47 = vsel %vm473_vm3, %v525_v15, %v527_v24  ;;  %v5670_v31 = vsel %vm473_vm3, %v529_v27, %v530_v41 }
  0x92   : > { %v5684_v15 = vsel %vm473_vm3, %v530_v41, %v532_v13  ;;  %v537_v24 = vrot.slane %v5342_v43, 7  ;;  %v542_v13 = vrot.slane %v5362_v58, 7  ;;  %v413_v43 = vld [vmem:[#allocation2 + $0x1e0] sm:$0xff] }
  0x93   : > { %4189 = vmatmul.mubr.msk.f32.gmra.mrb[14].mxu1 %vm247_vm1, %v5602_v4  ;;  %4410 = vmatmul.mubr.msk.f32.gmra.mrb[28].mxu0 %vm247_vm1, %v5605_v56 }
  0x94   : > { %4191 = vmatprep.mubr.msk.f32.mxu1 %vm247_vm1, %v5609_v60  ;;  %4412 = vmatprep.mubr.msk.f32.mxu0 %vm247_vm1, %v5612_v57  ;;  %v540_v57 = vrot.slane %v5347_v46, 7  ;;  %v545_v46 = vrot.slane %v5367_v63, 7  ;;  %v550_v63 = vrot.slane %v5388_v26, 7 }
  0x97   : > { %4192 = vmatmul.mubr.msk.f32.gmra.mrb[16].mxu1 %vm247_vm1, %v5624_v51  ;;  %4413 = vmatmul.mubr.msk.f32.gmra.mrb[30].mxu0 %vm247_vm1, %v5627_v42  ;;  %v535_v42 = vrot.slane %v5327_v34, 7  ;;  %v409_v34 = vld [vmem:[#allocation2 + $0x1c0] sm:$0xff] }
  0x98   : > { %4194 = vmatprep.mubr.msk.f32.mxu1 %vm247_vm1, %v5631_v5  ;;  %4417 = vmatprep.mubr.msk.f32.mxu0 %vm247_vm1, %v5460_v50 }
  0x99   : > { %v5688_v27 = vsel %vm473_vm3, %v534_v40, %v535_v42  ;;  %v5700_v41 = vsel %vm473_vm3, %v535_v42, %v537_v24  ;;  %v5716_v42 = vsel %vm473_vm3, %v540_v57, %v542_v13  ;;  %v552_v13 = vrot.slane %v5405_v55, 7 }
  0x9b   : > { %4195 = vmatmul.mubr.msk.f32.gmra.mrb[18].mxu1 %vm247_vm1, %v5643_v11  ;;  %4418 = vmatmul.mubr.msk.f32.vlgmr.msra.gmra.mrb[0].mxu0 %vm247_vm1, %v5474_v18 }
  0x9c   : > { %4466 = vmatpush3.msk.msra.mxu0 %vm621_vm0, %v5288_v17  ;;  %4197 = vmatprep.mubr.msk.f32.mxu1 %vm247_vm1, %v5647_v39  ;;  %v405_v17 = vld [vmem:[#allocation2 + $0x1a0] sm:$0xff] }
  0x9d   : > { %4420 = vmatprep.mubr.msk.f32.mxu0 %vm247_vm1, %v5485_v32  ;;  %4515 = vmatprep.subr.msk.mxu0 %vm621_vm0, %v5653_v37  ;;  %v539_v49 = vrot.slane %v405_v17, 7  ;;  %v544_v17 = vrot.slane %v409_v34, 7  ;;  %v547_v34 = vrot.slane %v5383_v14, 7 }
  0x9f   : > { %4198 = vmatmul.mubr.msk.f32.gmra.mrb[20].mxu1 %vm247_vm1, %v5664_v47  ;;  %4421 = vmatmul.mubr.msk.f32.gmra.mrb[2].mxu0 %vm247_vm1, %v5498_v33  ;;  %v5704_v40 = vsel %vm473_vm3, %v539_v49, %v540_v57  ;;  %v5720_v24 = vsel %vm473_vm3, %v544_v17, %v545_v46  ;;  %v549_v49 = vrot.slane %v413_v43, 7  ;;  %v5732_v57 = vsel %vm473_vm3, %v545_v46, %v547_v34  ;;  %v356_v17 = vld [vmem:[#allocation2 + $0x18] sm:$0xff] }
  0xa0   : > { %4200 = vmatprep.mubr.msk.f32.mxu1 %vm247_vm1, %v5670_v31  ;;  %4423 = vmatprep.mubr.msk.f32.mxu0 %vm247_vm1, %v5510_v30  ;;  %6386 = vst [vmem:[#allocation42_spill] sm:$0xff] %v5732_v57  ;;  %v5747_v46 = vsel %vm473_vm3, %v550_v63, %v552_v13  ;;  %v1162_v34 = vrot.slane %v356_v17, 1 }
  0xa1   : > { %v5736_v43 = vsel %vm473_vm3, %v549_v49, %v550_v63  ;;  %6388 = vst [vmem:[#allocation44_spill] sm:$0xff] %v5747_v46  ;;  %v6389_v49 = vrot.slane %v5079_v12, 1  ;;  %v1571_v63 = vrot.slane %v5567_v52, 7 }
  0xa2   : > { %6387 = vst [vmem:[#allocation43_spill] sm:$0xff] %v5736_v43 }
  0xa3   : > { %4201 = vmatmul.mubr.msk.f32.gmra.mrb[22].mxu1 %vm247_vm1, %v5684_v15  ;;  %4424 = vmatmul.mubr.msk.f32.gmra.mrb[4].mxu0 %vm247_vm1, %v5527_v3 }
  0xa4   : > { %4203 = vmatprep.mubr.msk.f32.mxu1 %vm247_vm1, %v5688_v27  ;;  %4426 = vmatprep.mubr.msk.f32.mxu0 %vm247_vm1, %v5533_v8 }
  0xa7   : > { %4204 = vmatmul.mubr.msk.f32.gmra.mrb[24].mxu1 %vm247_vm1, %v5700_v41  ;;  %4427 = vmatmul.mubr.msk.f32.gmra.mrb[6].mxu0 %vm247_vm1, %v5546_v38 }
  0xa8   : > { %4206 = vmatprep.mubr.msk.f32.mxu1 %vm247_vm1, %v5704_v40  ;;  %4429 = vmatprep.mubr.msk.f32.mxu0 %vm247_vm1, %v5560_v35 }
  0xab   : > { %4207 = vmatmul.mubr.msk.f32.gmra.mrb[26].mxu1 %vm247_vm1, %v5716_v42  ;;  %4430 = vmatmul.mubr.msk.f32.gmra.mrb[8].mxu0 %vm247_vm1, %v5574_v21 }
  0xac   : > { %4209 = vmatprep.mubr.msk.f32.mxu1 %vm247_vm1, %v5720_v24  ;;  %4432 = vmatprep.mubr.msk.f32.mxu0 %vm247_vm1, %v5584_v45 }
  0xaf   : > { %4210 = vmatmul.mubr.msk.f32.gmra.mrb[28].mxu1 %vm247_vm1, %v5732_v57  ;;  %4433 = vmatmul.mubr.msk.f32.gmra.mrb[10].mxu0 %vm247_vm1, %v5602_v4 }
  0xb0   : > { %4212 = vmatprep.mubr.msk.f32.mxu1 %vm247_vm1, %v5736_v43  ;;  %4435 = vmatprep.mubr.msk.f32.mxu0 %vm247_vm1, %v5609_v60  ;;  %v1163_v60 = vsel %vm1158_vm2, %v6389_v49, %v1162_v34  ;;  %v5819_v34 = vld [vmem:[#allocation2 + $0x230] sm:$0xff] }
  0xb1   : > { %v6392_v49 = vld [vmem:[#allocation21_spill] sm:$0xff] }
  0xb3   : > { %4213 = vmatmul.mubr.msk.f32.gmra.mrb[30].mxu1 %vm247_vm1, %v5747_v46  ;;  %4436 = vmatmul.mubr.msk.f32.gmra.mrb[12].mxu0 %vm247_vm1, %v5624_v51 }
  0xb4   : > { %4217 = vmatprep.mubr.msk.f32.mxu1 %vm247_vm1, %v5114_v25  ;;  %4438 = vmatprep.mubr.msk.f32.mxu0 %vm247_vm1, %v5631_v5  ;;  %v1569_v25 = vrot.slane %v5565_v53, 7 }
  0xb7   : > { %4218 = vmatmul.mubr.msk.f32.vlgmr.msra.gmra.mrb[0].mxu1 %vm247_vm1, %v1163_v60  ;;  %4439 = vmatmul.mubr.msk.f32.gmra.mrb[14].mxu0 %vm247_vm1, %v5643_v11  ;;  %v421_v60 = vld [vmem:[#allocation2 + $0x220] sm:$0xff] }
  0xb8   : > { %4220 = vmatprep.mubr.msk.f32.mxu1 %vm247_vm1, %v5261_v1  ;;  %4441 = vmatprep.mubr.msk.f32.mxu0 %vm247_vm1, %v5647_v39  ;;  %v5804_v1 = vld [vmem:[#allocation2 + $0x228] sm:$0xff]  ;;  %v2380_v13 = vrot.slane %v421_v60, 7  ;;  %v2383_v60 = vrot.slane %v5819_v34, 7 }
  0xb9   : > { %4266 = vmatpush3.msk.msra.mxu1 %vm621_vm0, %v5447_v61  ;;  %v2381_v17 = vrot.slane %v5804_v1, 7 }
  0xba   : > { %4565 = vmatprep.subr.msk.mxu1 %vm621_vm0, %v5035_v2  ;;  %v417_v2 = vld [vmem:[#allocation2 + $0x200] sm:$0xff] }
  0xbb   : > { %4221 = vmatmul.mubr.msk.f32.gmra.mrb[2].mxu1 %vm247_vm1, %v5276_v7  ;;  %4442 = vmatmul.mubr.msk.f32.gmra.mrb[16].mxu0 %vm247_vm1, %v5664_v47  ;;  %v1568_v12 = vrot.slane %v417_v2, 7  ;;  %v6390_v7 = vld [vmem:[#allocation20_spill] sm:$0xff]  ;;  %v6393_v2 = vld [vmem:[#allocation22_spill] sm:$0xff] }
  0xbc   : > { %4223 = vmatprep.mubr.msk.f32.mxu1 %vm247_vm1, %v5283_v16  ;;  %4444 = vmatprep.mubr.msk.f32.mxu0 %vm247_vm1, %v5670_v31 }
  0xbd   : > { %v5816_v61 = vsel %vm473_vm3, %v1568_v12, %v1569_v25  ;;  %v5830_v12 = vsel %vm473_vm3, %v1569_v25, %v1571_v63  ;;  %v6397_v25 = vld [vmem:[#allocation26_spill] sm:$0xff]  ;;  %v6398_v63 = vld [vmem:[#allocation3_spill] sm:$0xff] }
  0xbe   : > { %6391 = vst [vmem:[#allocation20_spill] sm:$0xff] %v5816_v61  ;;  %6394 = vst [vmem:[#allocation21_spill] sm:$0xff] %v5830_v12 }
  0xbf   : > { %4224 = vmatmul.mubr.msk.f32.gmra.mrb[4].mxu1 %vm247_vm1, %v5301_v20  ;;  %4445 = vmatmul.mubr.msk.f32.gmra.mrb[18].mxu0 %vm247_vm1, %v5684_v15 }
  0xc0   : > { %4226 = vmatprep.mubr.msk.f32.mxu1 %vm247_vm1, %v5308_v23  ;;  %4447 = vmatprep.mubr.msk.f32.mxu0 %vm247_vm1, %v5688_v27 }
  0xc3   : > { %4227 = vmatmul.mubr.msk.f32.gmra.mrb[6].mxu1 %vm247_vm1, %v5325_v29  ;;  %4448 = vmatmul.mubr.msk.f32.gmra.mrb[20].mxu0 %vm247_vm1, %v5700_v41 }
  0xc4   : > { %4229 = vmatprep.mubr.msk.f32.mxu1 %vm247_vm1, %v5330_v36  ;;  %4450 = vmatprep.mubr.msk.f32.mxu0 %vm247_vm1, %v5704_v40 }
  0xc7   : > { %4230 = vmatmul.mubr.msk.f32.gmra.mrb[8].mxu1 %vm247_vm1, %v5345_v44  ;;  %4451 = vmatmul.mubr.msk.f32.gmra.mrb[22].mxu0 %vm247_vm1, %v5716_v42 }
  0xc8   : > { %4232 = vmatprep.mubr.msk.f32.mxu1 %vm247_vm1, %v5350_v48  ;;  %4453 = vmatprep.mubr.msk.f32.mxu0 %vm247_vm1, %v5720_v24 }
  0xcb   : > { %4233 = vmatmul.mubr.msk.f32.gmra.mrb[10].mxu1 %vm247_vm1, %v5365_v59  ;;  %4454 = vmatmul.mubr.msk.f32.gmra.mrb[24].mxu0 %vm247_vm1, %v5732_v57  ;;  %v6395_v57 = vld [vmem:[#allocation23_spill] sm:$0xff] }
  0xcc   : > { %4235 = vmatprep.mubr.msk.f32.mxu1 %vm247_vm1, %v6390_v7  ;;  %4456 = vmatprep.mubr.msk.f32.mxu0 %vm247_vm1, %v5736_v43  ;;  %v2382_v43 = vsel %vm473_vm3, %v2380_v13, %v2381_v17  ;;  %v6399_v13 = vld [vmem:[#allocation28_spill] sm:$0xff] }
  0xcf   : > { %4236 = vmatmul.mubr.msk.f32.gmra.mrb[12].mxu1 %vm247_vm1, %v6392_v49  ;;  %4457 = vmatmul.mubr.msk.f32.gmra.mrb[26].mxu0 %vm247_vm1, %v5747_v46  ;;  %v6396_v46 = vld [vmem:[#allocation24_spill] sm:$0xff] }
  0xd0   : > { %4238 = vmatprep.mubr.msk.f32.mxu1 %vm247_vm1, %v6393_v2  ;;  %4459 = vmatprep.mubr.msk.f32.mxu0 %vm247_vm1, %v5816_v61  ;;  %v2384_v61 = vsel %vm473_vm3, %v2381_v17, %v2383_v60  ;;  %v6402_v17 = vld [vmem:[#allocation5_spill] sm:$0xff]  ;;  %v6404_v60 = vld [vmem:[#allocation6_spill] sm:$0xff] }
  0xd3   : > { %4239 = vmatmul.mubr.msk.f32.gmra.mrb[14].mxu1 %vm247_vm1, %v6395_v57  ;;  %4460 = vmatmul.mubr.msk.f32.gmra.mrb[28].mxu0 %vm247_vm1, %v5830_v12  ;;  %v6400_v12 = vld [vmem:[#allocation4_spill] sm:$0xff] }
  0xd4   : > { %4241 = vmatprep.mubr.msk.f32.mxu1 %vm247_vm1, %v5413_v10  ;;  %4462 = vmatprep.mubr.msk.f32.mxu0 %vm247_vm1, %v2382_v43  ;;  %v6401_v43 = vld [vmem:[#allocation29_spill] sm:$0xff] }
  0xd7   : > { %4242 = vmatmul.mubr.msk.f32.gmra.mrb[16].mxu1 %vm247_vm1, %v6396_v46  ;;  %4463 = vmatmul.mubr.msk.f32.gmra.mrb[30].mxu0 %vm247_vm1, %v2384_v61  ;;  %v6403_v61 = vld [vmem:[#allocation30_spill] sm:$0xff] }
  0xd8   : > { %4244 = vmatprep.mubr.msk.f32.mxu1 %vm247_vm1, %v6397_v25  ;;  %4467 = vmatprep.mubr.msk.f32.mxu0 %vm247_vm1, %v6398_v63  ;;  %v6405_v63 = vld [vmem:[#allocation31_spill] sm:$0xff] }
  0xdb   : > { %4245 = vmatmul.mubr.msk.f32.gmra.mrb[18].mxu1 %vm247_vm1, %v6399_v13  ;;  %4468 = vmatmul.mubr.msk.f32.vlgmr.msra.gmra.mrb[0].mxu0 %vm247_vm1, %v6400_v12  ;;  %v6406_v13 = vld [vmem:[#allocation7_spill] sm:$0xff]  ;;  %v6407_v12 = vld [vmem:[#allocation32_spill] sm:$0xff] }
  0xdc   : > { %4516 = vmatpush3.msk.msra.mxu0 %vm621_vm0, %v5653_v37  ;;  %4247 = vmatprep.mubr.msk.f32.mxu1 %vm247_vm1, %v6401_v43  ;;  %v6408_v37 = vld [vmem:[#allocation8_spill] sm:$0xff]  ;;  %v6409_v43 = vld [vmem:[#allocation33_spill] sm:$0xff] }
  0xdd   : > { %4470 = vmatprep.mubr.msk.f32.mxu0 %vm247_vm1, %v6402_v17  ;;  %v6410_v17 = vld [vmem:[#allocation9_spill] sm:$0xff] }
  0xdf   : > { %4248 = vmatmul.mubr.msk.f32.gmra.mrb[20].mxu1 %vm247_vm1, %v6403_v61  ;;  %4471 = vmatmul.mubr.msk.f32.gmra.mrb[2].mxu0 %vm247_vm1, %v6404_v60  ;;  %v6411_v61 = vld [vmem:[#allocation34_spill] sm:$0xff] }
  0xe0   : > { %4250 = vmatprep.mubr.msk.f32.mxu1 %vm247_vm1, %v6405_v63  ;;  %4473 = vmatprep.mubr.msk.f32.mxu0 %vm247_vm1, %v6406_v13  ;;  %v6412_v60 = vld [vmem:[#allocation10_spill] sm:$0xff]  ;;  %v6413_v63 = vld [vmem:[#allocation35_spill] sm:$0xff] }
  0xe1   : > { %v6414_v13 = vld [vmem:[#allocation11_spill] sm:$0xff] }
  0xe3   : > { %4251 = vmatmul.mubr.msk.f32.gmra.mrb[22].mxu1 %vm247_vm1, %v6407_v12  ;;  %4474 = vmatmul.mubr.msk.f32.gmra.mrb[4].mxu0 %vm247_vm1, %v6408_v37  ;;  %v6415_v12 = vld [vmem:[#allocation36_spill] sm:$0xff] }
  0xe4   : > { %4253 = vmatprep.mubr.msk.f32.mxu1 %vm247_vm1, %v6409_v43  ;;  %4476 = vmatprep.mubr.msk.f32.mxu0 %vm247_vm1, %v6410_v17  ;;  %v6416_v37 = vld [vmem:[#allocation12_spill] sm:$0xff]  ;;  %v6417_v43 = vld [vmem:[#allocation37_spill] sm:$0xff] }
  0xe5   : > { %v6418_v17 = vld [vmem:[#allocation13_spill] sm:$0xff] }
  0xe7   : > { %4254 = vmatmul.mubr.msk.f32.gmra.mrb[24].mxu1 %vm247_vm1, %v6411_v61  ;;  %4477 = vmatmul.mubr.msk.f32.gmra.mrb[6].mxu0 %vm247_vm1, %v6412_v60  ;;  %v6419_v61 = vld [vmem:[#allocation38_spill] sm:$0xff] }
  0xe8   : > { %4256 = vmatprep.mubr.msk.f32.mxu1 %vm247_vm1, %v6413_v63  ;;  %4479 = vmatprep.mubr.msk.f32.mxu0 %vm247_vm1, %v6414_v13  ;;  %v6420_v60 = vld [vmem:[#allocation14_spill] sm:$0xff]  ;;  %v6421_v13 = vld [vmem:[#allocation15_spill] sm:$0xff] }
  0xeb   : > { %4257 = vmatmul.mubr.msk.f32.gmra.mrb[26].mxu1 %vm247_vm1, %v6415_v12  ;;  %4480 = vmatmul.mubr.msk.f32.gmra.mrb[8].mxu0 %vm247_vm1, %v6416_v37  ;;  %v6422_v37 = vld [vmem:[#allocation25_spill] sm:$0xff] }
  0xec   : > { %4259 = vmatprep.mubr.msk.f32.mxu1 %vm247_vm1, %v6417_v43  ;;  %4482 = vmatprep.mubr.msk.f32.mxu0 %vm247_vm1, %v6418_v17  ;;  %v6423_v17 = vld [vmem:[#allocation27_spill] sm:$0xff] }
  0xef   : > { %4260 = vmatmul.mubr.msk.f32.gmra.mrb[28].mxu1 %vm247_vm1, %v6419_v61  ;;  %4483 = vmatmul.mubr.msk.f32.gmra.mrb[10].mxu0 %vm247_vm1, %v6420_v60 }
  0xf0   : > { %4262 = vmatprep.mubr.msk.f32.mxu1 %vm247_vm1, %v5587_v54  ;;  %4485 = vmatprep.mubr.msk.f32.mxu0 %vm247_vm1, %v6421_v13 }
  0xf3   : > { %4263 = vmatmul.mubr.msk.f32.gmra.mrb[30].mxu1 %vm247_vm1, %v5605_v56  ;;  %4486 = vmatmul.mubr.msk.f32.gmra.mrb[12].mxu0 %vm247_vm1, %v5256_v62  ;;  %v4832_v62 = vld [vmem:[%s6276_s1 + $0x10] sm:$0xf] }
  0xf4   : > { %4267 = vmatprep.mubr.msk.f32.mxu1 %vm247_vm1, %v6422_v37  ;;  %4488 = vmatprep.mubr.msk.f32.mxu0 %vm247_vm1, %v5258_v0 }
  0xf7   : > { %4268 = vmatmul.mubr.msk.f32.vlgmr.msra.gmra.mrb[0].mxu1 %vm247_vm1, %v6423_v17  ;;  %4489 = vmatmul.mubr.msk.f32.gmra.mrb[14].mxu0 %vm247_vm1, %v5273_v6 }
  0xf8   : > { %4270 = vmatprep.mubr.msk.f32.mxu1 %vm247_vm1, %v5460_v50  ;;  %4491 = vmatprep.mubr.msk.f32.mxu0 %vm247_vm1, %v5278_v9  ;;  %v6424_v50 = vld [vmem:[#allocation16_spill] sm:$0xff] }
  0xf9   : > { %4566 = vmatpush3.msk.msra.mxu1 %vm621_vm0, %v4832_v62 }
  0xfb   : > { %4271 = vmatmul.mubr.msk.f32.gmra.mrb[2].mxu1 %vm247_vm1, %v5474_v18  ;;  %4492 = vmatmul.mubr.msk.f32.gmra.mrb[16].mxu0 %vm247_vm1, %v5298_v19  ;;  %v6425_v18 = vld [vmem:[#allocation17_spill] sm:$0xff] }
  0xfc   : > { %4273 = vmatprep.mubr.msk.f32.mxu1 %vm247_vm1, %v5485_v32  ;;  %4494 = vmatprep.mubr.msk.f32.mxu0 %vm247_vm1, %v5305_v22  ;;  %v6426_v32 = vld [vmem:[#allocation18_spill] sm:$0xff] }
  0xff   : > { %4274 = vmatmul.mubr.msk.f32.gmra.mrb[4].mxu1 %vm247_vm1, %v5498_v33  ;;  %4495 = vmatmul.mubr.msk.f32.gmra.mrb[18].mxu0 %vm247_vm1, %v5322_v28  ;;  %v6428_v33 = vld [vmem:[#allocation39_spill] sm:$0xff] }
 0x100   : > { %4276 = vmatprep.mubr.msk.f32.mxu1 %vm247_vm1, %v5510_v30  ;;  %4497 = vmatprep.mubr.msk.f32.mxu0 %vm247_vm1, %v6424_v50  ;;  %v6427_v30 = vld [vmem:[#allocation19_spill] sm:$0xff] }
 0x103   : > { %4277 = vmatmul.mubr.msk.f32.gmra.mrb[6].mxu1 %vm247_vm1, %v5527_v3  ;;  %4498 = vmatmul.mubr.msk.f32.gmra.mrb[20].mxu0 %vm247_vm1, %v6425_v18 }
 0x104   : > { %4279 = vmatprep.mubr.msk.f32.mxu1 %vm247_vm1, %v5533_v8  ;;  %4500 = vmatprep.mubr.msk.f32.mxu0 %vm247_vm1, %v6426_v32 }
 0x107   : > { %4280 = vmatmul.mubr.msk.f32.gmra.mrb[8].mxu1 %vm247_vm1, %v5546_v38  ;;  %4501 = vmatmul.mubr.msk.f32.gmra.mrb[22].mxu0 %vm247_vm1, %v5362_v58 }
 0x108   : > { %4282 = vmatprep.mubr.msk.f32.mxu1 %vm247_vm1, %v5560_v35  ;;  %4503 = vmatprep.mubr.msk.f32.mxu0 %vm247_vm1, %v6427_v30 }
 0x10b   : > { %4283 = vmatmul.mubr.msk.f32.gmra.mrb[10].mxu1 %vm247_vm1, %v5574_v21  ;;  %4504 = vmatmul.mubr.msk.f32.gmra.mrb[24].mxu0 %vm247_vm1, %v5383_v14 }
 0x10c   : > { %4285 = vmatprep.mubr.msk.f32.mxu1 %vm247_vm1, %v5584_v45  ;;  %4506 = vmatprep.mubr.msk.f32.mxu0 %vm247_vm1, %v5388_v26 }
 0x10f   : > { %4286 = vmatmul.mubr.msk.f32.gmra.mrb[12].mxu1 %vm247_vm1, %v5602_v4  ;;  %4507 = vmatmul.mubr.msk.f32.gmra.mrb[26].mxu0 %vm247_vm1, %v5405_v55 }
 0x110   : > { %4288 = vmatprep.mubr.msk.f32.mxu1 %vm247_vm1, %v6428_v33  ;;  %4509 = vmatprep.mubr.msk.f32.mxu0 %vm247_vm1, %v5565_v53 }
 0x113   : > { %4289 = vmatmul.mubr.msk.f32.gmra.mrb[14].mxu1 %vm247_vm1, %v5624_v51  ;;  %4510 = vmatmul.mubr.msk.f32.gmra.mrb[28].mxu0 %vm247_vm1, %v5567_v52 }
 0x114   : > { %4291 = vmatprep.mubr.msk.f32.mxu1 %vm247_vm1, %v5631_v5  ;;  %4512 = vmatprep.mubr.msk.f32.mxu0 %vm247_vm1, %v5804_v1 }
 0x117   : > { %4292 = vmatmul.mubr.msk.f32.gmra.mrb[16].mxu1 %vm247_vm1, %v5643_v11  ;;  %4513 = vmatmul.mubr.msk.f32.gmra.mrb[30].mxu0 %vm247_vm1, %v5819_v34 }
 0x118   : > { %4294 = vmatprep.mubr.msk.f32.mxu1 %vm247_vm1, %v5647_v39  ;;  %4517 = vmatprep.mubr.msk.f32.mxu0 %vm247_vm1, %v5283_v16  ;;  %v6429_v16 = vld [vmem:[#allocation42_spill] sm:$0xff] }
 0x11b   : > { %4295 = vmatmul.mubr.msk.f32.gmra.mrb[18].mxu1 %vm247_vm1, %v5664_v47  ;;  %4518 = vmatmul.mubr.msk.f32.vlgmr.msra.gmra.mrb[0].mxu0 %vm247_vm1, %v5301_v20  ;;  %v6430_v20 = vld [vmem:[#allocation43_spill] sm:$0xff] }
 0x11c   : > { %4297 = vmatprep.mubr.msk.f32.mxu1 %vm247_vm1, %v5670_v31  ;;  %4520 = vmatprep.mubr.msk.f32.mxu0 %vm247_vm1, %v5308_v23  ;;  %v6431_v23 = vld [vmem:[#allocation44_spill] sm:$0xff] }
 0x11f   : > { %4298 = vmatmul.mubr.msk.f32.gmra.mrb[20].mxu1 %vm247_vm1, %v5684_v15  ;;  %4521 = vmatmul.mubr.msk.f32.gmra.mrb[2].mxu0 %vm247_vm1, %v5325_v29  ;;  %v6432_v29 = vld [vmem:[#allocation20_spill] sm:$0xff] }
 0x120   : > { %4300 = vmatprep.mubr.msk.f32.mxu1 %vm247_vm1, %v5688_v27  ;;  %4523 = vmatprep.mubr.msk.f32.mxu0 %vm247_vm1, %v5330_v36  ;;  %v6433_v36 = vld [vmem:[#allocation21_spill] sm:$0xff] }
 0x123   : > { %4301 = vmatmul.mubr.msk.f32.gmra.mrb[22].mxu1 %vm247_vm1, %v5700_v41  ;;  %4524 = vmatmul.mubr.msk.f32.gmra.mrb[4].mxu0 %vm247_vm1, %v5345_v44  ;;  %v6434_v44 = vld [vmem:[#allocation28_spill] sm:$0xff] }
 0x124   : > { %4303 = vmatprep.mubr.msk.f32.mxu1 %vm247_vm1, %v5704_v40  ;;  %4526 = vmatprep.mubr.msk.f32.mxu0 %vm247_vm1, %v5350_v48  ;;  %v6435_v48 = vld [vmem:[#allocation29_spill] sm:$0xff] }
 0x127   : > { %4304 = vmatmul.mubr.msk.f32.gmra.mrb[24].mxu1 %vm247_vm1, %v5716_v42  ;;  %4527 = vmatmul.mubr.msk.f32.gmra.mrb[6].mxu0 %vm247_vm1, %v5365_v59  ;;  %v6436_v59 = vld [vmem:[#allocation30_spill] sm:$0xff] }
 0x128   : > { %4306 = vmatprep.mubr.msk.f32.mxu1 %vm247_vm1, %v5720_v24  ;;  %4529 = vmatprep.mubr.msk.f32.mxu0 %vm247_vm1, %v6390_v7 }
 0x12b   : > { %4307 = vmatmul.mubr.msk.f32.gmra.mrb[26].mxu1 %vm247_vm1, %v6429_v16  ;;  %4530 = vmatmul.mubr.msk.f32.gmra.mrb[8].mxu0 %vm247_vm1, %v6392_v49 }
 0x12c   : > { %4309 = vmatprep.mubr.msk.f32.mxu1 %vm247_vm1, %v6430_v20  ;;  %4532 = vmatprep.mubr.msk.f32.mxu0 %vm247_vm1, %v6393_v2 }
 0x12f   : > { %4310 = vmatmul.mubr.msk.f32.gmra.mrb[28].mxu1 %vm247_vm1, %v6431_v23  ;;  %4533 = vmatmul.mubr.msk.f32.gmra.mrb[10].mxu0 %vm247_vm1, %v6395_v57 }
 0x130   : > { %4312 = vmatprep.mubr.msk.f32.mxu1 %vm247_vm1, %v6432_v29  ;;  %4535 = vmatprep.mubr.msk.f32.mxu0 %vm247_vm1, %v5413_v10  ;;  %v6442_v10 = vld [vmem:[#allocation41_spill] sm:$0xff] }
 0x133   : > { %4313 = vmatmul.mubr.msk.f32.gmra.mrb[30].mxu1 %vm247_vm1, %v6433_v36  ;;  %4536 = vmatmul.mubr.msk.f32.gmra.mrb[12].mxu0 %vm247_vm1, %v6396_v46 }
 0x134   : > { %4341 = vmatprep.mubr.msk.f32.mxu1 %vm247_vm1, %v5258_v0  ;;  %4538 = vmatprep.mubr.msk.f32.mxu0 %vm247_vm1, %v6397_v25  ;;  %v6437_v0 = vld [vmem:[#allocation31_spill] sm:$0xff] }
 0x137   : > { %4342 = vmatmul.mubr.msk.f32.vlgmr.msra.gmra.mrb[16].mxu1 %vm247_vm1, %v5273_v6  ;;  %4539 = vmatmul.mubr.msk.f32.gmra.mrb[14].mxu0 %vm247_vm1, %v6434_v44  ;;  %v6438_v6 = vld [vmem:[#allocation32_spill] sm:$0xff] }
 0x138   : > { %4344 = vmatprep.mubr.msk.f32.mxu1 %vm247_vm1, %v5278_v9  ;;  %4541 = vmatprep.mubr.msk.f32.mxu0 %vm247_vm1, %v6435_v48  ;;  %v6439_v9 = vld [vmem:[#allocation33_spill] sm:$0xff] }
 0x13b   : > { %4345 = vmatmul.mubr.msk.f32.gmra.mrb[18].mxu1 %vm247_vm1, %v5298_v19  ;;  %4542 = vmatmul.mubr.msk.f32.gmra.mrb[16].mxu0 %vm247_vm1, %v6436_v59  ;;  %v6440_v19 = vld [vmem:[#allocation34_spill] sm:$0xff] }
 0x13c   : > { %4347 = vmatprep.mubr.msk.f32.mxu1 %vm247_vm1, %v5305_v22  ;;  %4544 = vmatprep.mubr.msk.f32.mxu0 %vm247_vm1, %v6437_v0  ;;  %v2918_v22 = vrot.slane %v5804_v1, 1 }
 0x13f   : > { %4348 = vmatmul.mubr.msk.f32.gmra.mrb[20].mxu1 %vm247_vm1, %v5322_v28  ;;  %4545 = vmatmul.mubr.msk.f32.gmra.mrb[18].mxu0 %vm247_vm1, %v6438_v6  ;;  %v2919_v28 = vrot.slane %v5819_v34, 1 }
 0x140   : > { %4350 = vmatprep.mubr.msk.f32.mxu1 %vm247_vm1, %v6424_v50  ;;  %4547 = vmatprep.mubr.msk.f32.mxu0 %vm247_vm1, %v6439_v9 }
 0x143   : > { %4351 = vmatmul.mubr.msk.f32.gmra.mrb[22].mxu1 %vm247_vm1, %v6425_v18  ;;  %4548 = vmatmul.mubr.msk.f32.gmra.mrb[20].mxu0 %vm247_vm1, %v6440_v19 }
 0x144   : > { %4353 = vmatprep.mubr.msk.f32.mxu1 %vm247_vm1, %v6426_v32  ;;  %4550 = vmatprep.mubr.msk.f32.mxu0 %vm247_vm1, %v6413_v63 }
 0x147   : > { %4354 = vmatmul.mubr.msk.f32.gmra.mrb[24].mxu1 %vm247_vm1, %v5362_v58  ;;  %4551 = vmatmul.mubr.msk.f32.gmra.mrb[22].mxu0 %vm247_vm1, %v6415_v12  ;;  %v424_v58 = vld [vmem:[#allocation2 + $0x238] sm:$0xff] }
 0x148   : > { %4356 = vmatprep.mubr.msk.f32.mxu1 %vm247_vm1, %v6427_v30  ;;  %4553 = vmatprep.mubr.msk.f32.mxu0 %vm247_vm1, %v6417_v43 }
 0x14b   : > { %4357 = vmatmul.mubr.msk.f32.gmra.mrb[26].mxu1 %vm247_vm1, %v5383_v14  ;;  %4554 = vmatmul.mubr.msk.f32.gmra.mrb[24].mxu0 %vm247_vm1, %v6419_v61  ;;  %v6441_v14 = vld [vmem:[#allocation40_spill] sm:$0xff] }
 0x14c   : > { %4359 = vmatprep.mubr.msk.f32.mxu1 %vm247_vm1, %v5388_v26  ;;  %4556 = vmatprep.mubr.msk.f32.mxu0 %vm247_vm1, %v5587_v54  ;;  %v2921_v26 = vrot.slane %v424_v58, 1  ;;  %v2920_v54 = vsel %vm1158_vm2, %v2918_v22, %v2919_v28 }
 0x14f   : > { %4360 = vmatmul.mubr.msk.f32.gmra.mrb[28].mxu1 %vm247_vm1, %v5405_v55  ;;  %4557 = vmatmul.mubr.msk.f32.gmra.mrb[26].mxu0 %vm247_vm1, %v5605_v56  ;;  %v2922_v55 = vsel %vm1158_vm2, %v2919_v28, %v2921_v26 }
 0x150   : > { %4362 = vmatprep.mubr.msk.f32.mxu1 %vm247_vm1, %v5565_v53  ;;  %4559 = vmatprep.mubr.msk.f32.mxu0 %vm247_vm1, %v6441_v14 }
 0x153   : > { %4363 = vmatmul.mubr.msk.f32.gmra.mrb[30].mxu1 %vm247_vm1, %v5567_v52  ;;  %4560 = vmatmul.mubr.msk.f32.gmra.mrb[28].mxu0 %vm247_vm1, %v6442_v10 }
 0x154   : > { %4562 = vmatprep.mubr.msk.f32.mxu0 %vm247_vm1, %v2920_v54 }
 0x157   : > { %4563 = vmatmul.mubr.msk.f32.gmra.mrb[30].mxu0 %vm247_vm1, %v2922_v55 }
 0x1ca   : > { %v4269_v3 = vpop.f32.mrb[0].mxu1 }
 0x1cb   : > { %v1648_v53 = vpop.f32.mrb[1].mxu1 }
 0x1ce   : > { %v4272_v8 = vpop.f32.mrb[2].mxu1 }
 0x1cf   : > { %v1658_v38 = vpop.f32.mrb[3].mxu1 }
 0x1d2   : > { %v4275_v35 = vpop.f32.mrb[4].mxu1 }
 0x1d3   : > { %v1668_v21 = vpop.f32.mrb[5].mxu1 }
 0x1d6   : > { %v4278_v45 = vpop.f32.mrb[6].mxu1 }
 0x1d7   : > { %v1678_v4 = vpop.f32.mrb[7].mxu1 }
 0x1da   : > { %v6105_v56 = vpop.f32.mrb[8].mxu1 }
 0x1db   : > { %v6107_v52 = vpop.f32.mrb[9].mxu1 }
 0x1de   : > { %v6109_v51 = vpop.f32.mrb[10].mxu1 }
 0x1df   : > { %v6111_v5 = vpop.f32.mrb[11].mxu1 }
 0x1e2   : > { %v6113_v11 = vpop.f32.mrb[12].mxu1 }
 0x1e3   : > { %v6115_v39 = vpop.f32.mrb[13].mxu1 }
 0x1e6   : > { %v6117_v47 = vpop.f32.mrb[14].mxu1 }
 0x1e7   : > { %v6119_v31 = vpop.f32.mrb[15].mxu1 }
 0x1ee   : > { %v4519_v15 = vpop.f32.mrb[0].mxu0 }
 0x1ef   : > { %v4567_v27 = vadd.f32 %v4519_v15, %v4269_v3  ;;  %v2998_v41 = vpop.f32.mrb[1].mxu0 }
 0x1f0   : > { %v4568_v40 = vadd.f32 %v2998_v41, %v1648_v53 }
 0x1f1   : > { %3191 = vst.msk [vmem:[%s6126_s20 + $0x8] sm:$0xff] %vm3189_vm4, %v4567_v27  ;;  %v3223_v42 = vsel %vm3189_vm4, %v4567_v27, 0.0  ;;  %v3294_v24 = vmul.f32 %v4567_v27, %v4567_v27 }
 0x1f2   : > { %3190 = vst.msk [vmem:[%s6126_s20] sm:$0xff] %vm3189_vm4, %v4568_v40  ;;  %v3222_v57 = vsel %vm3189_vm4, %v4568_v40, 0.0  ;;  %v3293_v46 = vmul.f32 %v4568_v40, %v4568_v40  ;;  %v4522_v1 = vpop.f32.mrb[2].mxu0 }
 0x1f3   : > { %v3326_v7 = vsel %vm3189_vm4, %v3294_v24, 0.0  ;;  %v3224_v34 = vadd.f32 %v3223_v42, %v3222_v57  ;;  %v4569_v49 = vadd.f32 %v4522_v1, %v4272_v8  ;;  %v3008_v2 = vpop.f32.mrb[3].mxu0 }
 0x1f4   : > { %v3325_v25 = vsel %vm3189_vm4, %v3293_v46, 0.0  ;;  %v4570_v43 = vadd.f32 %v3008_v2, %v1658_v38 }
 0x1f5   : > { %v3327_v61 = vadd.f32 %v3326_v7, %v3325_v25  ;;  %3193 = vst.msk [vmem:[%s6126_s20 + $0x18] sm:$0xff] %vm3189_vm4, %v4569_v49  ;;  %v3296_v63 = vmul.f32 %v4569_v49, %v4569_v49  ;;  %v3227_v50 = vsel %vm3189_vm4, %v4569_v49, 0.0 }
 0x1f6   : > { %3192 = vst.msk [vmem:[%s6126_s20 + $0x10] sm:$0xff] %vm3189_vm4, %v4570_v43  ;;  %v3225_v12 = vsel %vm3189_vm4, %v4570_v43, 0.0  ;;  %v3295_v60 = vmul.f32 %v4570_v43, %v4570_v43  ;;  %v4525_v13 = vpop.f32.mrb[4].mxu0 }
 0x1f7   : > { %v3226_v37 = vadd.f32 %v3225_v12, %v3224_v34  ;;  %v4571_v17 = vadd.f32 %v4525_v13, %v4275_v35  ;;  %v3018_v62 = vpop.f32.mrb[5].mxu0  ;;  %v3330_v16 = vsel %vm3189_vm4, %v3296_v63, 0.0 }
 0x1f8   : > { %v3328_v18 = vsel %vm3189_vm4, %v3295_v60, 0.0  ;;  %v4572_v32 = vadd.f32 %v3018_v62, %v1668_v21 }
 0x1f9   : > { %v3329_v30 = vadd.f32 %v3328_v18, %v3327_v61  ;;  %3195 = vst.msk [vmem:[%s6126_s20 + $0x28] sm:$0xff] %vm3189_vm4, %v4571_v17  ;;  %v3228_v33 = vadd.f32 %v3227_v50, %v3226_v37  ;;  %v3298_v20 = vmul.f32 %v4571_v17, %v4571_v17  ;;  %v3231_v6 = vsel %vm3189_vm4, %v4571_v17, 0.0 }
 0x1fa   : > { %3194 = vst.msk [vmem:[%s6126_s20 + $0x20] sm:$0xff] %vm3189_vm4, %v4572_v32  ;;  %v3229_v23 = vsel %vm3189_vm4, %v4572_v32, 0.0  ;;  %v3297_v29 = vmul.f32 %v4572_v32, %v4572_v32  ;;  %v4528_v36 = vpop.f32.mrb[6].mxu0 }
 0x1fb   : > { %v3230_v44 = vadd.f32 %v3229_v23, %v3228_v33  ;;  %v3331_v48 = vadd.f32 %v3330_v16, %v3329_v30  ;;  %v4573_v59 = vadd.f32 %v4528_v36, %v4278_v45  ;;  %v3028_v0 = vpop.f32.mrb[7].mxu0  ;;  %v3334_v58 = vsel %vm3189_vm4, %v3298_v20, 0.0 }
 0x1fc   : > { %v3332_v9 = vsel %vm3189_vm4, %v3297_v29, 0.0  ;;  %v4574_v19 = vadd.f32 %v3028_v0, %v1678_v4 }
 0x1fd   : > { %v3333_v22 = vadd.f32 %v3332_v9, %v3331_v48  ;;  %3197 = vst.msk [vmem:[%s6126_s20 + $0x38] sm:$0xff] %vm3189_vm4, %v4573_v59  ;;  %v3232_v28 = vadd.f32 %v3231_v6, %v3230_v44  ;;  %v3300_v14 = vmul.f32 %v4573_v59, %v4573_v59  ;;  %v3235_v38 = vsel %vm3189_vm4, %v4573_v59, 0.0 }
 0x1fe   : > { %3196 = vst.msk [vmem:[%s6126_s20 + $0x30] sm:$0xff] %vm3189_vm4, %v4574_v19  ;;  %v3233_v26 = vsel %vm3189_vm4, %v4574_v19, 0.0  ;;  %v3299_v54 = vmul.f32 %v4574_v19, %v4574_v19  ;;  %v4531_v10 = vpop.f32.mrb[8].mxu0 }
 0x1ff   : > { %v3234_v55 = vadd.f32 %v3233_v26, %v3232_v28  ;;  %v3335_v3 = vadd.f32 %v3334_v58, %v3333_v22  ;;  %v4575_v53 = vadd.f32 %v4531_v10, %v6105_v56  ;;  %v3038_v8 = vpop.f32.mrb[9].mxu0  ;;  %v3338_v15 = vsel %vm3189_vm4, %v3300_v14, 0.0 }
 0x200   : > { %v3336_v35 = vsel %vm3189_vm4, %v3299_v54, 0.0  ;;  %v4576_v21 = vadd.f32 %v3038_v8, %v6107_v52 }
 0x201   : > { %v3337_v45 = vadd.f32 %v3336_v35, %v3335_v3  ;;  %3199 = vst.msk [vmem:[%s6126_s20 + $0x48] sm:$0xff] %vm3189_vm4, %v4575_v53  ;;  %v3236_v4 = vadd.f32 %v3235_v38, %v3234_v55  ;;  %v3302_v27 = vmul.f32 %v4575_v53, %v4575_v53  ;;  %v3239_v46 = vsel %vm3189_vm4, %v4575_v53, 0.0 }
 0x202   : > { %3198 = vst.msk [vmem:[%s6126_s20 + $0x40] sm:$0xff] %vm3189_vm4, %v4576_v21  ;;  %v3237_v56 = vsel %vm3189_vm4, %v4576_v21, 0.0  ;;  %v3301_v41 = vmul.f32 %v4576_v21, %v4576_v21  ;;  %v4534_v40 = vpop.f32.mrb[10].mxu0 }
 0x203   : > { %v3238_v42 = vadd.f32 %v3237_v56, %v3236_v4  ;;  %v3339_v24 = vadd.f32 %v3338_v15, %v3337_v45  ;;  %v4577_v57 = vadd.f32 %v4534_v40, %v6109_v51  ;;  %v3048_v52 = vpop.f32.mrb[11].mxu0  ;;  %v3342_v2 = vsel %vm3189_vm4, %v3302_v27, 0.0 }
 0x204   : > { %v3340_v1 = vsel %vm3189_vm4, %v3301_v41, 0.0  ;;  %v4578_v7 = vadd.f32 %v3048_v52, %v6111_v5 }
 0x205   : > { %v3341_v34 = vadd.f32 %v3340_v1, %v3339_v24  ;;  %3201 = vst.msk [vmem:[%s6126_s20 + $0x58] sm:$0xff] %vm3189_vm4, %v4577_v57  ;;  %v3240_v49 = vadd.f32 %v3239_v46, %v3238_v42  ;;  %v3304_v25 = vmul.f32 %v4577_v57, %v4577_v57  ;;  %v3243_v13 = vsel %vm3189_vm4, %v4577_v57, 0.0 }
 0x206   : > { %3200 = vst.msk [vmem:[%s6126_s20 + $0x50] sm:$0xff] %vm3189_vm4, %v4578_v7  ;;  %v3241_v51 = vsel %vm3189_vm4, %v4578_v7, 0.0  ;;  %v3303_v43 = vmul.f32 %v4578_v7, %v4578_v7  ;;  %v4537_v61 = vpop.f32.mrb[12].mxu0 }
 0x207   : > { %v3242_v63 = vadd.f32 %v3241_v51, %v3240_v49  ;;  %v3343_v12 = vadd.f32 %v3342_v2, %v3341_v34  ;;  %v4579_v60 = vadd.f32 %v4537_v61, %v6113_v11  ;;  %v3058_v5 = vpop.f32.mrb[13].mxu0  ;;  %v3346_v18 = vsel %vm3189_vm4, %v3304_v25, 0.0 }
 0x208   : > { %v3344_v37 = vsel %vm3189_vm4, %v3303_v43, 0.0  ;;  %v4580_v17 = vadd.f32 %v3058_v5, %v6115_v39 }
 0x209   : > { %v3345_v62 = vadd.f32 %v3344_v37, %v3343_v12  ;;  %3203 = vst.msk [vmem:[%s6126_s20 + $0x68] sm:$0xff] %vm3189_vm4, %v4579_v60  ;;  %v3244_v50 = vadd.f32 %v3243_v13, %v3242_v63  ;;  %v3306_v32 = vmul.f32 %v4579_v60, %v4579_v60  ;;  %v3247_v44 = vsel %vm3189_vm4, %v4579_v60, 0.0 }
 0x20a   : > { %3202 = vst.msk [vmem:[%s6126_s20 + $0x60] sm:$0xff] %vm3189_vm4, %v4580_v17  ;;  %v3245_v30 = vsel %vm3189_vm4, %v4580_v17, 0.0  ;;  %v3305_v11 = vmul.f32 %v4580_v17, %v4580_v17  ;;  %v4343_v33 = vpop.f32.mrb[16].mxu1  ;;  %v4540_v16 = vpop.f32.mrb[14].mxu0 }
 0x20b   : > { %v3246_v20 = vadd.f32 %v3245_v30, %v3244_v50  ;;  %v3347_v23 = vadd.f32 %v3346_v18, %v3345_v62  ;;  %v4581_v39 = vadd.f32 %v4540_v16, %v6117_v47  ;;  %v1994_v29 = vpop.f32.mrb[17].mxu1  ;;  %v3068_v36 = vpop.f32.mrb[15].mxu0  ;;  %v3350_v9 = vsel %vm3189_vm4, %v3306_v32, 0.0 }
 0x20c   : > { %v3348_v48 = vsel %vm3189_vm4, %v3305_v11, 0.0  ;;  %v4582_v59 = vadd.f32 %v3068_v36, %v6119_v31 }
 0x20d   : > { %v3349_v0 = vadd.f32 %v3348_v48, %v3347_v23  ;;  %3205 = vst.msk [vmem:[%s6126_s20 + $0x78] sm:$0xff] %vm3189_vm4, %v4581_v39  ;;  %v3248_v6 = vadd.f32 %v3247_v44, %v3246_v20  ;;  %v3308_v19 = vmul.f32 %v4581_v39, %v4581_v39  ;;  %v3251_v55 = vsel %vm3189_vm4, %v4581_v39, 0.0 }
 0x20e   : > { %3204 = vst.msk [vmem:[%s6126_s20 + $0x70] sm:$0xff] %vm3189_vm4, %v4582_v59  ;;  %v3249_v47 = vsel %vm3189_vm4, %v4582_v59, 0.0  ;;  %v3307_v22 = vmul.f32 %v4582_v59, %v4582_v59  ;;  %v4346_v28 = vpop.f32.mrb[18].mxu1  ;;  %v4543_v58 = vpop.f32.mrb[16].mxu0 }
 0x20f   : > { %v3250_v14 = vadd.f32 %v3249_v47, %v3248_v6  ;;  %v3351_v26 = vadd.f32 %v3350_v9, %v3349_v0  ;;  %v4583_v54 = vadd.f32 %v4543_v58, %v4343_v33  ;;  %v2004_v31 = vpop.f32.mrb[19].mxu1  ;;  %v3078_v10 = vpop.f32.mrb[17].mxu0  ;;  %v3354_v35 = vsel %vm3189_vm4, %v3308_v19, 0.0 }
 0x210   : > { %v3352_v3 = vsel %vm3189_vm4, %v3307_v22, 0.0  ;;  %v4584_v53 = vadd.f32 %v3078_v10, %v1994_v29 }
 0x211   : > { %v3353_v8 = vadd.f32 %v3352_v3, %v3351_v26  ;;  %3207 = vst.msk [vmem:[%s6126_s20 + $0x88] sm:$0xff] %vm3189_vm4, %v4583_v54  ;;  %v3252_v38 = vadd.f32 %v3251_v55, %v3250_v14  ;;  %v3310_v21 = vmul.f32 %v4583_v54, %v4583_v54  ;;  %v3255_v57 = vsel %vm3189_vm4, %v4583_v54, 0.0 }
 0x212   : > { %3206 = vst.msk [vmem:[%s6126_s20 + $0x80] sm:$0xff] %vm3189_vm4, %v4584_v53  ;;  %v3253_v45 = vsel %vm3189_vm4, %v4584_v53, 0.0  ;;  %v3309_v4 = vmul.f32 %v4584_v53, %v4584_v53  ;;  %v4349_v15 = vpop.f32.mrb[20].mxu1  ;;  %v4546_v27 = vpop.f32.mrb[18].mxu0 }
 0x213   : > { %v3254_v56 = vadd.f32 %v3253_v45, %v3252_v38  ;;  %v3355_v41 = vadd.f32 %v3354_v35, %v3353_v8  ;;  %v4585_v40 = vadd.f32 %v4546_v27, %v4346_v28  ;;  %v2014_v42 = vpop.f32.mrb[21].mxu1  ;;  %v3088_v24 = vpop.f32.mrb[19].mxu0  ;;  %v3358_v34 = vsel %vm3189_vm4, %v3310_v21, 0.0 }
 0x214   : > { %v3356_v52 = vsel %vm3189_vm4, %v3309_v4, 0.0  ;;  %v4586_v46 = vadd.f32 %v3088_v24, %v2004_v31 }
 0x215   : > { %v3357_v1 = vadd.f32 %v3356_v52, %v3355_v41  ;;  %3209 = vst.msk [vmem:[%s6126_s20 + $0x98] sm:$0xff] %vm3189_vm4, %v4585_v40  ;;  %v3256_v7 = vadd.f32 %v3255_v57, %v3254_v56  ;;  %v3312_v49 = vmul.f32 %v4585_v40, %v4585_v40  ;;  %v3259_v13 = vsel %vm3189_vm4, %v4585_v40, 0.0 }
 0x216   : > { %3208 = vst.msk [vmem:[%s6126_s20 + $0x90] sm:$0xff] %vm3189_vm4, %v4586_v46  ;;  %v3257_v2 = vsel %vm3189_vm4, %v4586_v46, 0.0  ;;  %v3311_v25 = vmul.f32 %v4586_v46, %v4586_v46  ;;  %v4352_v51 = vpop.f32.mrb[22].mxu1  ;;  %v4549_v43 = vpop.f32.mrb[20].mxu0 }
 0x217   : > { %v3258_v61 = vadd.f32 %v3257_v2, %v3256_v7  ;;  %v3359_v63 = vadd.f32 %v3358_v34, %v3357_v1  ;;  %v4587_v12 = vadd.f32 %v4549_v43, %v4349_v15  ;;  %v2024_v60 = vpop.f32.mrb[23].mxu1  ;;  %v3098_v5 = vpop.f32.mrb[21].mxu0  ;;  %v3362_v18 = vsel %vm3189_vm4, %v3312_v49, 0.0 }
 0x218   : > { %v3360_v37 = vsel %vm3189_vm4, %v3311_v25, 0.0  ;;  %v4588_v17 = vadd.f32 %v3098_v5, %v2014_v42 }
 0x219   : > { %v3361_v62 = vadd.f32 %v3360_v37, %v3359_v63  ;;  %3211 = vst.msk [vmem:[%s6126_s20 + $0xa8] sm:$0xff] %vm3189_vm4, %v4587_v12  ;;  %v3260_v50 = vadd.f32 %v3259_v13, %v3258_v61  ;;  %v3314_v32 = vmul.f32 %v4587_v12, %v4587_v12  ;;  %v3263_v44 = vsel %vm3189_vm4, %v4587_v12, 0.0 }
 0x21a   : > { %3210 = vst.msk [vmem:[%s6126_s20 + $0xa0] sm:$0xff] %vm3189_vm4, %v4588_v17  ;;  %v3261_v30 = vsel %vm3189_vm4, %v4588_v17, 0.0  ;;  %v3313_v11 = vmul.f32 %v4588_v17, %v4588_v17  ;;  %v4355_v33 = vpop.f32.mrb[24].mxu1  ;;  %v4552_v16 = vpop.f32.mrb[22].mxu0 }
 0x21b   : > { %v3262_v20 = vadd.f32 %v3261_v30, %v3260_v50  ;;  %v3363_v23 = vadd.f32 %v3362_v18, %v3361_v62  ;;  %v4589_v39 = vadd.f32 %v4552_v16, %v4352_v51  ;;  %v2034_v29 = vpop.f32.mrb[25].mxu1  ;;  %v3108_v36 = vpop.f32.mrb[23].mxu0  ;;  %v3366_v9 = vsel %vm3189_vm4, %v3314_v32, 0.0 }
 0x21c   : > { %v3364_v48 = vsel %vm3189_vm4, %v3313_v11, 0.0  ;;  %v4590_v59 = vadd.f32 %v3108_v36, %v2024_v60 }
 0x21d   : > { %v3365_v0 = vadd.f32 %v3364_v48, %v3363_v23  ;;  %3213 = vst.msk [vmem:[%s6126_s20 + $0xb8] sm:$0xff] %vm3189_vm4, %v4589_v39  ;;  %v3264_v6 = vadd.f32 %v3263_v44, %v3262_v20  ;;  %v3316_v19 = vmul.f32 %v4589_v39, %v4589_v39  ;;  %v3267_v55 = vsel %vm3189_vm4, %v4589_v39, 0.0 }
 0x21e   : > { %3212 = vst.msk [vmem:[%s6126_s20 + $0xb0] sm:$0xff] %vm3189_vm4, %v4590_v59  ;;  %v3265_v47 = vsel %vm3189_vm4, %v4590_v59, 0.0  ;;  %v3315_v22 = vmul.f32 %v4590_v59, %v4590_v59  ;;  %v4358_v28 = vpop.f32.mrb[26].mxu1  ;;  %v4555_v58 = vpop.f32.mrb[24].mxu0 }
 0x21f   : > { %v3266_v14 = vadd.f32 %v3265_v47, %v3264_v6  ;;  %v3367_v26 = vadd.f32 %v3366_v9, %v3365_v0  ;;  %v4591_v54 = vadd.f32 %v4555_v58, %v4355_v33  ;;  %v2044_v31 = vpop.f32.mrb[27].mxu1  ;;  %v3118_v10 = vpop.f32.mrb[25].mxu0  ;;  %v3370_v35 = vsel %vm3189_vm4, %v3316_v19, 0.0 }
 0x220   : > { %v3368_v3 = vsel %vm3189_vm4, %v3315_v22, 0.0  ;;  %v4592_v53 = vadd.f32 %v3118_v10, %v2034_v29 }
 0x221   : > { %v3369_v8 = vadd.f32 %v3368_v3, %v3367_v26  ;;  %3215 = vst.msk [vmem:[%s6126_s20 + $0xc8] sm:$0xff] %vm3189_vm4, %v4591_v54  ;;  %v3268_v38 = vadd.f32 %v3267_v55, %v3266_v14  ;;  %v3318_v21 = vmul.f32 %v4591_v54, %v4591_v54  ;;  %v3271_v57 = vsel %vm3189_vm4, %v4591_v54, 0.0 }
 0x222   : > { %3214 = vst.msk [vmem:[%s6126_s20 + $0xc0] sm:$0xff] %vm3189_vm4, %v4592_v53  ;;  %v3269_v45 = vsel %vm3189_vm4, %v4592_v53, 0.0  ;;  %v3317_v4 = vmul.f32 %v4592_v53, %v4592_v53  ;;  %v4361_v15 = vpop.f32.mrb[28].mxu1  ;;  %v4558_v27 = vpop.f32.mrb[26].mxu0 }
 0x223   : > { %v3270_v56 = vadd.f32 %v3269_v45, %v3268_v38  ;;  %v3371_v41 = vadd.f32 %v3370_v35, %v3369_v8  ;;  %v4593_v40 = vadd.f32 %v4558_v27, %v4358_v28  ;;  %v2054_v42 = vpop.f32.mrb[29].mxu1  ;;  %v3128_v24 = vpop.f32.mrb[27].mxu0  ;;  %v3374_v34 = vsel %vm3189_vm4, %v3318_v21, 0.0 }
 0x224   : > { %v3372_v52 = vsel %vm3189_vm4, %v3317_v4, 0.0  ;;  %v4594_v46 = vadd.f32 %v3128_v24, %v2044_v31 }
 0x225   : > { %v3373_v1 = vadd.f32 %v3372_v52, %v3371_v41  ;;  %3217 = vst.msk [vmem:[%s6126_s20 + $0xd8] sm:$0xff] %vm3189_vm4, %v4593_v40  ;;  %v3272_v7 = vadd.f32 %v3271_v57, %v3270_v56  ;;  %v3320_v49 = vmul.f32 %v4593_v40, %v4593_v40  ;;  %v3275_v13 = vsel %vm3189_vm4, %v4593_v40, 0.0 }
 0x226   : > { %3216 = vst.msk [vmem:[%s6126_s20 + $0xd0] sm:$0xff] %vm3189_vm4, %v4594_v46  ;;  %v3273_v2 = vsel %vm3189_vm4, %v4594_v46, 0.0  ;;  %v3319_v25 = vmul.f32 %v4594_v46, %v4594_v46  ;;  %v4364_v51 = vpop.f32.mrb[30].mxu1  ;;  %v4561_v43 = vpop.f32.mrb[28].mxu0 }
 0x227   : > { %v3274_v61 = vadd.f32 %v3273_v2, %v3272_v7  ;;  %v3375_v63 = vadd.f32 %v3374_v34, %v3373_v1  ;;  %v4595_v12 = vadd.f32 %v4561_v43, %v4361_v15  ;;  %v2064_v60 = vpop.f32.mrb[31].mxu1  ;;  %v3138_v5 = vpop.f32.mrb[29].mxu0  ;;  %v3378_v18 = vsel %vm3189_vm4, %v3320_v49, 0.0 }
 0x228   : > { %v3376_v37 = vsel %vm3189_vm4, %v3319_v25, 0.0  ;;  %v4596_v17 = vadd.f32 %v3138_v5, %v2054_v42 }
 0x229   : > { %v3377_v62 = vadd.f32 %v3376_v37, %v3375_v63  ;;  %3219 = vst.msk [vmem:[%s6126_s20 + $0xe8] sm:$0xff] %vm3189_vm4, %v4595_v12  ;;  %v3276_v50 = vadd.f32 %v3275_v13, %v3274_v61  ;;  %v3322_v32 = vmul.f32 %v4595_v12, %v4595_v12  ;;  %v3279_v29 = vsel %vm3189_vm4, %v4595_v12, 0.0 }
 0x22a   : > { %3218 = vst.msk [vmem:[%s6126_s20 + $0xe0] sm:$0xff] %vm3189_vm4, %v4596_v17  ;;  %v3277_v30 = vsel %vm3189_vm4, %v4596_v17, 0.0  ;;  %v3321_v11 = vmul.f32 %v4596_v17, %v4596_v17  ;;  %v4564_v33 = vpop.f32.mrb[30].mxu0 }
 0x22b   : > { %v3278_v16 = vadd.f32 %v3277_v30, %v3276_v50  ;;  %v3379_v20 = vadd.f32 %v3378_v18, %v3377_v62  ;;  %v4597_v23 = vadd.f32 %v4564_v33, %v4364_v51  ;;  %v3148_v39 = vpop.f32.mrb[31].mxu0  ;;  %v3382_v6 = vsel %vm3189_vm4, %v3322_v32, 0.0 }
 0x22c   : > { %v3380_v36 = vsel %vm3189_vm4, %v3321_v11, 0.0  ;;  %v4598_v44 = vadd.f32 %v3148_v39, %v2064_v60 }
 0x22d   : > { %v3381_v48 = vadd.f32 %v3380_v36, %v3379_v20  ;;  %3221 = vst.msk [vmem:[%s6126_s20 + $0xf8] sm:$0xff] %vm3189_vm4, %v4597_v23  ;;  %v3324_v59 = vmul.f32 %v4597_v23, %v4597_v23  ;;  %v3280_v0 = vadd.f32 %v3279_v29, %v3278_v16  ;;  %v3283_v58 = vsel %vm3189_vm4, %v4597_v23, 0.0 }
 0x22e   : > { %3220 = vst.msk [vmem:[%s6126_s20 + $0xf0] sm:$0xff] %vm3189_vm4, %v4598_v44  ;;  %v3281_v9 = vsel %vm3189_vm4, %v4598_v44, 0.0  ;;  %v3323_v19 = vmul.f32 %v4598_v44, %v4598_v44 }
 0x22f   : > { %v3386_v47 = vsel %vm3189_vm4, %v3324_v59, 0.0  ;;  %v3282_v22 = vadd.f32 %v3281_v9, %v3280_v0  ;;  %v3383_v28 = vadd.f32 %v3382_v6, %v3381_v48 }
 0x230   : > { %v3384_v14 = vsel %vm3189_vm4, %v3323_v19, 0.0 }
 0x231   : > { %v3284_v26 = vadd.f32 %v3283_v58, %v3282_v22  ;;  %v3385_v54 = vadd.f32 %v3384_v14, %v3383_v28 }
 0x233   : > { %v3285_v31 = vrot.slane %v3284_v26, 4  ;;  %v3387_v10 = vadd.f32 %v3386_v47, %v3385_v54 }
 0x235   : > { %v3286_v55 = vadd.f32 %v3285_v31, %v3284_v26  ;;  %v3388_v3 = vrot.slane %v3387_v10, 4 }
 0x237   : > { %v3287_v53 = vrot.slane %v3286_v55, 2  ;;  %v3389_v8 = vadd.f32 %v3388_v3, %v3387_v10 }
 0x239   : > { %v3288_v38 = vadd.f32 %v3287_v53, %v3286_v55  ;;  %v3390_v35 = vrot.slane %v3389_v8, 2 }
 0x23b   : > { %v3289_v21 = vrot.slane %v3288_v38, 1  ;;  %v3391_v45 = vadd.f32 %v3390_v35, %v3389_v8 }
 0x23d   : > { %v3290_v4 = vadd.f32 %v3289_v21, %v3288_v38  ;;  %v3392_v15 = vrot.slane %v3391_v45, 1 }
 0x23f   : > { %3292 = vst.msk [vmem:[%s211_s23] sm:$0x1] %vm3291_vm5, %v3290_v4  ;;  %v3393_v27 = vadd.f32 %v3392_v15, %v3391_v45 }
 0x241   : > { %3394 = vst.msk [vmem:[%s214_s26] sm:$0x1] %vm3291_vm5, %v3393_v27 }
 0x242 PF: > { %s15_s15 = sadd.s32 1, %s4839_s15  }
 0x243   : > { %p12_p4 = scmp.ge.s32.totalorder %s15_s15, 4  }
 0x245   :  { %14 = sbr.rel (!%p12_p4) target bundleno = 1 (0x1), region = 91 }

// kernel: encoder_forward.4
= control target key start
LH: loop header
LB: loop body
LE: loop exit
PB: predicated region body
PF: predicated region fallthrough
CT: control target
= control target key end

     0   :  { %s5005_s21 = smov 0   ;;  %s6481_s0 = inlined_call_operand.vmem [shape: f32[2,16,16,8], index: 0, kind: input, shape index: {}]   ;;  %s6482_s1 = inlined_call_operand.vmem [shape: f32[1,8], index: 1, kind: input, shape index: {}]   ;;  %s6483_s2 = inlined_call_operand.vmem [shape: f32[1,8], index: 2, kind: input, shape index: {}]   ;;  %s6484_s3 = inlined_call_operand.vmem [shape: f32[3,3,8,8], index: 3, kind: input, shape index: {}]   ;;  %s6485_s4 = inlined_call_operand.vmem [shape: f32[2,16,16,8], index: 4, kind: output, shape index: {0}]   ;;  %s6486_s5 = inlined_call_operand.vmem [shape: f32[2,1,8], index: 5, kind: output, shape index: {1}]   ;;  %s6487_s6 = inlined_call_operand.vmem [shape: f32[2,1,8], index: 6, kind: output, shape index: {2}]  }
   0x1 LB: > { %s3635_s22 = sadd.s32 4294967295, %s4967_s21   ;;  %p3639_p0 = scmp.ge.s32.totalorder %s4967_s21, 1  ;;  %s4967_s21 = sphi %s5005_s21, %s17_s21  }
   0x2   : > { %p217_p1 = scmp.lt.s32.totalorder %s4967_s21, 3 }
   0x4   : > { %p218_p2 = pnand %p3639_p0, %p217_p1 }
   0x6   : > { %221 = sbr.rel (%p218_p2) target bundleno = 578 (0x242), region = 36 }
   0xd   : > { %v5016_v0 = vld [vmem:[%s6484_s3 + $0x8] sm:$0xff]  ;;  %vm411_vm0 = vcmask 64512   ;;  %v5021_v1 = vld [vmem:[%s6484_s3 + $0x20] sm:$0xff]  ;;  %p5025_p3 = scmp.lt.s32.totalorder %s3635_s22, 1  ;;  %v4969_v3 = vmov 0.0   ;;  %v5236_v23 = vld [vmem:[%s6484_s3 + $0x10] sm:$0xff] }
   0xe   : > { %v5032_v2 = vld [vmem:[%s6484_s3] sm:$0xff]  ;;  %4243 = vmatprep.subr.mxu1 %v5016_v0  ;;  %413 = vst.msk [vmem:[#allocation2 + $0x8] sm:$0xff] %vm411_vm0, %v4969_v3  ;;  %412 = vst.msk [vmem:[#allocation2] sm:$0xff] %vm411_vm0, %v4969_v3  ;;  %4443 = vmatprep.subr.mxu0 %v5021_v1  ;;  %v5183_v4 = vld [vmem:[%s6484_s3 + $0x28] sm:$0xff]  ;;  %vm637_vm1 = vcmask 1040384   ;;  %vm1315_vm2 = vcmask 1046528  }
   0xf   : > { %414 = vst.msk [vmem:[#allocation2 + $0x10] sm:$0xff] %vm411_vm0, %v4969_v3  ;;  %415 = vst.msk [vmem:[#allocation2 + $0x18] sm:$0xff] %vm411_vm0, %v4969_v3  ;;  %4244 = vmatpush3.msra.mxu1 %v5016_v0  ;;  %4444 = vmatpush3.msra.mxu0 %v5021_v1  ;;  %s6651_s22 = smov (!%p5025_p3, %s3635_s22), 1  ;;  %v5199_v5 = vld [vmem:[%s6482_s1] ss:$0 sm:$0xff]  ;;  %vm3426_vm3 = vcmask 57344  }
  0x10   : > { %416 = vst.msk [vmem:[#allocation2 + $0x20] sm:$0xff] %vm411_vm0, %v4969_v3  ;;  %417 = vst.msk [vmem:[#allocation2 + $0x28] sm:$0xff] %vm411_vm0, %v4969_v3  ;;  %4293 = vmatprep.subr.mxu1 %v5032_v2  ;;  %4493 = vmatprep.subr.mxu0 %v5183_v4  ;;  %s3944_s8 = sshll.u32 %s6651_s22, 8  ;;  %v5211_v6 = vld [vmem:[%s6483_s2] ss:$0 sm:$0xff]  ;;  %s265_s11 = scalar_lea.vmem %s6486_s5, %s6651_s22 }
  0x11   : > { %418 = vst.msk [vmem:[#allocation2 + $0x30] sm:$0xff] %vm411_vm0, %v4969_v3  ;;  %419 = vst.msk [vmem:[#allocation2 + $0x38] sm:$0xff] %vm411_vm0, %v4969_v3  ;;  %s5206_s13 = scalar_lea.vmem %s6481_s0, %s3944_s8  ;;  %s6332_s9 = scalar_lea.vmem %s6485_s4, %s3944_s8 }
  0x12   : > { %420 = vst.msk [vmem:[#allocation2 + $0x40] sm:$0xff] %vm411_vm0, %v4969_v3  ;;  %421 = vst.msk [vmem:[#allocation2 + $0x48] sm:$0xff] %vm411_vm0, %v4969_v3  ;;  %v269_v7 = vld [vmem:[%s5206_s13] sm:$0xff]  ;;  %v270_v8 = vld [vmem:[%s5206_s13 + $0x8] sm:$0xff]  ;;  %s268_s14 = scalar_lea.vmem %s6487_s6, %s6651_s22 }
  0x13   : > { %422 = vst.msk [vmem:[#allocation2 + $0x50] sm:$0xff] %vm411_vm0, %v4969_v3  ;;  %423 = vst.msk [vmem:[#allocation2 + $0x58] sm:$0xff] %vm411_vm0, %v4969_v3  ;;  %v271_v9 = vld [vmem:[%s5206_s13 + $0x10] sm:$0xff]  ;;  %v308_v10 = vmul.f32 %v5199_v5, %v269_v7  ;;  %v309_v11 = vmul.f32 %v5199_v5, %v270_v8  ;;  %v272_v13 = vld [vmem:[%s5206_s13 + $0x18] sm:$0xff] }
  0x14   : > { %424 = vst.msk [vmem:[#allocation2 + $0x60] sm:$0xff] %vm411_vm0, %v4969_v3  ;;  %425 = vst.msk [vmem:[#allocation2 + $0x68] sm:$0xff] %vm411_vm0, %v4969_v3  ;;  %v310_v12 = vmul.f32 %v5199_v5, %v271_v9  ;;  %v273_v14 = vld [vmem:[%s5206_s13 + $0x20] sm:$0xff]  ;;  %v274_v15 = vld [vmem:[%s5206_s13 + $0x28] sm:$0xff]  ;;  %v311_v18 = vmul.f32 %v5199_v5, %v272_v13 }
  0x15   : > { %426 = vst.msk [vmem:[#allocation2 + $0x70] sm:$0xff] %vm411_vm0, %v4969_v3  ;;  %427 = vst.msk [vmem:[#allocation2 + $0x78] sm:$0xff] %vm411_vm0, %v4969_v3  ;;  %v5222_v16 = vld [vmem:[#allocation2 + $0x8] sm:$0xff]  ;;  %v312_v19 = vmul.f32 %v5199_v5, %v273_v14  ;;  %v313_v20 = vmul.f32 %v5199_v5, %v274_v15  ;;  %v275_v21 = vld [vmem:[%s5206_s13 + $0x30] sm:$0xff]  ;;  %v347_v24 = vadd.f32 %v5211_v6, %v308_v10 }
  0x16   : > { %428 = vst.msk [vmem:[#allocation2 + $0x80] sm:$0xff] %vm411_vm0, %v4969_v3  ;;  %429 = vst.msk [vmem:[#allocation2 + $0x88] sm:$0xff] %vm411_vm0, %v4969_v3  ;;  %v5224_v17 = vld [vmem:[#allocation2 + $0x10] sm:$0xff]  ;;  %4245 = vmatprep.mubr.msk.f32.mxu1 %vm411_vm0, %v5222_v16  ;;  %v276_v22 = vld [vmem:[%s5206_s13 + $0x38] sm:$0xff]  ;;  %v348_v25 = vadd.f32 %v5211_v6, %v309_v11  ;;  %v349_v26 = vadd.f32 %v5211_v6, %v310_v12  ;;  %v350_v27 = vadd.f32 %v5211_v6, %v311_v18 }
  0x17   : > { %430 = vst.msk [vmem:[#allocation2 + $0x90] sm:$0xff] %vm411_vm0, %v4969_v3  ;;  %431 = vst.msk [vmem:[#allocation2 + $0x98] sm:$0xff] %vm411_vm0, %v4969_v3  ;;  %4246 = vmatmul.mubr.msk.f32.vlgmr.msra.gmra.mrb[0].mxu1 %vm411_vm0, %v5224_v17  ;;  %v277_v28 = vld [vmem:[%s5206_s13 + $0x40] sm:$0xff]  ;;  %v351_v29 = vadd.f32 %v5211_v6, %v312_v19  ;;  %v352_v30 = vadd.f32 %v5211_v6, %v313_v20  ;;  %v314_v31 = vmul.f32 %v5199_v5, %v275_v21  ;;  %v278_v33 = vld [vmem:[%s5206_s13 + $0x48] sm:$0xff] }
  0x18   : > { %432 = vst.msk [vmem:[#allocation2 + $0xa0] sm:$0xff] %vm411_vm0, %v4969_v3  ;;  %433 = vst.msk [vmem:[#allocation2 + $0xa8] sm:$0xff] %vm411_vm0, %v4969_v3  ;;  %4294 = vmatpush3.msra.mxu1 %v5032_v2  ;;  %v315_v32 = vmul.f32 %v5199_v5, %v276_v22  ;;  %v279_v34 = vld [vmem:[%s5206_s13 + $0x50] sm:$0xff]  ;;  %v280_v35 = vld [vmem:[%s5206_s13 + $0x58] sm:$0xff]  ;;  %v379_v36 = vmax.f32 %v347_v24, 0.0  ;;  %v380_v37 = vmax.f32 %v348_v25, 0.0  ;;  %v316_v46 = vmul.f32 %v5199_v5, %v277_v28 }
  0x19   : > { %434 = vst.msk [vmem:[#allocation2 + $0xb0] sm:$0xff] %vm411_vm0, %v4969_v3  ;;  %435 = vst.msk [vmem:[#allocation2 + $0xb8] sm:$0xff] %vm411_vm0, %v4969_v3  ;;  %v381_v38 = vmax.f32 %v349_v26, 0.0  ;;  %v382_v39 = vmax.f32 %v350_v27, 0.0  ;;  %v281_v40 = vld [vmem:[%s5206_s13 + $0x60] sm:$0xff]  ;;  %v282_v41 = vld [vmem:[%s5206_s13 + $0x68] sm:$0xff]  ;;  %4343 = vmatprep.subr.mxu1 %v5236_v23  ;;  %v353_v44 = vadd.f32 %v5211_v6, %v314_v31  ;;  %v317_v47 = vmul.f32 %v5199_v5, %v278_v33 }
  0x1a   : > { %436 = vst.msk [vmem:[#allocation2 + $0xc0] sm:$0xff] %vm411_vm0, %v4969_v3  ;;  %437 = vst.msk [vmem:[#allocation2 + $0xc8] sm:$0xff] %vm411_vm0, %v4969_v3  ;;  %v383_v42 = vmax.f32 %v351_v29, 0.0  ;;  %v384_v43 = vmax.f32 %v352_v30, 0.0  ;;  %v354_v45 = vadd.f32 %v5211_v6, %v315_v32  ;;  %v318_v48 = vmul.f32 %v5199_v5, %v279_v34  ;;  %v283_v50 = vld [vmem:[%s5206_s13 + $0x70] sm:$0xff]  ;;  %v284_v51 = vld [vmem:[%s5206_s13 + $0x78] sm:$0xff] }
  0x1b   : > { %438 = vst.msk [vmem:[#allocation2 + $0xd0] sm:$0xff] %vm411_vm0, %v4969_v3  ;;  %439 = vst.msk [vmem:[#allocation2 + $0xd8] sm:$0xff] %vm411_vm0, %v4969_v3  ;;  %v319_v49 = vmul.f32 %v5199_v5, %v280_v35  ;;  %v385_v52 = vmax.f32 %v353_v44, 0.0  ;;  %v320_v54 = vmul.f32 %v5199_v5, %v281_v40  ;;  %v321_v55 = vmul.f32 %v5199_v5, %v282_v41  ;;  %v285_v0 = vld [vmem:[%s5206_s13 + $0x80] sm:$0xff]  ;;  %v286_v1 = vld [vmem:[%s5206_s13 + $0x88] sm:$0xff] }
  0x1c   : > { %440 = vst.msk [vmem:[#allocation2 + $0xe0] sm:$0xff] %vm411_vm0, %v4969_v3  ;;  %441 = vst.msk [vmem:[#allocation2 + $0xe8] sm:$0xff] %vm411_vm0, %v4969_v3  ;;  %v386_v53 = vmax.f32 %v354_v45, 0.0  ;;  %v355_v56 = vadd.f32 %v5211_v6, %v316_v46  ;;  %v356_v57 = vadd.f32 %v5211_v6, %v317_v47  ;;  %v357_v58 = vadd.f32 %v5211_v6, %v318_v48  ;;  %v287_v2 = vld [vmem:[%s5206_s13 + $0x90] sm:$0xff]  ;;  %v288_v10 = vld [vmem:[%s5206_s13 + $0x98] sm:$0xff] }
  0x1d   : > { %442 = vst.msk [vmem:[#allocation2 + $0xf0] sm:$0xff] %vm411_vm0, %v4969_v3  ;;  %443 = vst.msk [vmem:[#allocation2 + $0xf8] sm:$0xff] %vm411_vm0, %v4969_v3  ;;  %v358_v59 = vadd.f32 %v5211_v6, %v319_v49  ;;  %v359_v60 = vadd.f32 %v5211_v6, %v320_v54  ;;  %v360_v61 = vadd.f32 %v5211_v6, %v321_v55  ;;  %v5311_v27 = vld [vmem:[%s6484_s3 + $0x30] sm:$0xff]  ;;  %v289_v28 = vld [vmem:[%s5206_s13 + $0xa0] sm:$0xff] }
  0x1e   : > { %444 = vst.msk [vmem:[#allocation2 + $0x100] sm:$0xff] %vm411_vm0, %v4969_v3  ;;  %445 = vst.msk [vmem:[#allocation2 + $0x108] sm:$0xff] %vm411_vm0, %v4969_v3  ;;  %v322_v62 = vmul.f32 %v5199_v5, %v283_v50  ;;  %v323_v63 = vmul.f32 %v5199_v5, %v284_v51  ;;  %v388_v7 = vmax.f32 %v356_v57, 0.0  ;;  %v389_v8 = vmax.f32 %v357_v58, 0.0  ;;  %v290_v34 = vld [vmem:[%s5206_s13 + $0xa8] sm:$0xff]  ;;  %v292_v40 = vld [vmem:[%s5206_s13 + $0xb8] sm:$0xff] }
  0x1f   : > { %446 = vst.msk [vmem:[#allocation2 + $0x110] sm:$0xff] %vm411_vm0, %v4969_v3  ;;  %447 = vst.msk [vmem:[#allocation2 + $0x118] sm:$0xff] %vm411_vm0, %v4969_v3  ;;  %v390_v9 = vmax.f32 %v358_v59, 0.0  ;;  %v391_v11 = vmax.f32 %v359_v60, 0.0  ;;  %v392_v12 = vmax.f32 %v360_v61, 0.0  ;;  %v324_v15 = vmul.f32 %v5199_v5, %v285_v0  ;;  %v293_v47 = vld [vmem:[%s5206_s13 + $0xc0] sm:$0xff] }
  0x20   : > { %448 = vst.msk [vmem:[#allocation2 + $0x120] sm:$0xff] %vm411_vm0, %v4969_v3  ;;  %449 = vst.msk [vmem:[#allocation2 + $0x128] sm:$0xff] %vm411_vm0, %v4969_v3  ;;  %v361_v13 = vadd.f32 %v5211_v6, %v322_v62  ;;  %v362_v14 = vadd.f32 %v5211_v6, %v323_v63  ;;  %v325_v18 = vmul.f32 %v5199_v5, %v286_v1  ;;  %v294_v51 = vld [vmem:[%s5206_s13 + $0xc8] sm:$0xff]  ;;  %v295_v54 = vld [vmem:[%s5206_s13 + $0xd0] sm:$0xff] }
  0x21   : > { %450 = vst.msk [vmem:[#allocation2 + $0x130] sm:$0xff] %vm411_vm0, %v4969_v3  ;;  %451 = vst.msk [vmem:[#allocation2 + $0x138] sm:$0xff] %vm411_vm0, %v4969_v3  ;;  %v326_v19 = vmul.f32 %v5199_v5, %v287_v2  ;;  %v327_v26 = vmul.f32 %v5199_v5, %v288_v10  ;;  %v363_v29 = vadd.f32 %v5211_v6, %v324_v15  ;;  %v296_v57 = vld [vmem:[%s5206_s13 + $0xd8] sm:$0xff]  ;;  %v297_v1 = vld [vmem:[%s5206_s13 + $0xe0] sm:$0xff] }
  0x22   : > { %452 = vst.msk [vmem:[#allocation2 + $0x140] sm:$0xff] %vm411_vm0, %v4969_v3  ;;  %453 = vst.msk [vmem:[#allocation2 + $0x148] sm:$0xff] %vm411_vm0, %v4969_v3  ;;  %v393_v24 = vmax.f32 %v361_v13, 0.0  ;;  %v394_v25 = vmax.f32 %v362_v14, 0.0  ;;  %v364_v30 = vadd.f32 %v5211_v6, %v325_v18  ;;  %v331_v46 = vmul.f32 %v5199_v5, %v292_v40  ;;  %v298_v10 = vld [vmem:[%s5206_s13 + $0xe8] sm:$0xff] }
  0x23   : > { %454 = vst.msk [vmem:[#allocation2 + $0x150] sm:$0xff] %vm411_vm0, %v4969_v3  ;;  %455 = vst.msk [vmem:[#allocation2 + $0x158] sm:$0xff] %vm411_vm0, %v4969_v3  ;;  %v365_v31 = vadd.f32 %v5211_v6, %v326_v19  ;;  %v366_v33 = vadd.f32 %v5211_v6, %v327_v26  ;;  %v333_v61 = vmul.f32 %v5199_v5, %v294_v51 }
  0x24   : > { %456 = vst.msk [vmem:[#allocation2 + $0x160] sm:$0xff] %vm411_vm0, %v4969_v3  ;;  %457 = vst.msk [vmem:[#allocation2 + $0x168] sm:$0xff] %vm411_vm0, %v4969_v3  ;;  %v334_v0 = vmul.f32 %v5199_v5, %v295_v54  ;;  %v336_v15 = vmul.f32 %v5199_v5, %v297_v1  ;;  %v337_v26 = vmul.f32 %v5199_v5, %v298_v10 }
  0x25   : > { %458 = vst.msk [vmem:[#allocation2 + $0x170] sm:$0xff] %vm411_vm0, %v4969_v3  ;;  %459 = vst.msk [vmem:[#allocation2 + $0x178] sm:$0xff] %vm411_vm0, %v4969_v3  ;;  %v398_v41 = vmax.f32 %v366_v33, 0.0  ;;  %v372_v2 = vadd.f32 %v5211_v6, %v333_v61 }
  0x26   : > { %460 = vst.msk [vmem:[#allocation2 + $0x180] sm:$0xff] %vm411_vm0, %v4969_v3  ;;  %461 = vst.msk [vmem:[#allocation2 + $0x188] sm:$0xff] %vm411_vm0, %v4969_v3 }
  0x27   : > { %462 = vst.msk [vmem:[#allocation2 + $0x190] sm:$0xff] %vm411_vm0, %v4969_v3  ;;  %463 = vst.msk [vmem:[#allocation2 + $0x198] sm:$0xff] %vm411_vm0, %v4969_v3  ;;  %v404_v13 = vmax.f32 %v372_v2, 0.0 }
  0x28   : > { %464 = vst.msk [vmem:[#allocation2 + $0x1a0] sm:$0xff] %vm411_vm0, %v4969_v3  ;;  %465 = vst.msk [vmem:[#allocation2 + $0x1a8] sm:$0xff] %vm411_vm0, %v4969_v3 }
  0x29   : > { %466 = vst.msk [vmem:[#allocation2 + $0x1b0] sm:$0xff] %vm411_vm0, %v4969_v3  ;;  %467 = vst.msk [vmem:[#allocation2 + $0x1b8] sm:$0xff] %vm411_vm0, %v4969_v3 }
  0x2a   : > { %468 = vst.msk [vmem:[#allocation2 + $0x1c0] sm:$0xff] %vm411_vm0, %v4969_v3  ;;  %469 = vst.msk [vmem:[#allocation2 + $0x1c8] sm:$0xff] %vm411_vm0, %v4969_v3 }
  0x2b   : > { %470 = vst.msk [vmem:[#allocation2 + $0x1d0] sm:$0xff] %vm411_vm0, %v4969_v3  ;;  %471 = vst.msk [vmem:[#allocation2 + $0x1d8] sm:$0xff] %vm411_vm0, %v4969_v3 }
  0x2c   : > { %472 = vst.msk [vmem:[#allocation2 + $0x1e0] sm:$0xff] %vm411_vm0, %v4969_v3  ;;  %473 = vst.msk [vmem:[#allocation2 + $0x1e8] sm:$0xff] %vm411_vm0, %v4969_v3 }
  0x2d   : > { %474 = vst.msk [vmem:[#allocation2 + $0x1f0] sm:$0xff] %vm411_vm0, %v4969_v3  ;;  %475 = vst.msk [vmem:[#allocation2 + $0x1f8] sm:$0xff] %vm411_vm0, %v4969_v3 }
  0x2e   : > { %476 = vst.msk [vmem:[#allocation2 + $0x200] sm:$0xff] %vm411_vm0, %v4969_v3  ;;  %477 = vst.msk [vmem:[#allocation2 + $0x208] sm:$0xff] %vm411_vm0, %v4969_v3 }
  0x2f   : > { %478 = vst.msk [vmem:[#allocation2 + $0x210] sm:$0xff] %vm411_vm0, %v4969_v3  ;;  %479 = vst.msk [vmem:[#allocation2 + $0x218] sm:$0xff] %vm411_vm0, %v4969_v3 }
  0x30   : > { %480 = vst.msk [vmem:[#allocation2 + $0x220] sm:$0xff] %vm411_vm0, %v4969_v3  ;;  %481 = vst.msk [vmem:[#allocation2 + $0x228] sm:$0xff] %vm411_vm0, %v4969_v3 }
  0x31   : > { %482 = vst.msk [vmem:[#allocation2 + $0x230] sm:$0xff] %vm411_vm0, %v4969_v3  ;;  %483 = vst.msk [vmem:[#allocation2 + $0x238] sm:$0xff] %vm411_vm0, %v4969_v3  ;;  %v387_v3 = vmax.f32 %v355_v56, 0.0  ;;  %v332_v56 = vmul.f32 %v5199_v5, %v293_v47 }
  0x32   : > { %485 = vst.msk [vmem:[#allocation2 + $0x28] sm:$0xff] %vm411_vm0, %v379_v36  ;;  %486 = vst.msk [vmem:[#allocation2 + $0x30] sm:$0xff] %vm411_vm0, %v380_v37  ;;  %v395_v36 = vmax.f32 %v363_v29, 0.0  ;;  %v396_v37 = vmax.f32 %v364_v30, 0.0  ;;  %v376_v30 = vadd.f32 %v5211_v6, %v337_v26  ;;  %v540_v26 = vld [vmem:[#allocation2 + $0xb8] sm:$0xff] }
  0x33   : > { %487 = vst.msk [vmem:[#allocation2 + $0x48] sm:$0xff] %vm411_vm0, %v381_v38  ;;  %488 = vst.msk [vmem:[#allocation2 + $0x50] sm:$0xff] %vm411_vm0, %v382_v39  ;;  %v397_v38 = vmax.f32 %v365_v31, 0.0  ;;  %v291_v39 = vld [vmem:[%s5206_s13 + $0xb0] sm:$0xff]  ;;  %v371_v63 = vadd.f32 %v5211_v6, %v332_v56 }
  0x34   : > { %489 = vst.msk [vmem:[#allocation2 + $0x68] sm:$0xff] %vm411_vm0, %v383_v42  ;;  %490 = vst.msk [vmem:[#allocation2 + $0x70] sm:$0xff] %vm411_vm0, %v384_v43  ;;  %v329_v43 = vmul.f32 %v5199_v5, %v290_v34  ;;  %v330_v45 = vmul.f32 %v5199_v5, %v291_v39  ;;  %v408_v34 = vmax.f32 %v376_v30, 0.0  ;;  %v524_v39 = vld [vmem:[#allocation2 + $0x38] sm:$0xff] }
  0x35   : > { %491 = vst.msk [vmem:[#allocation2 + $0x88] sm:$0xff] %vm411_vm0, %v385_v52  ;;  %492 = vst.msk [vmem:[#allocation2 + $0x90] sm:$0xff] %vm411_vm0, %v386_v53  ;;  %v370_v53 = vadd.f32 %v5211_v6, %v331_v46 }
  0x36   : > { %493 = vst.msk [vmem:[#allocation2 + $0xa8] sm:$0xff] %vm411_vm0, %v387_v3  ;;  %494 = vst.msk [vmem:[#allocation2 + $0xb0] sm:$0xff] %vm411_vm0, %v388_v7  ;;  %v368_v50 = vadd.f32 %v5211_v6, %v329_v43  ;;  %v369_v52 = vadd.f32 %v5211_v6, %v330_v45  ;;  %v335_v3 = vmul.f32 %v5199_v5, %v296_v57  ;;  %v639_v7 = vrot.slane %v5222_v16, 7  ;;  %v528_v45 = vld [vmem:[#allocation2 + $0x58] sm:$0xff] }
  0x37   : > { %495 = vst.msk [vmem:[#allocation2 + $0xc8] sm:$0xff] %vm411_vm0, %v389_v8  ;;  %496 = vst.msk [vmem:[#allocation2 + $0xd0] sm:$0xff] %vm411_vm0, %v390_v9  ;;  %v402_v60 = vmax.f32 %v370_v53, 0.0  ;;  %v403_v8 = vmax.f32 %v371_v63, 0.0  ;;  %v373_v9 = vadd.f32 %v5211_v6, %v334_v0  ;;  %v1329_v51 = vrot.slane %v528_v45, 1  ;;  %v5486_v57 = vld [vmem:[%s6484_s3 + $0x38] sm:$0xff] }
  0x38   : > { %497 = vst.msk [vmem:[#allocation2 + $0xe8] sm:$0xff] %vm411_vm0, %v391_v11  ;;  %498 = vst.msk [vmem:[#allocation2 + $0xf0] sm:$0xff] %vm411_vm0, %v392_v12  ;;  %v400_v55 = vmax.f32 %v368_v50, 0.0  ;;  %v401_v59 = vmax.f32 %v369_v52, 0.0  ;;  %v641_v11 = vrot.slane %v5224_v17, 7  ;;  %v374_v14 = vadd.f32 %v5211_v6, %v335_v3  ;;  %v299_v63 = vld [vmem:[%s5206_s13 + $0xf0] sm:$0xff] }
  0x39   : > { %v5295_v20 = vld [vmem:[#allocation2 + $0x28] sm:$0xff]  ;;  %v5297_v21 = vld [vmem:[#allocation2 + $0x30] sm:$0xff]  ;;  %499 = vst.msk [vmem:[#allocation2 + $0x108] sm:$0xff] %vm411_vm0, %v393_v24  ;;  %500 = vst.msk [vmem:[#allocation2 + $0x110] sm:$0xff] %vm411_vm0, %v394_v25  ;;  %v405_v19 = vmax.f32 %v373_v9, 0.0  ;;  %v375_v25 = vadd.f32 %v5211_v6, %v336_v15  ;;  %v338_v9 = vmul.f32 %v5199_v5, %v299_v63 }
  0x3a   : > { %v5299_v22 = vld [vmem:[#allocation2 + $0x48] sm:$0xff]  ;;  %4248 = vmatprep.mubr.msk.f32.mxu1 %vm411_vm0, %v5295_v20  ;;  %4445 = vmatprep.mubr.msk.f32.mxu0 %vm411_vm0, %v5295_v20  ;;  %v5326_v32 = vld [vmem:[#allocation2 + $0x50] sm:$0xff]  ;;  %501 = vst.msk [vmem:[#allocation2 + $0x128] sm:$0xff] %vm411_vm0, %v395_v36  ;;  %502 = vst.msk [vmem:[#allocation2 + $0x130] sm:$0xff] %vm411_vm0, %v396_v37  ;;  %v406_v24 = vmax.f32 %v374_v14, 0.0  ;;  %v5426_v31 = vsel %vm637_vm1, %v639_v7, %v641_v11  ;;  %v1321_v37 = vrot.slane %v5295_v20, 1 }
  0x3b   : > { %6554 = vst [vmem:[#allocation3_spill] sm:$0xff] %v5299_v22  ;;  %4249 = vmatmul.mubr.msk.f32.gmra.mrb[2].mxu1 %vm411_vm0, %v5297_v21  ;;  %4446 = vmatmul.mubr.msk.f32.vlgmr.msra.gmra.mrb[0].mxu0 %vm411_vm0, %v5297_v21  ;;  %6555 = vst [vmem:[#allocation4_spill] sm:$0xff] %v5326_v32  ;;  %v5332_v35 = vld [vmem:[#allocation2 + $0x68] sm:$0xff]  ;;  %v5351_v44 = vld [vmem:[#allocation2 + $0x70] sm:$0xff]  ;;  %v407_v29 = vmax.f32 %v375_v25, 0.0  ;;  %v1326_v46 = vrot.slane %v5299_v22, 1 }
  0x3c   : > { %4494 = vmatpush3.msra.mxu0 %v5183_v4  ;;  %4251 = vmatprep.mubr.msk.f32.mxu1 %vm411_vm0, %v5299_v22  ;;  %6556 = vst [vmem:[#allocation5_spill] sm:$0xff] %v5332_v35  ;;  %v328_v4 = vmul.f32 %v5199_v5, %v289_v28  ;;  %503 = vst.msk [vmem:[#allocation2 + $0x148] sm:$0xff] %vm411_vm0, %v397_v38  ;;  %v5357_v48 = vld [vmem:[#allocation2 + $0x88] sm:$0xff]  ;;  %v5375_v58 = vld [vmem:[#allocation2 + $0x90] sm:$0xff]  ;;  %v1322_v38 = vrot.slane %v5297_v21, 1  ;;  %v1327_v47 = vrot.slane %v5326_v32, 1 }
  0x3d   : > { %4448 = vmatprep.mubr.msk.f32.mxu0 %vm411_vm0, %v5299_v22  ;;  %4543 = vmatprep.subr.mxu0 %v5311_v27  ;;  %6557 = vst [vmem:[#allocation6_spill] sm:$0xff] %v5351_v44  ;;  %504 = vst.msk [vmem:[#allocation2 + $0x150] sm:$0xff] %vm411_vm0, %v398_v41  ;;  %v5378_v62 = vld [vmem:[#allocation2 + $0xa8] sm:$0xff]  ;;  %v5400_v12 = vld [vmem:[#allocation2 + $0xb0] sm:$0xff]  ;;  %v1324_v41 = vrot.slane %v524_v39, 1  ;;  %v1331_v53 = vrot.slane %v5332_v35, 1 }
  0x3e   : > { %v367_v42 = vadd.f32 %v5211_v6, %v328_v4  ;;  %6558 = vst [vmem:[#allocation7_spill] sm:$0xff] %v5357_v48  ;;  %6559 = vst [vmem:[#allocation8_spill] sm:$0xff] %v5375_v58  ;;  %v5404_v18 = vld [vmem:[#allocation2 + $0xc8] sm:$0xff]  ;;  %v5419_v28 = vld [vmem:[#allocation2 + $0xd0] sm:$0xff]  ;;  %v5459_v43 = vsel %vm1315_vm2, %v1321_v37, %v1322_v38  ;;  %v1332_v54 = vrot.slane %v5351_v44, 1  ;;  %v5481_v56 = vsel %vm1315_vm2, %v1326_v46, %v1327_v47 }
  0x3f   : > { %4252 = vmatmul.mubr.msk.f32.gmra.mrb[4].mxu1 %vm411_vm0, %v5326_v32  ;;  %4449 = vmatmul.mubr.msk.f32.gmra.mrb[2].mxu0 %vm411_vm0, %v5326_v32  ;;  %6560 = vst [vmem:[#allocation9_spill] sm:$0xff] %v5378_v62  ;;  %506 = vst.msk [vmem:[#allocation2 + $0x170] sm:$0xff] %vm411_vm0, %v400_v55  ;;  %v5428_v33 = vld [vmem:[#allocation2 + $0xe8] sm:$0xff]  ;;  %v5439_v36 = vld [vmem:[#allocation2 + $0xf0] sm:$0xff]  ;;  %v5474_v50 = vsel %vm1315_vm2, %v1322_v38, %v1324_v41  ;;  %v1337_v2 = vrot.slane %v5375_v58, 1  ;;  %v1342_v25 = vrot.slane %v5400_v12, 1 }
  0x40   : > { %4254 = vmatprep.mubr.msk.f32.mxu1 %vm411_vm0, %v5332_v35  ;;  %4451 = vmatprep.mubr.msk.f32.mxu0 %vm411_vm0, %v5332_v35  ;;  %v399_v49 = vmax.f32 %v367_v42, 0.0  ;;  %507 = vst.msk [vmem:[#allocation2 + $0x188] sm:$0xff] %vm411_vm0, %v401_v59  ;;  %508 = vst.msk [vmem:[#allocation2 + $0x190] sm:$0xff] %vm411_vm0, %v402_v60  ;;  %v5444_v4 = vld [vmem:[#allocation2 + $0x108] sm:$0xff]  ;;  %v5454_v40 = vld [vmem:[#allocation2 + $0x110] sm:$0xff]  ;;  %v5498_v60 = vsel %vm1315_vm2, %v1327_v47, %v1329_v51  ;;  %v5506_v1 = vsel %vm1315_vm2, %v1331_v53, %v1332_v54 }
  0x41   : > { %6561 = vst [vmem:[#allocation10_spill] sm:$0xff] %v5400_v12  ;;  %6562 = vst [vmem:[#allocation11_spill] sm:$0xff] %v5404_v18  ;;  %v5456_v42 = vld [vmem:[#allocation2 + $0x128] sm:$0xff]  ;;  %v532_v55 = vld [vmem:[#allocation2 + $0x78] sm:$0xff]  ;;  %v1344_v38 = vrot.slane %v540_v26, 1  ;;  %v1346_v45 = vrot.slane %v5404_v18, 1 }
  0x42   : > { %505 = vst.msk [vmem:[#allocation2 + $0x168] sm:$0xff] %vm411_vm0, %v399_v49  ;;  %509 = vst.msk [vmem:[#allocation2 + $0x1a8] sm:$0xff] %vm411_vm0, %v403_v8  ;;  %v5471_v49 = vld [vmem:[#allocation2 + $0x130] sm:$0xff]  ;;  %v1334_v61 = vrot.slane %v532_v55, 1  ;;  %v536_v3 = vld [vmem:[#allocation2 + $0x98] sm:$0xff]  ;;  %v1347_v46 = vrot.slane %v5419_v28, 1 }
  0x43   : > { %4255 = vmatmul.mubr.msk.f32.gmra.mrb[6].mxu1 %vm411_vm0, %v5351_v44  ;;  %4452 = vmatmul.mubr.msk.f32.gmra.mrb[4].mxu0 %vm411_vm0, %v5351_v44  ;;  %510 = vst.msk [vmem:[#allocation2 + $0x1b0] sm:$0xff] %vm411_vm0, %v404_v13  ;;  %511 = vst.msk [vmem:[#allocation2 + $0x1c8] sm:$0xff] %vm411_vm0, %v405_v19  ;;  %v5476_v52 = vld [vmem:[#allocation2 + $0x148] sm:$0xff]  ;;  %v300_v8 = vld [vmem:[%s5206_s13 + $0xf8] sm:$0xff]  ;;  %v1339_v13 = vrot.slane %v536_v3, 1  ;;  %v1316_v51 = vrot.slane %v5222_v16, 1  ;;  %v5571_v55 = vsel %vm1315_vm2, %v1342_v25, %v1344_v38 }
  0x44   : > { %4257 = vmatprep.mubr.msk.f32.mxu1 %vm411_vm0, %v5357_v48  ;;  %4454 = vmatprep.mubr.msk.f32.mxu0 %vm411_vm0, %v5357_v48  ;;  %6563 = vst [vmem:[#allocation12_spill] sm:$0xff] %v5419_v28  ;;  %512 = vst.msk [vmem:[#allocation2 + $0x1d0] sm:$0xff] %vm411_vm0, %v406_v24  ;;  %v5495_v59 = vld [vmem:[#allocation2 + $0x150] sm:$0xff]  ;;  %v5524_v11 = vsel %vm1315_vm2, %v1332_v54, %v1334_v61  ;;  %v339_v14 = vmul.f32 %v5199_v5, %v300_v8  ;;  %v1341_v24 = vrot.slane %v5378_v62, 1  ;;  %v544_v47 = vld [vmem:[#allocation2 + $0xd8] sm:$0xff] }
  0x45   : > { %6564 = vst [vmem:[#allocation13_spill] sm:$0xff] %v5428_v33  ;;  %513 = vst.msk [vmem:[#allocation2 + $0x1e8] sm:$0xff] %vm411_vm0, %v407_v29  ;;  %v377_v29 = vadd.f32 %v5211_v6, %v338_v9  ;;  %v5547_v37 = vsel %vm1315_vm2, %v1337_v2, %v1339_v13  ;;  %v6488_v53 = vrot.slane %v5224_v17, 1  ;;  %v1349_v61 = vrot.slane %v544_v47, 1  ;;  %v548_v8 = vld [vmem:[#allocation2 + $0xf8] sm:$0xff]  ;;  %v517_v9 = vld [vmem:[#allocation2] sm:$0xff] }
  0x46   : > { %6565 = vst [vmem:[#allocation14_spill] sm:$0xff] %v5439_v36  ;;  %514 = vst.msk [vmem:[#allocation2 + $0x1f0] sm:$0xff] %vm411_vm0, %v408_v34  ;;  %v5521_v10 = vld [vmem:[#allocation2 + $0x170] sm:$0xff]  ;;  %v378_v30 = vadd.f32 %v5211_v6, %v339_v14  ;;  %v5552_v41 = vsel %vm1315_vm2, %v1341_v24, %v1342_v25  ;;  %v1352_v3 = vrot.slane %v5439_v36, 1  ;;  %v1354_v25 = vrot.slane %v548_v8, 1 }
  0x47   : > { %4258 = vmatmul.mubr.msk.f32.gmra.mrb[8].mxu1 %vm411_vm0, %v5375_v58  ;;  %4455 = vmatmul.mubr.msk.f32.gmra.mrb[6].mxu0 %vm411_vm0, %v5375_v58  ;;  %6566 = vst [vmem:[#allocation15_spill] sm:$0xff] %v5444_v4  ;;  %v5527_v15 = vld [vmem:[#allocation2 + $0x188] sm:$0xff]  ;;  %v409_v5 = vmax.f32 %v377_v29, 0.0  ;;  %v5544_v34 = vld [vmem:[#allocation2 + $0x190] sm:$0xff]  ;;  %v5583_v13 = vsel %vm1315_vm2, %v1316_v51, %v6488_v53  ;;  %v5596_v24 = vsel %vm1315_vm2, %v1347_v46, %v1349_v61  ;;  %v1357_v38 = vrot.slane %v5454_v40, 1 }
  0x48   : > { %4260 = vmatprep.mubr.msk.f32.mxu1 %vm411_vm0, %v5378_v62  ;;  %4457 = vmatprep.mubr.msk.f32.mxu0 %vm411_vm0, %v5378_v62  ;;  %6567 = vst [vmem:[#allocation16_spill] sm:$0xff] %v5527_v15  ;;  %6568 = vst [vmem:[#allocation17_spill] sm:$0xff] %v5544_v34  ;;  %v410_v6 = vmax.f32 %v378_v30, 0.0  ;;  %v638_v30 = vrot.slane %v517_v9, 7  ;;  %v5617_v51 = vsel %vm1315_vm2, %v1352_v3, %v1354_v25  ;;  %v1362_v53 = vrot.slane %v5471_v49, 1 }
  0x49   : > { %v5503_v0 = vld [vmem:[#allocation2 + $0x168] sm:$0xff]  ;;  %515 = vst.msk [vmem:[#allocation2 + $0x208] sm:$0xff] %vm411_vm0, %v409_v5  ;;  %6572 = vst [vmem:[#allocation21_spill] sm:$0xff] %v5596_v24  ;;  %v1356_v5 = vrot.slane %v5444_v4, 1 }
  0x4a   : > { %v5549_v39 = vld [vmem:[#allocation2 + $0x1a8] sm:$0xff]  ;;  %516 = vst.msk [vmem:[#allocation2 + $0x210] sm:$0xff] %vm411_vm0, %v410_v6  ;;  %v5568_v54 = vld [vmem:[#allocation2 + $0x1b0] sm:$0xff]  ;;  %v552_v6 = vld [vmem:[#allocation2 + $0x118] sm:$0xff]  ;;  %v640_v8 = vsel %vm637_vm1, %v638_v30, %v639_v7 }
  0x4b   : > { %4261 = vmatmul.mubr.msk.f32.gmra.mrb[10].mxu1 %vm411_vm0, %v5400_v12  ;;  %4458 = vmatmul.mubr.msk.f32.gmra.mrb[8].mxu0 %vm411_vm0, %v5400_v12  ;;  %6569 = vst [vmem:[#allocation18_spill] sm:$0xff] %v5549_v39  ;;  %v5573_v63 = vld [vmem:[#allocation2 + $0x1c8] sm:$0xff]  ;;  %v5593_v14 = vld [vmem:[#allocation2 + $0x1d0] sm:$0xff]  ;;  %v1359_v61 = vrot.slane %v552_v6, 1  ;;  %v5623_v9 = vsel %vm1315_vm2, %v1356_v5, %v1357_v38  ;;  %v649_v5 = vrot.slane %v5299_v22, 7  ;;  %v1366_v6 = vrot.slane %v5476_v52, 1 }
  0x4c   : > { %4263 = vmatprep.mubr.msk.f32.mxu1 %vm411_vm0, %v5404_v18  ;;  %4460 = vmatprep.mubr.msk.f32.mxu0 %vm411_vm0, %v5404_v18  ;;  %6570 = vst [vmem:[#allocation19_spill] sm:$0xff] %v5573_v63  ;;  %v5598_v26 = vld [vmem:[#allocation2 + $0x1e8] sm:$0xff]  ;;  %v1372_v22 = vrot.slane %v5521_v10, 1 }
  0x4d   : > { %v5614_v47 = vld [vmem:[#allocation2 + $0x1f0] sm:$0xff]  ;;  %v5636_v16 = vsel %vm1315_vm2, %v1357_v38, %v1359_v61  ;;  %v5655_v38 = vld [vmem:[%s6484_s3 + $0x18] sm:$0xff] }
  0x4e   : > { %6574 = vst [vmem:[#allocation23_spill] sm:$0xff] %v5636_v16 }
  0x4f   : > { %4264 = vmatmul.mubr.msk.f32.gmra.mrb[12].mxu1 %vm411_vm0, %v5419_v28  ;;  %4461 = vmatmul.mubr.msk.f32.gmra.mrb[10].mxu0 %vm411_vm0, %v5419_v28 }
  0x50   : > { %4266 = vmatprep.mubr.msk.f32.mxu1 %vm411_vm0, %v5428_v33  ;;  %4463 = vmatprep.mubr.msk.f32.mxu0 %vm411_vm0, %v5428_v33 }
  0x53   : > { %4267 = vmatmul.mubr.msk.f32.gmra.mrb[14].mxu1 %vm411_vm0, %v5439_v36  ;;  %4464 = vmatmul.mubr.msk.f32.gmra.mrb[12].mxu0 %vm411_vm0, %v5439_v36 }
  0x54   : > { %4269 = vmatprep.mubr.msk.f32.mxu1 %vm411_vm0, %v5444_v4  ;;  %4466 = vmatprep.mubr.msk.f32.mxu0 %vm411_vm0, %v5444_v4 }
  0x57   : > { %4270 = vmatmul.mubr.msk.f32.gmra.mrb[16].mxu1 %vm411_vm0, %v5454_v40  ;;  %4467 = vmatmul.mubr.msk.f32.gmra.mrb[14].mxu0 %vm411_vm0, %v5454_v40 }
  0x58   : > { %4272 = vmatprep.mubr.msk.f32.mxu1 %vm411_vm0, %v5456_v42  ;;  %4495 = vmatprep.mubr.msk.f32.mxu0 %vm411_vm0, %v5459_v43 }
  0x5b   : > { %4273 = vmatmul.mubr.msk.f32.gmra.mrb[18].mxu1 %vm411_vm0, %v5471_v49  ;;  %4496 = vmatmul.mubr.msk.f32.vlgmr.msra.gmra.mrb[0].mxu0 %vm411_vm0, %v5474_v50 }
  0x5c   : > { %4544 = vmatpush3.msra.mxu0 %v5311_v27  ;;  %4275 = vmatprep.mubr.msk.f32.mxu1 %vm411_vm0, %v5476_v52  ;;  %v1336_v27 = vrot.slane %v5357_v48, 1 }
  0x5d   : > { %4498 = vmatprep.mubr.msk.f32.mxu0 %vm411_vm0, %v5481_v56  ;;  %4593 = vmatprep.subr.mxu0 %v5486_v57 }
  0x5e   : > { %v5530_v19 = vsel %vm1315_vm2, %v1336_v27, %v1337_v2  ;;  %v5576_v27 = vsel %vm1315_vm2, %v1346_v45, %v1347_v46  ;;  %v1351_v2 = vrot.slane %v5428_v33, 1  ;;  %v521_v45 = vld [vmem:[#allocation2 + $0x20] sm:$0xff]  ;;  %v644_v46 = vrot.slane %v5295_v20, 7 }
  0x5f   : > { %4276 = vmatmul.mubr.msk.f32.gmra.mrb[20].mxu1 %vm411_vm0, %v5495_v59  ;;  %4499 = vmatmul.mubr.msk.f32.gmra.mrb[2].mxu0 %vm411_vm0, %v5498_v60  ;;  %6571 = vst [vmem:[#allocation20_spill] sm:$0xff] %v5576_v27  ;;  %v1361_v20 = vrot.slane %v5456_v42, 1 }
  0x60   : > { %4278 = vmatprep.mubr.msk.f32.mxu1 %vm411_vm0, %v5503_v0  ;;  %4501 = vmatprep.mubr.msk.f32.mxu0 %vm411_vm0, %v5506_v1  ;;  %v5601_v29 = vsel %vm1315_vm2, %v1351_v2, %v1352_v3  ;;  %v643_v2 = vrot.slane %v521_v45, 7  ;;  %v1367_v45 = vrot.slane %v5495_v59, 1 }
  0x61   : > { %6573 = vst [vmem:[#allocation22_spill] sm:$0xff] %v5601_v29  ;;  %v5642_v30 = vsel %vm1315_vm2, %v1361_v20, %v1362_v53  ;;  %v654_v20 = vrot.slane %v5332_v35, 7  ;;  %v537_v35 = vld [vmem:[#allocation2 + $0xa0] sm:$0xff] }
  0x62   : > { %v5639_v7 = vsel %vm637_vm1, %v643_v2, %v644_v46  ;;  %6576 = vst [vmem:[#allocation25_spill] sm:$0xff] %v5642_v30 }
  0x63   : > { %4279 = vmatmul.mubr.msk.f32.gmra.mrb[22].mxu1 %vm411_vm0, %v5521_v10  ;;  %4502 = vmatmul.mubr.msk.f32.gmra.mrb[4].mxu0 %vm411_vm0, %v5524_v11  ;;  %6575 = vst [vmem:[#allocation24_spill] sm:$0xff] %v5639_v7 }
  0x64   : > { %4281 = vmatprep.mubr.msk.f32.mxu1 %vm411_vm0, %v5527_v15  ;;  %4504 = vmatprep.mubr.msk.f32.mxu0 %vm411_vm0, %v5530_v19 }
  0x67   : > { %4282 = vmatmul.mubr.msk.f32.gmra.mrb[24].mxu1 %vm411_vm0, %v5544_v34  ;;  %4505 = vmatmul.mubr.msk.f32.gmra.mrb[6].mxu0 %vm411_vm0, %v5547_v37 }
  0x68   : > { %4284 = vmatprep.mubr.msk.f32.mxu1 %vm411_vm0, %v5549_v39  ;;  %4507 = vmatprep.mubr.msk.f32.mxu0 %vm411_vm0, %v5552_v41 }
  0x6b   : > { %4285 = vmatmul.mubr.msk.f32.gmra.mrb[26].mxu1 %vm411_vm0, %v5568_v54  ;;  %4508 = vmatmul.mubr.msk.f32.gmra.mrb[8].mxu0 %vm411_vm0, %v5571_v55 }
  0x6c   : > { %4287 = vmatprep.mubr.msk.f32.mxu1 %vm411_vm0, %v5573_v63  ;;  %4510 = vmatprep.mubr.msk.f32.mxu0 %vm411_vm0, %v5576_v27  ;;  %v646_v27 = vrot.slane %v5297_v21, 7  ;;  %v560_v21 = vld [vmem:[#allocation2 + $0x158] sm:$0xff] }
  0x6e   : > { %v5662_v61 = vsel %vm637_vm1, %v644_v46, %v646_v27  ;;  %v564_v27 = vld [vmem:[#allocation2 + $0x178] sm:$0xff]  ;;  %v533_v46 = vld [vmem:[#allocation2 + $0x80] sm:$0xff] }
  0x6f   : > { %4288 = vmatmul.mubr.msk.f32.gmra.mrb[28].mxu1 %vm411_vm0, %v5593_v14  ;;  %4511 = vmatmul.mubr.msk.f32.gmra.mrb[10].mxu0 %vm411_vm0, %v5596_v24  ;;  %v556_v24 = vld [vmem:[#allocation2 + $0x138] sm:$0xff]  ;;  %6577 = vst [vmem:[#allocation26_spill] sm:$0xff] %v5662_v61 }
  0x70   : > { %4290 = vmatprep.mubr.msk.f32.mxu1 %vm411_vm0, %v5598_v26  ;;  %4513 = vmatprep.mubr.msk.f32.mxu0 %vm411_vm0, %v5601_v29  ;;  %v525_v29 = vld [vmem:[#allocation2 + $0x40] sm:$0xff]  ;;  %v1364_v3 = vrot.slane %v556_v24, 1  ;;  %v651_v24 = vrot.slane %v5326_v32, 7  ;;  %v5673_v32 = vsel %vm1315_vm2, %v1366_v6, %v1367_v45  ;;  %v1374_v6 = vrot.slane %v564_v27, 1 }
  0x71   : > { %v648_v25 = vrot.slane %v525_v29, 7  ;;  %v1369_v29 = vrot.slane %v560_v21, 1  ;;  %6579 = vst [vmem:[#allocation28_spill] sm:$0xff] %v5673_v32 }
  0x73   : > { %4291 = vmatmul.mubr.msk.f32.gmra.mrb[30].mxu1 %vm411_vm0, %v5614_v47  ;;  %4514 = vmatmul.mubr.msk.f32.gmra.mrb[12].mxu0 %vm411_vm0, %v5617_v51  ;;  %v5670_v21 = vsel %vm637_vm1, %v648_v25, %v649_v5  ;;  %v656_v25 = vrot.slane %v5351_v44, 7  ;;  %v664_v44 = vrot.slane %v5378_v62, 7  ;;  %v545_v62 = vld [vmem:[#allocation2 + $0xe0] sm:$0xff] }
  0x74   : > { %4295 = vmatprep.mubr.msk.f32.mxu1 %vm411_vm0, %v640_v8  ;;  %4516 = vmatprep.mubr.msk.f32.mxu0 %vm411_vm0, %v5623_v9  ;;  %v529_v8 = vld [vmem:[#allocation2 + $0x60] sm:$0xff] }
  0x75   : > { %v653_v2 = vrot.slane %v529_v8, 7  ;;  %v658_v8 = vrot.slane %v533_v46, 7  ;;  %v5715_v46 = vsel %vm1315_vm2, %v1372_v22, %v1374_v6 }
  0x76   : > { %6582 = vst [vmem:[#allocation31_spill] sm:$0xff] %v5715_v46 }
  0x77   : > { %4296 = vmatmul.mubr.msk.f32.vlgmr.msra.gmra.mrb[0].mxu1 %vm411_vm0, %v5426_v31  ;;  %4517 = vmatmul.mubr.msk.f32.gmra.mrb[14].mxu0 %vm411_vm0, %v5636_v16  ;;  %v5665_v31 = vsel %vm1315_vm2, %v1362_v53, %v1364_v3  ;;  %v5686_v53 = vsel %vm1315_vm2, %v1367_v45, %v1369_v29  ;;  %v5693_v3 = vsel %vm637_vm1, %v653_v2, %v654_v20  ;;  %v659_v45 = vrot.slane %v5357_v48, 7  ;;  %v557_v16 = vld [vmem:[#allocation2 + $0x140] sm:$0xff] }
  0x78   : > { %4298 = vmatprep.mubr.msk.f32.mxu1 %vm411_vm0, %v5639_v7  ;;  %4519 = vmatprep.mubr.msk.f32.mxu0 %vm411_vm0, %v5642_v30  ;;  %6578 = vst [vmem:[#allocation27_spill] sm:$0xff] %v5665_v31  ;;  %v1371_v7 = vrot.slane %v5503_v0, 1  ;;  %6580 = vst [vmem:[#allocation29_spill] sm:$0xff] %v5686_v53  ;;  %v1377_v29 = vrot.slane %v5544_v34, 1  ;;  %v661_v2 = vrot.slane %v5375_v58, 7  ;;  %v663_v48 = vrot.slane %v537_v35, 7 }
  0x79   : > { %4344 = vmatpush3.msra.mxu1 %v5236_v23  ;;  %v5683_v23 = vsel %vm637_vm1, %v649_v5, %v651_v24  ;;  %v1376_v24 = vrot.slane %v5527_v15, 1  ;;  %v1381_v58 = vrot.slane %v5549_v39, 1  ;;  %v553_v30 = vld [vmem:[#allocation2 + $0x120] sm:$0xff] }
  0x7a   : > { %4393 = vmatprep.subr.mxu1 %v5655_v38  ;;  %v5697_v5 = vsel %vm1315_vm2, %v1371_v7, %v1372_v22  ;;  %v5712_v7 = vsel %vm637_vm1, %v654_v20, %v656_v25  ;;  %v5731_v22 = vsel %vm637_vm1, %v659_v45, %v661_v2  ;;  %v5741_v20 = vsel %vm637_vm1, %v663_v48, %v664_v44 }
  0x7b   : > { %4299 = vmatmul.mubr.msk.f32.gmra.mrb[2].mxu1 %vm411_vm0, %v5662_v61  ;;  %4520 = vmatmul.mubr.msk.f32.gmra.mrb[16].mxu0 %vm411_vm0, %v5665_v31  ;;  %v568_v61 = vld [vmem:[#allocation2 + $0x198] sm:$0xff]  ;;  %6581 = vst [vmem:[#allocation30_spill] sm:$0xff] %v5697_v5  ;;  %v541_v31 = vld [vmem:[#allocation2 + $0xc0] sm:$0xff]  ;;  %v666_v25 = vrot.slane %v5400_v12, 7  ;;  %v1386_v2 = vrot.slane %v5573_v63, 1  ;;  %v671_v48 = vrot.slane %v5419_v28, 7 }
  0x7c   : > { %4301 = vmatprep.mubr.msk.f32.mxu1 %vm411_vm0, %v5670_v21  ;;  %4522 = vmatprep.mubr.msk.f32.mxu0 %vm411_vm0, %v5673_v32  ;;  %v1379_v27 = vrot.slane %v568_v61, 1  ;;  %v5722_v61 = vsel %vm1315_vm2, %v1376_v24, %v1377_v29  ;;  %v1382_v32 = vrot.slane %v5568_v54, 1  ;;  %v576_v24 = vld [vmem:[#allocation2 + $0x1d8] sm:$0xff]  ;;  %v674_v12 = vrot.slane %v5428_v33, 7 }
  0x7d   : > { %6583 = vst [vmem:[#allocation32_spill] sm:$0xff] %v5722_v61  ;;  %v1391_v28 = vrot.slane %v5598_v26, 1 }
  0x7e   : > { %v5734_v35 = vsel %vm1315_vm2, %v1377_v29, %v1379_v27  ;;  %v669_v29 = vrot.slane %v5404_v18, 7  ;;  %v1387_v27 = vrot.slane %v5593_v14, 1  ;;  %v673_v18 = vrot.slane %v545_v62, 7 }
  0x7f   : > { %4302 = vmatmul.mubr.msk.f32.gmra.mrb[4].mxu1 %vm411_vm0, %v5683_v23  ;;  %4523 = vmatmul.mubr.msk.f32.gmra.mrb[18].mxu0 %vm411_vm0, %v5686_v53  ;;  %v5719_v53 = vsel %vm637_vm1, %v658_v8, %v659_v45  ;;  %6584 = vst [vmem:[#allocation33_spill] sm:$0xff] %v5734_v35  ;;  %v668_v8 = vrot.slane %v541_v31, 7  ;;  %v5745_v45 = vsel %vm1315_vm2, %v1381_v58, %v1382_v32  ;;  %v1389_v31 = vrot.slane %v576_v24, 1 }
  0x80   : > { %4304 = vmatprep.mubr.msk.f32.mxu1 %vm411_vm0, %v5693_v3  ;;  %4525 = vmatprep.mubr.msk.f32.mxu0 %vm411_vm0, %v5697_v5  ;;  %v572_v5 = vld [vmem:[#allocation2 + $0x1b8] sm:$0xff]  ;;  %6585 = vst [vmem:[#allocation34_spill] sm:$0xff] %v5745_v45  ;;  %v5760_v58 = vsel %vm637_vm1, %v664_v44, %v666_v25  ;;  %v5770_v24 = vsel %vm1315_vm2, %v1386_v2, %v1387_v27  ;;  %v5774_v44 = vld [vmem:[#allocation2 + $0x208] sm:$0xff]  ;;  %v5776_v25 = vld [vmem:[#allocation2 + $0x210] sm:$0xff] }
  0x81   : > { %v1384_v6 = vrot.slane %v572_v5, 1  ;;  %6587 = vst [vmem:[#allocation36_spill] sm:$0xff] %v5770_v24  ;;  %v5786_v62 = vsel %vm1315_vm2, %v1387_v27, %v1389_v31  ;;  %v2254_v27 = vrot.slane %v5774_v44, 1  ;;  %v584_v31 = vld [vmem:[#allocation2 + $0x218] sm:$0xff] }
  0x82   : > { %6588 = vst [vmem:[#allocation37_spill] sm:$0xff] %v5786_v62 }
  0x83   : > { %4305 = vmatmul.mubr.msk.f32.gmra.mrb[6].mxu1 %vm411_vm0, %v5712_v7  ;;  %4526 = vmatmul.mubr.msk.f32.gmra.mrb[20].mxu0 %vm411_vm0, %v5715_v46  ;;  %v5763_v5 = vsel %vm1315_vm2, %v1382_v32, %v1384_v6  ;;  %v549_v46 = vld [vmem:[#allocation2 + $0x100] sm:$0xff]  ;;  %v5783_v32 = vsel %vm637_vm1, %v669_v29, %v671_v48  ;;  %v5793_v6 = vsel %vm637_vm1, %v673_v18, %v674_v12  ;;  %v2255_v48 = vrot.slane %v5776_v25, 1 }
  0x84   : > { %4307 = vmatprep.mubr.msk.f32.mxu1 %vm411_vm0, %v5719_v53  ;;  %4528 = vmatprep.mubr.msk.f32.mxu0 %vm411_vm0, %v5722_v61  ;;  %6586 = vst [vmem:[#allocation35_spill] sm:$0xff] %v5763_v5  ;;  %v1392_v61 = vrot.slane %v5614_v47, 1  ;;  %v678_v33 = vrot.slane %v549_v46, 7  ;;  %v681_v46 = vrot.slane %v5454_v40, 7 }
  0x87   : > { %4308 = vmatmul.mubr.msk.f32.gmra.mrb[8].mxu1 %vm411_vm0, %v5731_v22  ;;  %4529 = vmatmul.mubr.msk.f32.gmra.mrb[22].mxu0 %vm411_vm0, %v5734_v35  ;;  %v5767_v35 = vsel %vm637_vm1, %v668_v8, %v669_v29  ;;  %v676_v8 = vrot.slane %v5439_v36, 7  ;;  %v679_v29 = vrot.slane %v5444_v4, 7  ;;  %v5821_v36 = vsel %vm1315_vm2, %v2254_v27, %v2255_v48  ;;  %v561_v27 = vld [vmem:[#allocation2 + $0x160] sm:$0xff] }
  0x88   : > { %4310 = vmatprep.mubr.msk.f32.mxu1 %vm411_vm0, %v5741_v20  ;;  %4531 = vmatprep.mubr.msk.f32.mxu0 %vm411_vm0, %v5745_v45  ;;  %v580_v45 = vld [vmem:[#allocation2 + $0x1f8] sm:$0xff]  ;;  %6590 = vst [vmem:[#allocation39_spill] sm:$0xff] %v5821_v36 }
  0x89   : > { %v1394_v2 = vrot.slane %v580_v45, 1  ;;  %v5811_v18 = vsel %vm637_vm1, %v674_v12, %v676_v8  ;;  %v2257_v45 = vrot.slane %v584_v31, 1  ;;  %v5818_v4 = vsel %vm637_vm1, %v678_v33, %v679_v29 }
  0x8a   : > { %6589 = vst [vmem:[#allocation38_spill] sm:$0xff] %v5818_v4  ;;  %v5833_v12 = vsel %vm637_vm1, %v679_v29, %v681_v46  ;;  %v688_v8 = vrot.slane %v557_v16, 7  ;;  %v691_v16 = vrot.slane %v5495_v59, 7  ;;  %v694_v31 = vrot.slane %v5503_v0, 7  ;;  %v565_v46 = vld [vmem:[#allocation2 + $0x180] sm:$0xff] }
  0x8b   : > { %4311 = vmatmul.mubr.msk.f32.gmra.mrb[10].mxu1 %vm411_vm0, %v5760_v58  ;;  %4532 = vmatmul.mubr.msk.f32.gmra.mrb[24].mxu0 %vm411_vm0, %v5763_v5  ;;  %v5797_v5 = vsel %vm1315_vm2, %v1391_v28, %v1392_v61  ;;  %v5814_v28 = vsel %vm1315_vm2, %v1392_v61, %v1394_v2  ;;  %v5836_v33 = vsel %vm1315_vm2, %v2255_v48, %v2257_v45  ;;  %v689_v2 = vrot.slane %v5476_v52, 7  ;;  %v5862_v45 = vld [vmem:[%s6484_s3 + $0x40] sm:$0xff] }
  0x8c   : > { %4313 = vmatprep.mubr.msk.f32.mxu1 %vm411_vm0, %v5767_v35  ;;  %4534 = vmatprep.mubr.msk.f32.mxu0 %vm411_vm0, %v5770_v24  ;;  %v684_v24 = vrot.slane %v5456_v42, 7  ;;  %6591 = vst [vmem:[#allocation40_spill] sm:$0xff] %v5836_v33  ;;  %v693_v48 = vrot.slane %v561_v27, 7  ;;  %v698_v27 = vrot.slane %v565_v46, 7 }
  0x8f   : > { %4314 = vmatmul.mubr.msk.f32.gmra.mrb[12].mxu1 %vm411_vm0, %v5783_v32  ;;  %4535 = vmatmul.mubr.msk.f32.gmra.mrb[26].mxu0 %vm411_vm0, %v5786_v62  ;;  %v683_v62 = vrot.slane %v553_v30, 7  ;;  %v686_v30 = vrot.slane %v5471_v49, 7 }
  0x90   : > { %4316 = vmatprep.mubr.msk.f32.mxu1 %vm411_vm0, %v5793_v6  ;;  %4537 = vmatprep.mubr.msk.f32.mxu0 %vm411_vm0, %v5797_v5 }
  0x91   : > { %v5840_v61 = vsel %vm637_vm1, %v683_v62, %v684_v24  ;;  %v5852_v29 = vsel %vm637_vm1, %v684_v24, %v686_v30  ;;  %v5856_v62 = vsel %vm637_vm1, %v688_v8, %v689_v2  ;;  %v5872_v24 = vsel %vm637_vm1, %v689_v2, %v691_v16 }
  0x92   : > { %v696_v30 = vrot.slane %v5521_v10, 7  ;;  %v5878_v8 = vsel %vm637_vm1, %v693_v48, %v694_v31  ;;  %v701_v16 = vrot.slane %v5544_v34, 7  ;;  %v577_v34 = vld [vmem:[#allocation2 + $0x1e0] sm:$0xff] }
  0x93   : > { %4317 = vmatmul.mubr.msk.f32.gmra.mrb[14].mxu1 %vm411_vm0, %v5811_v18  ;;  %4538 = vmatmul.mubr.msk.f32.gmra.mrb[28].mxu0 %vm411_vm0, %v5814_v28 }
  0x94   : > { %4319 = vmatprep.mubr.msk.f32.mxu1 %vm411_vm0, %v5818_v4  ;;  %4540 = vmatprep.mubr.msk.f32.mxu0 %vm411_vm0, %v5821_v36  ;;  %v5891_v2 = vsel %vm637_vm1, %v694_v31, %v696_v30  ;;  %v704_v36 = vrot.slane %v5549_v39, 7  ;;  %v706_v30 = vrot.slane %v5568_v54, 7  ;;  %v709_v39 = vrot.slane %v5573_v63, 7 }
  0x95   : > { %v714_v63 = vrot.slane %v5598_v26, 7 }
  0x97   : > { %4320 = vmatmul.mubr.msk.f32.gmra.mrb[16].mxu1 %vm411_vm0, %v5833_v12  ;;  %4541 = vmatmul.mubr.msk.f32.gmra.mrb[30].mxu0 %vm411_vm0, %v5836_v33  ;;  %v699_v33 = vrot.slane %v5527_v15, 7  ;;  %v573_v15 = vld [vmem:[#allocation2 + $0x1c0] sm:$0xff] }
  0x98   : > { %4322 = vmatprep.mubr.msk.f32.mxu1 %vm411_vm0, %v5840_v61  ;;  %4545 = vmatprep.mubr.msk.f32.mxu0 %vm411_vm0, %v5670_v21 }
  0x99   : > { %v5895_v48 = vsel %vm637_vm1, %v698_v27, %v699_v33  ;;  %v5907_v31 = vsel %vm637_vm1, %v699_v33, %v701_v16  ;;  %v5923_v33 = vsel %vm637_vm1, %v704_v36, %v706_v30  ;;  %v716_v30 = vrot.slane %v5614_v47, 7 }
  0x9b   : > { %4323 = vmatmul.mubr.msk.f32.gmra.mrb[18].mxu1 %vm411_vm0, %v5852_v29  ;;  %4546 = vmatmul.mubr.msk.f32.vlgmr.msra.gmra.mrb[0].mxu0 %vm411_vm0, %v5683_v23 }
  0x9c   : > { %4594 = vmatpush3.msra.mxu0 %v5486_v57  ;;  %4325 = vmatprep.mubr.msk.f32.mxu1 %vm411_vm0, %v5856_v62  ;;  %v569_v57 = vld [vmem:[#allocation2 + $0x1a0] sm:$0xff] }
  0x9d   : > { %4548 = vmatprep.mubr.msk.f32.mxu0 %vm411_vm0, %v5693_v3  ;;  %4643 = vmatprep.subr.mxu0 %v5862_v45  ;;  %v703_v46 = vrot.slane %v569_v57, 7  ;;  %v708_v57 = vrot.slane %v573_v15, 7  ;;  %v711_v15 = vrot.slane %v5593_v14, 7 }
  0x9f   : > { %4326 = vmatmul.mubr.msk.f32.gmra.mrb[20].mxu1 %vm411_vm0, %v5872_v24  ;;  %4549 = vmatmul.mubr.msk.f32.gmra.mrb[2].mxu0 %vm411_vm0, %v5712_v7  ;;  %v5911_v27 = vsel %vm637_vm1, %v703_v46, %v704_v36  ;;  %v5927_v16 = vsel %vm637_vm1, %v708_v57, %v709_v39  ;;  %v713_v46 = vrot.slane %v577_v34, 7  ;;  %v5939_v36 = vsel %vm637_vm1, %v709_v39, %v711_v15  ;;  %v520_v57 = vld [vmem:[#allocation2 + $0x18] sm:$0xff] }
  0xa0   : > { %4328 = vmatprep.mubr.msk.f32.mxu1 %vm411_vm0, %v5878_v8  ;;  %4551 = vmatprep.mubr.msk.f32.mxu0 %vm411_vm0, %v5719_v53  ;;  %6592 = vst [vmem:[#allocation41_spill] sm:$0xff] %v5927_v16  ;;  %6593 = vst [vmem:[#allocation42_spill] sm:$0xff] %v5939_v36  ;;  %v5954_v39 = vsel %vm637_vm1, %v714_v63, %v716_v30  ;;  %v1319_v15 = vrot.slane %v520_v57, 1  ;;  %v1725_v30 = vrot.slane %v5776_v25, 7 }
  0xa1   : > { %v5943_v34 = vsel %vm637_vm1, %v713_v46, %v714_v63  ;;  %6595 = vst [vmem:[#allocation44_spill] sm:$0xff] %v5954_v39  ;;  %v6596_v46 = vrot.slane %v5224_v17, 1  ;;  %v5978_v63 = vld [vmem:[%s6484_s3 + $0x20] sm:$0xff] }
  0xa2   : > { %6594 = vst [vmem:[#allocation43_spill] sm:$0xff] %v5943_v34  ;;  %v581_v17 = vld [vmem:[#allocation2 + $0x200] sm:$0xff] }
  0xa3   : > { %4329 = vmatmul.mubr.msk.f32.gmra.mrb[22].mxu1 %vm411_vm0, %v5891_v2  ;;  %4552 = vmatmul.mubr.msk.f32.gmra.mrb[4].mxu0 %vm411_vm0, %v5731_v22 }
  0xa4   : > { %4331 = vmatprep.mubr.msk.f32.mxu1 %vm411_vm0, %v5895_v48  ;;  %4554 = vmatprep.mubr.msk.f32.mxu0 %vm411_vm0, %v5741_v20 }
  0xa7   : > { %4332 = vmatmul.mubr.msk.f32.gmra.mrb[24].mxu1 %vm411_vm0, %v5907_v31  ;;  %4555 = vmatmul.mubr.msk.f32.gmra.mrb[6].mxu0 %vm411_vm0, %v5760_v58 }
  0xa8   : > { %4334 = vmatprep.mubr.msk.f32.mxu1 %vm411_vm0, %v5911_v27  ;;  %4557 = vmatprep.mubr.msk.f32.mxu0 %vm411_vm0, %v5767_v35 }
  0xab   : > { %4335 = vmatmul.mubr.msk.f32.gmra.mrb[26].mxu1 %vm411_vm0, %v5923_v33  ;;  %4558 = vmatmul.mubr.msk.f32.gmra.mrb[8].mxu0 %vm411_vm0, %v5783_v32 }
  0xac   : > { %4337 = vmatprep.mubr.msk.f32.mxu1 %vm411_vm0, %v5927_v16  ;;  %4560 = vmatprep.mubr.msk.f32.mxu0 %vm411_vm0, %v5793_v6 }
  0xaf   : > { %4338 = vmatmul.mubr.msk.f32.gmra.mrb[28].mxu1 %vm411_vm0, %v5939_v36  ;;  %4561 = vmatmul.mubr.msk.f32.gmra.mrb[10].mxu0 %vm411_vm0, %v5811_v18 }
  0xb0   : > { %4340 = vmatprep.mubr.msk.f32.mxu1 %vm411_vm0, %v5943_v34  ;;  %4563 = vmatprep.mubr.msk.f32.mxu0 %vm411_vm0, %v5818_v4  ;;  %v1320_v4 = vsel %vm1315_vm2, %v6596_v46, %v1319_v15 }
  0xb3   : > { %4341 = vmatmul.mubr.msk.f32.gmra.mrb[30].mxu1 %vm411_vm0, %v5954_v39  ;;  %4564 = vmatmul.mubr.msk.f32.gmra.mrb[12].mxu0 %vm411_vm0, %v5833_v12 }
  0xb4   : > { %4345 = vmatprep.mubr.msk.f32.mxu1 %vm411_vm0, %v5583_v13  ;;  %4566 = vmatprep.mubr.msk.f32.mxu0 %vm411_vm0, %v5840_v61  ;;  %v6014_v13 = vld [vmem:[#allocation2 + $0x228] sm:$0xff] }
  0xb5   : > { %v2526_v46 = vrot.slane %v6014_v13, 7 }
  0xb7   : > { %4346 = vmatmul.mubr.msk.f32.vlgmr.msra.gmra.mrb[0].mxu1 %vm411_vm0, %v1320_v4  ;;  %4567 = vmatmul.mubr.msk.f32.gmra.mrb[14].mxu0 %vm411_vm0, %v5852_v29  ;;  %v1722_v4 = vrot.slane %v581_v17, 7  ;;  %v6029_v17 = vld [vmem:[#allocation2 + $0x230] sm:$0xff] }
  0xb8   : > { %4348 = vmatprep.mubr.msk.f32.mxu1 %vm411_vm0, %v5459_v43  ;;  %4569 = vmatprep.mubr.msk.f32.mxu0 %vm411_vm0, %v5856_v62  ;;  %v1723_v43 = vrot.slane %v5774_v44, 7 }
  0xb9   : > { %4394 = vmatpush3.msra.mxu1 %v5655_v38  ;;  %v6597_v38 = vld [vmem:[#allocation20_spill] sm:$0xff] }
  0xba   : > { %4693 = vmatprep.subr.mxu1 %v5978_v63  ;;  %v6026_v57 = vsel %vm637_vm1, %v1722_v4, %v1723_v43  ;;  %v6040_v4 = vsel %vm637_vm1, %v1723_v43, %v1725_v30  ;;  %v6603_v43 = vld [vmem:[#allocation25_spill] sm:$0xff]  ;;  %v6604_v30 = vld [vmem:[#allocation3_spill] sm:$0xff] }
  0xbb   : > { %4349 = vmatmul.mubr.msk.f32.gmra.mrb[2].mxu1 %vm411_vm0, %v5474_v50  ;;  %4570 = vmatmul.mubr.msk.f32.gmra.mrb[16].mxu0 %vm411_vm0, %v5872_v24  ;;  %v585_v50 = vld [vmem:[#allocation2 + $0x220] sm:$0xff]  ;;  %6598 = vst [vmem:[#allocation20_spill] sm:$0xff] %v6026_v57 }
  0xbc   : > { %4351 = vmatprep.mubr.msk.f32.mxu1 %vm411_vm0, %v5481_v56  ;;  %4572 = vmatprep.mubr.msk.f32.mxu0 %vm411_vm0, %v5878_v8  ;;  %v2525_v15 = vrot.slane %v585_v50, 7  ;;  %v2528_v50 = vrot.slane %v6029_v17, 7 }
  0xbf   : > { %4352 = vmatmul.mubr.msk.f32.gmra.mrb[4].mxu1 %vm411_vm0, %v5498_v60  ;;  %4573 = vmatmul.mubr.msk.f32.gmra.mrb[18].mxu0 %vm411_vm0, %v5891_v2 }
  0xc0   : > { %4354 = vmatprep.mubr.msk.f32.mxu1 %vm411_vm0, %v5506_v1  ;;  %4575 = vmatprep.mubr.msk.f32.mxu0 %vm411_vm0, %v5895_v48 }
  0xc3   : > { %4355 = vmatmul.mubr.msk.f32.gmra.mrb[6].mxu1 %vm411_vm0, %v5524_v11  ;;  %4576 = vmatmul.mubr.msk.f32.gmra.mrb[20].mxu0 %vm411_vm0, %v5907_v31 }
  0xc4   : > { %4357 = vmatprep.mubr.msk.f32.mxu1 %vm411_vm0, %v5530_v19  ;;  %4578 = vmatprep.mubr.msk.f32.mxu0 %vm411_vm0, %v5911_v27 }
  0xc7   : > { %4358 = vmatmul.mubr.msk.f32.gmra.mrb[8].mxu1 %vm411_vm0, %v5547_v37  ;;  %4579 = vmatmul.mubr.msk.f32.gmra.mrb[22].mxu0 %vm411_vm0, %v5923_v33 }
  0xc8   : > { %4360 = vmatprep.mubr.msk.f32.mxu1 %vm411_vm0, %v5552_v41  ;;  %4581 = vmatprep.mubr.msk.f32.mxu0 %vm411_vm0, %v5927_v16  ;;  %v6599_v16 = vld [vmem:[#allocation21_spill] sm:$0xff] }
  0xc9   : > { %6601 = vst [vmem:[#allocation21_spill] sm:$0xff] %v6040_v4 }
  0xcb   : > { %4361 = vmatmul.mubr.msk.f32.gmra.mrb[10].mxu1 %vm411_vm0, %v5571_v55  ;;  %4582 = vmatmul.mubr.msk.f32.gmra.mrb[24].mxu0 %vm411_vm0, %v5939_v36  ;;  %v6600_v36 = vld [vmem:[#allocation22_spill] sm:$0xff] }
  0xcc   : > { %4363 = vmatprep.mubr.msk.f32.mxu1 %vm411_vm0, %v6597_v38  ;;  %4584 = vmatprep.mubr.msk.f32.mxu0 %vm411_vm0, %v5943_v34  ;;  %v2527_v34 = vsel %vm637_vm1, %v2525_v15, %v2526_v46  ;;  %v6605_v15 = vld [vmem:[#allocation27_spill] sm:$0xff] }
  0xcf   : > { %4364 = vmatmul.mubr.msk.f32.gmra.mrb[12].mxu1 %vm411_vm0, %v6599_v16  ;;  %4585 = vmatmul.mubr.msk.f32.gmra.mrb[26].mxu0 %vm411_vm0, %v5954_v39  ;;  %v6602_v39 = vld [vmem:[#allocation23_spill] sm:$0xff] }
  0xd0   : > { %4366 = vmatprep.mubr.msk.f32.mxu1 %vm411_vm0, %v6600_v36  ;;  %4587 = vmatprep.mubr.msk.f32.mxu0 %vm411_vm0, %v6026_v57  ;;  %v2529_v57 = vsel %vm637_vm1, %v2526_v46, %v2528_v50  ;;  %v6608_v46 = vld [vmem:[#allocation5_spill] sm:$0xff]  ;;  %v6610_v50 = vld [vmem:[#allocation6_spill] sm:$0xff] }
  0xd3   : > { %4367 = vmatmul.mubr.msk.f32.gmra.mrb[14].mxu1 %vm411_vm0, %v5617_v51  ;;  %4588 = vmatmul.mubr.msk.f32.gmra.mrb[28].mxu0 %vm411_vm0, %v6040_v4  ;;  %v6606_v4 = vld [vmem:[#allocation4_spill] sm:$0xff] }
  0xd4   : > { %4369 = vmatprep.mubr.msk.f32.mxu1 %vm411_vm0, %v5623_v9  ;;  %4590 = vmatprep.mubr.msk.f32.mxu0 %vm411_vm0, %v2527_v34  ;;  %v6607_v34 = vld [vmem:[#allocation28_spill] sm:$0xff] }
  0xd7   : > { %4370 = vmatmul.mubr.msk.f32.gmra.mrb[16].mxu1 %vm411_vm0, %v6602_v39  ;;  %4591 = vmatmul.mubr.msk.f32.gmra.mrb[30].mxu0 %vm411_vm0, %v2529_v57  ;;  %v6609_v57 = vld [vmem:[#allocation29_spill] sm:$0xff] }
  0xd8   : > { %4372 = vmatprep.mubr.msk.f32.mxu1 %vm411_vm0, %v6603_v43  ;;  %4595 = vmatprep.mubr.msk.f32.mxu0 %vm411_vm0, %v6604_v30  ;;  %v6611_v30 = vld [vmem:[#allocation30_spill] sm:$0xff] }
  0xdb   : > { %4373 = vmatmul.mubr.msk.f32.gmra.mrb[18].mxu1 %vm411_vm0, %v6605_v15  ;;  %4596 = vmatmul.mubr.msk.f32.vlgmr.msra.gmra.mrb[0].mxu0 %vm411_vm0, %v6606_v4  ;;  %v6612_v15 = vld [vmem:[#allocation7_spill] sm:$0xff] }
  0xdc   : > { %4644 = vmatpush3.msra.mxu0 %v5862_v45  ;;  %4375 = vmatprep.mubr.msk.f32.mxu1 %vm411_vm0, %v6607_v34  ;;  %v6613_v4 = vld [vmem:[#allocation31_spill] sm:$0xff]  ;;  %v6614_v45 = vld [vmem:[#allocation8_spill] sm:$0xff] }
  0xdd   : > { %4598 = vmatprep.mubr.msk.f32.mxu0 %vm411_vm0, %v6608_v46  ;;  %v6615_v34 = vld [vmem:[#allocation32_spill] sm:$0xff]  ;;  %v6616_v46 = vld [vmem:[#allocation9_spill] sm:$0xff] }
  0xdf   : > { %4376 = vmatmul.mubr.msk.f32.gmra.mrb[20].mxu1 %vm411_vm0, %v6609_v57  ;;  %4599 = vmatmul.mubr.msk.f32.gmra.mrb[2].mxu0 %vm411_vm0, %v6610_v50  ;;  %v6617_v57 = vld [vmem:[#allocation33_spill] sm:$0xff]  ;;  %v6618_v50 = vld [vmem:[#allocation10_spill] sm:$0xff] }
  0xe0   : > { %4378 = vmatprep.mubr.msk.f32.mxu1 %vm411_vm0, %v6611_v30  ;;  %4601 = vmatprep.mubr.msk.f32.mxu0 %vm411_vm0, %v6612_v15  ;;  %v6619_v30 = vld [vmem:[#allocation34_spill] sm:$0xff]  ;;  %v6620_v15 = vld [vmem:[#allocation11_spill] sm:$0xff] }
  0xe3   : > { %4379 = vmatmul.mubr.msk.f32.gmra.mrb[22].mxu1 %vm411_vm0, %v6613_v4  ;;  %4602 = vmatmul.mubr.msk.f32.gmra.mrb[4].mxu0 %vm411_vm0, %v6614_v45  ;;  %v6621_v4 = vld [vmem:[#allocation35_spill] sm:$0xff]  ;;  %v6622_v45 = vld [vmem:[#allocation12_spill] sm:$0xff] }
  0xe4   : > { %4381 = vmatprep.mubr.msk.f32.mxu1 %vm411_vm0, %v6615_v34  ;;  %4604 = vmatprep.mubr.msk.f32.mxu0 %vm411_vm0, %v6616_v46  ;;  %v6623_v34 = vld [vmem:[#allocation36_spill] sm:$0xff]  ;;  %v6624_v46 = vld [vmem:[#allocation13_spill] sm:$0xff] }
  0xe7   : > { %4382 = vmatmul.mubr.msk.f32.gmra.mrb[24].mxu1 %vm411_vm0, %v6617_v57  ;;  %4605 = vmatmul.mubr.msk.f32.gmra.mrb[6].mxu0 %vm411_vm0, %v6618_v50  ;;  %v6625_v57 = vld [vmem:[#allocation37_spill] sm:$0xff]  ;;  %v6626_v50 = vld [vmem:[#allocation14_spill] sm:$0xff] }
  0xe8   : > { %4384 = vmatprep.mubr.msk.f32.mxu1 %vm411_vm0, %v6619_v30  ;;  %4607 = vmatprep.mubr.msk.f32.mxu0 %vm411_vm0, %v6620_v15  ;;  %v6627_v15 = vld [vmem:[#allocation15_spill] sm:$0xff] }
  0xeb   : > { %4385 = vmatmul.mubr.msk.f32.gmra.mrb[26].mxu1 %vm411_vm0, %v6621_v4  ;;  %4608 = vmatmul.mubr.msk.f32.gmra.mrb[8].mxu0 %vm411_vm0, %v6622_v45  ;;  %v6628_v45 = vld [vmem:[#allocation24_spill] sm:$0xff] }
  0xec   : > { %4387 = vmatprep.mubr.msk.f32.mxu1 %vm411_vm0, %v6623_v34  ;;  %4610 = vmatprep.mubr.msk.f32.mxu0 %vm411_vm0, %v6624_v46  ;;  %v6629_v46 = vld [vmem:[#allocation26_spill] sm:$0xff] }
  0xef   : > { %4388 = vmatmul.mubr.msk.f32.gmra.mrb[28].mxu1 %vm411_vm0, %v6625_v57  ;;  %4611 = vmatmul.mubr.msk.f32.gmra.mrb[10].mxu0 %vm411_vm0, %v6626_v50 }
  0xf0   : > { %4390 = vmatprep.mubr.msk.f32.mxu1 %vm411_vm0, %v5797_v5  ;;  %4613 = vmatprep.mubr.msk.f32.mxu0 %vm411_vm0, %v6627_v15 }
  0xf3   : > { %4391 = vmatmul.mubr.msk.f32.gmra.mrb[30].mxu1 %vm411_vm0, %v5814_v28  ;;  %4614 = vmatmul.mubr.msk.f32.gmra.mrb[12].mxu0 %vm411_vm0, %v5454_v40  ;;  %v6630_v40 = vld [vmem:[#allocation16_spill] sm:$0xff] }
  0xf4   : > { %4395 = vmatprep.mubr.msk.f32.mxu1 %vm411_vm0, %v6628_v45  ;;  %4616 = vmatprep.mubr.msk.f32.mxu0 %vm411_vm0, %v5456_v42 }
  0xf7   : > { %4396 = vmatmul.mubr.msk.f32.vlgmr.msra.gmra.mrb[0].mxu1 %vm411_vm0, %v6629_v46  ;;  %4617 = vmatmul.mubr.msk.f32.gmra.mrb[14].mxu0 %vm411_vm0, %v5471_v49 }
  0xf8   : > { %4398 = vmatprep.mubr.msk.f32.mxu1 %vm411_vm0, %v5670_v21  ;;  %4619 = vmatprep.mubr.msk.f32.mxu0 %vm411_vm0, %v5476_v52  ;;  %v6631_v21 = vld [vmem:[#allocation17_spill] sm:$0xff] }
  0xf9   : > { %4694 = vmatpush3.msra.mxu1 %v5978_v63 }
  0xfb   : > { %4399 = vmatmul.mubr.msk.f32.gmra.mrb[2].mxu1 %vm411_vm0, %v5683_v23  ;;  %4620 = vmatmul.mubr.msk.f32.gmra.mrb[16].mxu0 %vm411_vm0, %v5495_v59  ;;  %v6632_v23 = vld [vmem:[#allocation18_spill] sm:$0xff] }
  0xfc   : > { %4401 = vmatprep.mubr.msk.f32.mxu1 %vm411_vm0, %v5693_v3  ;;  %4622 = vmatprep.mubr.msk.f32.mxu0 %vm411_vm0, %v5503_v0  ;;  %v6634_v3 = vld [vmem:[#allocation38_spill] sm:$0xff] }
  0xff   : > { %4402 = vmatmul.mubr.msk.f32.gmra.mrb[4].mxu1 %vm411_vm0, %v5712_v7  ;;  %4623 = vmatmul.mubr.msk.f32.gmra.mrb[18].mxu0 %vm411_vm0, %v5521_v10  ;;  %v6649_v7 = vld [vmem:[#allocation40_spill] sm:$0xff] }
 0x100   : > { %4404 = vmatprep.mubr.msk.f32.mxu1 %vm411_vm0, %v5719_v53  ;;  %4625 = vmatprep.mubr.msk.f32.mxu0 %vm411_vm0, %v6630_v40  ;;  %v6633_v53 = vld [vmem:[#allocation19_spill] sm:$0xff] }
 0x103   : > { %4405 = vmatmul.mubr.msk.f32.gmra.mrb[6].mxu1 %vm411_vm0, %v5731_v22  ;;  %4626 = vmatmul.mubr.msk.f32.gmra.mrb[20].mxu0 %vm411_vm0, %v6631_v21 }
 0x104   : > { %4407 = vmatprep.mubr.msk.f32.mxu1 %vm411_vm0, %v5741_v20  ;;  %4628 = vmatprep.mubr.msk.f32.mxu0 %vm411_vm0, %v6632_v23 }
 0x107   : > { %4408 = vmatmul.mubr.msk.f32.gmra.mrb[8].mxu1 %vm411_vm0, %v5760_v58  ;;  %4629 = vmatmul.mubr.msk.f32.gmra.mrb[22].mxu0 %vm411_vm0, %v5568_v54 }
 0x108   : > { %4410 = vmatprep.mubr.msk.f32.mxu1 %vm411_vm0, %v5767_v35  ;;  %4631 = vmatprep.mubr.msk.f32.mxu0 %vm411_vm0, %v6633_v53 }
 0x10b   : > { %4411 = vmatmul.mubr.msk.f32.gmra.mrb[10].mxu1 %vm411_vm0, %v5783_v32  ;;  %4632 = vmatmul.mubr.msk.f32.gmra.mrb[24].mxu0 %vm411_vm0, %v5593_v14 }
 0x10c   : > { %4413 = vmatprep.mubr.msk.f32.mxu1 %vm411_vm0, %v5793_v6  ;;  %4634 = vmatprep.mubr.msk.f32.mxu0 %vm411_vm0, %v5598_v26 }
 0x10f   : > { %4414 = vmatmul.mubr.msk.f32.gmra.mrb[12].mxu1 %vm411_vm0, %v5811_v18  ;;  %4635 = vmatmul.mubr.msk.f32.gmra.mrb[26].mxu0 %vm411_vm0, %v5614_v47 }
 0x110   : > { %4416 = vmatprep.mubr.msk.f32.mxu1 %vm411_vm0, %v6634_v3  ;;  %4637 = vmatprep.mubr.msk.f32.mxu0 %vm411_vm0, %v5774_v44 }
 0x113   : > { %4417 = vmatmul.mubr.msk.f32.gmra.mrb[14].mxu1 %vm411_vm0, %v5833_v12  ;;  %4638 = vmatmul.mubr.msk.f32.gmra.mrb[28].mxu0 %vm411_vm0, %v5776_v25 }
 0x114   : > { %4419 = vmatprep.mubr.msk.f32.mxu1 %vm411_vm0, %v5840_v61  ;;  %4640 = vmatprep.mubr.msk.f32.mxu0 %vm411_vm0, %v6014_v13 }
 0x117   : > { %4420 = vmatmul.mubr.msk.f32.gmra.mrb[16].mxu1 %vm411_vm0, %v5852_v29  ;;  %4641 = vmatmul.mubr.msk.f32.gmra.mrb[30].mxu0 %vm411_vm0, %v6029_v17 }
 0x118   : > { %4422 = vmatprep.mubr.msk.f32.mxu1 %vm411_vm0, %v5856_v62  ;;  %4645 = vmatprep.mubr.msk.f32.mxu0 %vm411_vm0, %v5481_v56  ;;  %v6635_v56 = vld [vmem:[#allocation41_spill] sm:$0xff] }
 0x11b   : > { %4423 = vmatmul.mubr.msk.f32.gmra.mrb[18].mxu1 %vm411_vm0, %v5872_v24  ;;  %4646 = vmatmul.mubr.msk.f32.vlgmr.msra.gmra.mrb[0].mxu0 %vm411_vm0, %v5498_v60  ;;  %v6636_v60 = vld [vmem:[#allocation42_spill] sm:$0xff] }
 0x11c   : > { %4425 = vmatprep.mubr.msk.f32.mxu1 %vm411_vm0, %v5878_v8  ;;  %4648 = vmatprep.mubr.msk.f32.mxu0 %vm411_vm0, %v5506_v1  ;;  %v6637_v1 = vld [vmem:[#allocation43_spill] sm:$0xff] }
 0x11f   : > { %4426 = vmatmul.mubr.msk.f32.gmra.mrb[20].mxu1 %vm411_vm0, %v5891_v2  ;;  %4649 = vmatmul.mubr.msk.f32.gmra.mrb[2].mxu0 %vm411_vm0, %v5524_v11  ;;  %v6638_v11 = vld [vmem:[#allocation44_spill] sm:$0xff] }
 0x120   : > { %4428 = vmatprep.mubr.msk.f32.mxu1 %vm411_vm0, %v5895_v48  ;;  %4651 = vmatprep.mubr.msk.f32.mxu0 %vm411_vm0, %v5530_v19  ;;  %v6639_v19 = vld [vmem:[#allocation20_spill] sm:$0xff] }
 0x123   : > { %4429 = vmatmul.mubr.msk.f32.gmra.mrb[22].mxu1 %vm411_vm0, %v5907_v31  ;;  %4652 = vmatmul.mubr.msk.f32.gmra.mrb[4].mxu0 %vm411_vm0, %v5547_v37  ;;  %v6640_v37 = vld [vmem:[#allocation21_spill] sm:$0xff] }
 0x124   : > { %4431 = vmatprep.mubr.msk.f32.mxu1 %vm411_vm0, %v5911_v27  ;;  %4654 = vmatprep.mubr.msk.f32.mxu0 %vm411_vm0, %v5552_v41  ;;  %v6641_v41 = vld [vmem:[#allocation27_spill] sm:$0xff] }
 0x127   : > { %4432 = vmatmul.mubr.msk.f32.gmra.mrb[24].mxu1 %vm411_vm0, %v5923_v33  ;;  %4655 = vmatmul.mubr.msk.f32.gmra.mrb[6].mxu0 %vm411_vm0, %v5571_v55  ;;  %v6642_v55 = vld [vmem:[#allocation28_spill] sm:$0xff] }
 0x128   : > { %4434 = vmatprep.mubr.msk.f32.mxu1 %vm411_vm0, %v6635_v56  ;;  %4657 = vmatprep.mubr.msk.f32.mxu0 %vm411_vm0, %v6597_v38 }
 0x12b   : > { %4435 = vmatmul.mubr.msk.f32.gmra.mrb[26].mxu1 %vm411_vm0, %v6636_v60  ;;  %4658 = vmatmul.mubr.msk.f32.gmra.mrb[8].mxu0 %vm411_vm0, %v6599_v16 }
 0x12c   : > { %4437 = vmatprep.mubr.msk.f32.mxu1 %vm411_vm0, %v6637_v1  ;;  %4660 = vmatprep.mubr.msk.f32.mxu0 %vm411_vm0, %v6600_v36 }
 0x12f   : > { %4438 = vmatmul.mubr.msk.f32.gmra.mrb[28].mxu1 %vm411_vm0, %v6638_v11  ;;  %4661 = vmatmul.mubr.msk.f32.gmra.mrb[10].mxu0 %vm411_vm0, %v5617_v51  ;;  %v6643_v51 = vld [vmem:[#allocation29_spill] sm:$0xff] }
 0x130   : > { %4440 = vmatprep.mubr.msk.f32.mxu1 %vm411_vm0, %v6639_v19  ;;  %4663 = vmatprep.mubr.msk.f32.mxu0 %vm411_vm0, %v5623_v9 }
 0x133   : > { %4441 = vmatmul.mubr.msk.f32.gmra.mrb[30].mxu1 %vm411_vm0, %v6640_v37  ;;  %4664 = vmatmul.mubr.msk.f32.gmra.mrb[12].mxu0 %vm411_vm0, %v6602_v39 }
 0x134   : > { %4469 = vmatprep.mubr.msk.f32.mxu1 %vm411_vm0, %v5456_v42  ;;  %4666 = vmatprep.mubr.msk.f32.mxu0 %vm411_vm0, %v6603_v43  ;;  %v6644_v42 = vld [vmem:[#allocation30_spill] sm:$0xff] }
 0x137   : > { %4470 = vmatmul.mubr.msk.f32.vlgmr.msra.gmra.mrb[16].mxu1 %vm411_vm0, %v5471_v49  ;;  %4667 = vmatmul.mubr.msk.f32.gmra.mrb[14].mxu0 %vm411_vm0, %v6641_v41  ;;  %v6645_v49 = vld [vmem:[#allocation31_spill] sm:$0xff] }
 0x138   : > { %4472 = vmatprep.mubr.msk.f32.mxu1 %vm411_vm0, %v5476_v52  ;;  %4669 = vmatprep.mubr.msk.f32.mxu0 %vm411_vm0, %v6642_v55  ;;  %v6646_v52 = vld [vmem:[#allocation32_spill] sm:$0xff] }
 0x13b   : > { %4473 = vmatmul.mubr.msk.f32.gmra.mrb[18].mxu1 %vm411_vm0, %v5495_v59  ;;  %4670 = vmatmul.mubr.msk.f32.gmra.mrb[16].mxu0 %vm411_vm0, %v6643_v51  ;;  %v6647_v59 = vld [vmem:[#allocation33_spill] sm:$0xff] }
 0x13c   : > { %4475 = vmatprep.mubr.msk.f32.mxu1 %vm411_vm0, %v5503_v0  ;;  %4672 = vmatprep.mubr.msk.f32.mxu0 %vm411_vm0, %v6644_v42  ;;  %v3057_v0 = vrot.slane %v6014_v13, 1 }
 0x13f   : > { %4476 = vmatmul.mubr.msk.f32.gmra.mrb[20].mxu1 %vm411_vm0, %v5521_v10  ;;  %4673 = vmatmul.mubr.msk.f32.gmra.mrb[18].mxu0 %vm411_vm0, %v6645_v49  ;;  %v3058_v10 = vrot.slane %v6029_v17, 1 }
 0x140   : > { %4478 = vmatprep.mubr.msk.f32.mxu1 %vm411_vm0, %v6630_v40  ;;  %4675 = vmatprep.mubr.msk.f32.mxu0 %vm411_vm0, %v6646_v52 }
 0x141   : > { %v3059_v9 = vsel %vm1315_vm2, %v3057_v0, %v3058_v10 }
 0x143   : > { %4479 = vmatmul.mubr.msk.f32.gmra.mrb[22].mxu1 %vm411_vm0, %v6631_v21  ;;  %4676 = vmatmul.mubr.msk.f32.gmra.mrb[20].mxu0 %vm411_vm0, %v6647_v59 }
 0x144   : > { %4481 = vmatprep.mubr.msk.f32.mxu1 %vm411_vm0, %v6632_v23  ;;  %4678 = vmatprep.mubr.msk.f32.mxu0 %vm411_vm0, %v6619_v30 }
 0x147   : > { %4482 = vmatmul.mubr.msk.f32.gmra.mrb[24].mxu1 %vm411_vm0, %v5568_v54  ;;  %4679 = vmatmul.mubr.msk.f32.gmra.mrb[22].mxu0 %vm411_vm0, %v6621_v4  ;;  %v588_v54 = vld [vmem:[#allocation2 + $0x238] sm:$0xff] }
 0x148   : > { %4484 = vmatprep.mubr.msk.f32.mxu1 %vm411_vm0, %v6633_v53  ;;  %4681 = vmatprep.mubr.msk.f32.mxu0 %vm411_vm0, %v6623_v34 }
 0x14b   : > { %4485 = vmatmul.mubr.msk.f32.gmra.mrb[26].mxu1 %vm411_vm0, %v5593_v14  ;;  %4682 = vmatmul.mubr.msk.f32.gmra.mrb[24].mxu0 %vm411_vm0, %v6625_v57  ;;  %v6648_v14 = vld [vmem:[#allocation39_spill] sm:$0xff] }
 0x14c   : > { %4487 = vmatprep.mubr.msk.f32.mxu1 %vm411_vm0, %v5598_v26  ;;  %4684 = vmatprep.mubr.msk.f32.mxu0 %vm411_vm0, %v5797_v5  ;;  %v3060_v26 = vrot.slane %v588_v54, 1 }
 0x14f   : > { %4488 = vmatmul.mubr.msk.f32.gmra.mrb[28].mxu1 %vm411_vm0, %v5614_v47  ;;  %4685 = vmatmul.mubr.msk.f32.gmra.mrb[26].mxu0 %vm411_vm0, %v5814_v28  ;;  %v3061_v47 = vsel %vm1315_vm2, %v3058_v10, %v3060_v26 }
 0x150   : > { %4490 = vmatprep.mubr.msk.f32.mxu1 %vm411_vm0, %v5774_v44  ;;  %4687 = vmatprep.mubr.msk.f32.mxu0 %vm411_vm0, %v6648_v14 }
 0x153   : > { %4491 = vmatmul.mubr.msk.f32.gmra.mrb[30].mxu1 %vm411_vm0, %v5776_v25  ;;  %4688 = vmatmul.mubr.msk.f32.gmra.mrb[28].mxu0 %vm411_vm0, %v6649_v7 }
 0x154   : > { %4690 = vmatprep.mubr.msk.f32.mxu0 %vm411_vm0, %v3059_v9 }
 0x157   : > { %4691 = vmatmul.mubr.msk.f32.gmra.mrb[30].mxu0 %vm411_vm0, %v3061_v47 }
 0x1ca   : > { %v4397_v22 = vpop.f32.mrb[0].mxu1 }
 0x1cb   : > { %v1799_v35 = vpop.f32.mrb[1].mxu1 }
 0x1ce   : > { %v4400_v20 = vpop.f32.mrb[2].mxu1 }
 0x1cf   : > { %v1809_v58 = vpop.f32.mrb[3].mxu1 }
 0x1d2   : > { %v4403_v5 = vpop.f32.mrb[4].mxu1 }
 0x1d3   : > { %v1819_v44 = vpop.f32.mrb[5].mxu1 }
 0x1d6   : > { %v4406_v32 = vpop.f32.mrb[6].mxu1 }
 0x1d7   : > { %v1829_v6 = vpop.f32.mrb[7].mxu1 }
 0x1da   : > { %v6311_v18 = vpop.f32.mrb[8].mxu1 }
 0x1db   : > { %v6313_v25 = vpop.f32.mrb[9].mxu1 }
 0x1de   : > { %v6315_v28 = vpop.f32.mrb[10].mxu1 }
 0x1df   : > { %v6317_v12 = vpop.f32.mrb[11].mxu1 }
 0x1e2   : > { %v6319_v61 = vpop.f32.mrb[12].mxu1 }
 0x1e3   : > { %v6321_v29 = vpop.f32.mrb[13].mxu1 }
 0x1e6   : > { %v6323_v62 = vpop.f32.mrb[14].mxu1 }
 0x1e7   : > { %v6325_v24 = vpop.f32.mrb[15].mxu1 }
 0x1ee   : > { %v4647_v8 = vpop.f32.mrb[0].mxu0 }
 0x1ef   : > { %v4695_v2 = vadd.f32 %v4647_v8, %v4397_v22  ;;  %v3134_v48 = vpop.f32.mrb[1].mxu0 }
 0x1f0   : > { %v4696_v31 = vadd.f32 %v3134_v48, %v1799_v35 }
 0x1f1   : > { %3326 = vst.msk [vmem:[%s6332_s9 + $0x8] sm:$0xff] %vm411_vm0, %v4695_v2  ;;  %v3358_v27 = vsel %vm411_vm0, %v4695_v2, 0.0  ;;  %v3429_v33 = vmul.f32 %v4695_v2, %v4695_v2 }
 0x1f2   : > { %3325 = vst.msk [vmem:[%s6332_s9] sm:$0xff] %vm411_vm0, %v4696_v31  ;;  %v3357_v16 = vsel %vm411_vm0, %v4696_v31, 0.0  ;;  %v3428_v36 = vmul.f32 %v4696_v31, %v4696_v31  ;;  %v4650_v39 = vpop.f32.mrb[2].mxu0 }
 0x1f3   : > { %v3461_v63 = vsel %vm411_vm0, %v3429_v33, 0.0  ;;  %v3359_v13 = vadd.f32 %v3358_v27, %v3357_v16  ;;  %v4697_v38 = vadd.f32 %v4650_v39, %v4400_v20  ;;  %v3144_v17 = vpop.f32.mrb[3].mxu0 }
 0x1f4   : > { %v3460_v43 = vsel %vm411_vm0, %v3428_v36, 0.0  ;;  %v4698_v34 = vadd.f32 %v3144_v17, %v1809_v58 }
 0x1f5   : > { %v3462_v57 = vadd.f32 %v3461_v63, %v3460_v43  ;;  %3328 = vst.msk [vmem:[%s6332_s9 + $0x18] sm:$0xff] %vm411_vm0, %v4697_v38  ;;  %v3431_v30 = vmul.f32 %v4697_v38, %v4697_v38  ;;  %v3362_v21 = vsel %vm411_vm0, %v4697_v38, 0.0 }
 0x1f6   : > { %3327 = vst.msk [vmem:[%s6332_s9 + $0x10] sm:$0xff] %vm411_vm0, %v4698_v34  ;;  %v3360_v4 = vsel %vm411_vm0, %v4698_v34, 0.0  ;;  %v3430_v50 = vmul.f32 %v4698_v34, %v4698_v34  ;;  %v4653_v15 = vpop.f32.mrb[4].mxu0 }
 0x1f7   : > { %v3361_v45 = vadd.f32 %v3360_v4, %v3359_v13  ;;  %v4699_v46 = vadd.f32 %v4653_v15, %v4403_v5  ;;  %v3154_v40 = vpop.f32.mrb[5].mxu0  ;;  %v3465_v60 = vsel %vm411_vm0, %v3431_v30, 0.0 }
 0x1f8   : > { %v3463_v23 = vsel %vm411_vm0, %v3430_v50, 0.0  ;;  %v4700_v53 = vadd.f32 %v3154_v40, %v1819_v44 }
 0x1f9   : > { %v3464_v3 = vadd.f32 %v3463_v23, %v3462_v57  ;;  %3330 = vst.msk [vmem:[%s6332_s9 + $0x28] sm:$0xff] %vm411_vm0, %v4699_v46  ;;  %v3363_v56 = vadd.f32 %v3362_v21, %v3361_v45  ;;  %v3433_v1 = vmul.f32 %v4699_v46, %v4699_v46  ;;  %v3366_v49 = vsel %vm411_vm0, %v4699_v46, 0.0 }
 0x1fa   : > { %3329 = vst.msk [vmem:[%s6332_s9 + $0x20] sm:$0xff] %vm411_vm0, %v4700_v53  ;;  %v3364_v11 = vsel %vm411_vm0, %v4700_v53, 0.0  ;;  %v3432_v19 = vmul.f32 %v4700_v53, %v4700_v53  ;;  %v4656_v37 = vpop.f32.mrb[6].mxu0 }
 0x1fb   : > { %v3365_v41 = vadd.f32 %v3364_v11, %v3363_v56  ;;  %v3466_v55 = vadd.f32 %v3465_v60, %v3464_v3  ;;  %v4701_v51 = vadd.f32 %v4656_v37, %v4406_v32  ;;  %v3164_v42 = vpop.f32.mrb[7].mxu0  ;;  %v3469_v54 = vsel %vm411_vm0, %v3433_v1, 0.0 }
 0x1fc   : > { %v3467_v52 = vsel %vm411_vm0, %v3432_v19, 0.0  ;;  %v4702_v59 = vadd.f32 %v3164_v42, %v1829_v6 }
 0x1fd   : > { %v3468_v0 = vadd.f32 %v3467_v52, %v3466_v55  ;;  %3332 = vst.msk [vmem:[%s6332_s9 + $0x38] sm:$0xff] %vm411_vm0, %v4701_v51  ;;  %v3367_v10 = vadd.f32 %v3366_v49, %v3365_v41  ;;  %v3435_v14 = vmul.f32 %v4701_v51, %v4701_v51  ;;  %v3370_v58 = vsel %vm411_vm0, %v4701_v51, 0.0 }
 0x1fe   : > { %3331 = vst.msk [vmem:[%s6332_s9 + $0x30] sm:$0xff] %vm411_vm0, %v4702_v59  ;;  %v3368_v26 = vsel %vm411_vm0, %v4702_v59, 0.0  ;;  %v3434_v9 = vmul.f32 %v4702_v59, %v4702_v59  ;;  %v4659_v7 = vpop.f32.mrb[8].mxu0 }
 0x1ff   : > { %v3369_v47 = vadd.f32 %v3368_v26, %v3367_v10  ;;  %v3470_v22 = vadd.f32 %v3469_v54, %v3468_v0  ;;  %v4703_v35 = vadd.f32 %v4659_v7, %v6311_v18  ;;  %v3174_v20 = vpop.f32.mrb[9].mxu0  ;;  %v3473_v8 = vsel %vm411_vm0, %v3435_v14, 0.0 }
 0x200   : > { %v3471_v5 = vsel %vm411_vm0, %v3434_v9, 0.0  ;;  %v4704_v44 = vadd.f32 %v3174_v20, %v6313_v25 }
 0x201   : > { %v3472_v32 = vadd.f32 %v3471_v5, %v3470_v22  ;;  %3334 = vst.msk [vmem:[%s6332_s9 + $0x48] sm:$0xff] %vm411_vm0, %v4703_v35  ;;  %v3371_v6 = vadd.f32 %v3370_v58, %v3369_v47  ;;  %v3437_v2 = vmul.f32 %v4703_v35, %v4703_v35  ;;  %v3374_v36 = vsel %vm411_vm0, %v4703_v35, 0.0 }
 0x202   : > { %3333 = vst.msk [vmem:[%s6332_s9 + $0x40] sm:$0xff] %vm411_vm0, %v4704_v44  ;;  %v3372_v18 = vsel %vm411_vm0, %v4704_v44, 0.0  ;;  %v3436_v48 = vmul.f32 %v4704_v44, %v4704_v44  ;;  %v4662_v31 = vpop.f32.mrb[10].mxu0 }
 0x203   : > { %v3373_v27 = vadd.f32 %v3372_v18, %v3371_v6  ;;  %v3474_v33 = vadd.f32 %v3473_v8, %v3472_v32  ;;  %v4705_v16 = vadd.f32 %v4662_v31, %v6315_v28  ;;  %v3184_v25 = vpop.f32.mrb[11].mxu0  ;;  %v3477_v17 = vsel %vm411_vm0, %v3437_v2, 0.0 }
 0x204   : > { %v3475_v39 = vsel %vm411_vm0, %v3436_v48, 0.0  ;;  %v4706_v63 = vadd.f32 %v3184_v25, %v6317_v12 }
 0x205   : > { %v3476_v13 = vadd.f32 %v3475_v39, %v3474_v33  ;;  %3336 = vst.msk [vmem:[%s6332_s9 + $0x58] sm:$0xff] %vm411_vm0, %v4705_v16  ;;  %v3375_v38 = vadd.f32 %v3374_v36, %v3373_v27  ;;  %v3439_v43 = vmul.f32 %v4705_v16, %v4705_v16  ;;  %v3378_v15 = vsel %vm411_vm0, %v4705_v16, 0.0 }
 0x206   : > { %3335 = vst.msk [vmem:[%s6332_s9 + $0x50] sm:$0xff] %vm411_vm0, %v4706_v63  ;;  %v3376_v28 = vsel %vm411_vm0, %v4706_v63, 0.0  ;;  %v3438_v34 = vmul.f32 %v4706_v63, %v4706_v63  ;;  %v4665_v57 = vpop.f32.mrb[12].mxu0 }
 0x207   : > { %v3377_v30 = vadd.f32 %v3376_v28, %v3375_v38  ;;  %v3478_v4 = vadd.f32 %v3477_v17, %v3476_v13  ;;  %v4707_v50 = vadd.f32 %v4665_v57, %v6319_v61  ;;  %v3194_v12 = vpop.f32.mrb[13].mxu0  ;;  %v3481_v23 = vsel %vm411_vm0, %v3439_v43, 0.0 }
 0x208   : > { %v3479_v45 = vsel %vm411_vm0, %v3438_v34, 0.0  ;;  %v4708_v46 = vadd.f32 %v3194_v12, %v6321_v29 }
 0x209   : > { %v3480_v40 = vadd.f32 %v3479_v45, %v3478_v4  ;;  %3338 = vst.msk [vmem:[%s6332_s9 + $0x68] sm:$0xff] %vm411_vm0, %v4707_v50  ;;  %v3379_v21 = vadd.f32 %v3378_v15, %v3377_v30  ;;  %v3441_v53 = vmul.f32 %v4707_v50, %v4707_v50  ;;  %v3382_v41 = vsel %vm411_vm0, %v4707_v50, 0.0 }
 0x20a   : > { %3337 = vst.msk [vmem:[%s6332_s9 + $0x60] sm:$0xff] %vm411_vm0, %v4708_v46  ;;  %v3380_v3 = vsel %vm411_vm0, %v4708_v46, 0.0  ;;  %v3440_v61 = vmul.f32 %v4708_v46, %v4708_v46  ;;  %v4471_v56 = vpop.f32.mrb[16].mxu1  ;;  %v4668_v60 = vpop.f32.mrb[14].mxu0 }
 0x20b   : > { %v3381_v1 = vadd.f32 %v3380_v3, %v3379_v21  ;;  %v3482_v11 = vadd.f32 %v3481_v23, %v3480_v40  ;;  %v4709_v29 = vadd.f32 %v4668_v60, %v6323_v62  ;;  %v2142_v19 = vpop.f32.mrb[17].mxu1  ;;  %v3204_v37 = vpop.f32.mrb[15].mxu0  ;;  %v3485_v52 = vsel %vm411_vm0, %v3441_v53, 0.0 }
 0x20c   : > { %v3483_v55 = vsel %vm411_vm0, %v3440_v61, 0.0  ;;  %v4710_v51 = vadd.f32 %v3204_v37, %v6325_v24 }
 0x20d   : > { %v3484_v42 = vadd.f32 %v3483_v55, %v3482_v11  ;;  %3340 = vst.msk [vmem:[%s6332_s9 + $0x78] sm:$0xff] %vm411_vm0, %v4709_v29  ;;  %v3383_v49 = vadd.f32 %v3382_v41, %v3381_v1  ;;  %v3443_v59 = vmul.f32 %v4709_v29, %v4709_v29  ;;  %v3386_v47 = vsel %vm411_vm0, %v4709_v29, 0.0 }
 0x20e   : > { %3339 = vst.msk [vmem:[%s6332_s9 + $0x70] sm:$0xff] %vm411_vm0, %v4710_v51  ;;  %v3384_v62 = vsel %vm411_vm0, %v4710_v51, 0.0  ;;  %v3442_v0 = vmul.f32 %v4710_v51, %v4710_v51  ;;  %v4474_v10 = vpop.f32.mrb[18].mxu1  ;;  %v4671_v54 = vpop.f32.mrb[16].mxu0 }
 0x20f   : > { %v3385_v14 = vadd.f32 %v3384_v62, %v3383_v49  ;;  %v3486_v26 = vadd.f32 %v3485_v52, %v3484_v42  ;;  %v4711_v9 = vadd.f32 %v4671_v54, %v4471_v56  ;;  %v2152_v24 = vpop.f32.mrb[19].mxu1  ;;  %v3214_v7 = vpop.f32.mrb[17].mxu0  ;;  %v3489_v5 = vsel %vm411_vm0, %v3443_v59, 0.0 }
 0x210   : > { %v3487_v22 = vsel %vm411_vm0, %v3442_v0, 0.0  ;;  %v4712_v35 = vadd.f32 %v3214_v7, %v2142_v19 }
 0x211   : > { %v3488_v20 = vadd.f32 %v3487_v22, %v3486_v26  ;;  %3342 = vst.msk [vmem:[%s6332_s9 + $0x88] sm:$0xff] %vm411_vm0, %v4711_v9  ;;  %v3387_v58 = vadd.f32 %v3386_v47, %v3385_v14  ;;  %v3445_v44 = vmul.f32 %v4711_v9, %v4711_v9  ;;  %v3390_v16 = vsel %vm411_vm0, %v4711_v9, 0.0 }
 0x212   : > { %3341 = vst.msk [vmem:[%s6332_s9 + $0x80] sm:$0xff] %vm411_vm0, %v4712_v35  ;;  %v3388_v32 = vsel %vm411_vm0, %v4712_v35, 0.0  ;;  %v3444_v6 = vmul.f32 %v4712_v35, %v4712_v35  ;;  %v4477_v8 = vpop.f32.mrb[20].mxu1  ;;  %v4674_v2 = vpop.f32.mrb[18].mxu0 }
 0x213   : > { %v3389_v18 = vadd.f32 %v3388_v32, %v3387_v58  ;;  %v3490_v48 = vadd.f32 %v3489_v5, %v3488_v20  ;;  %v4713_v31 = vadd.f32 %v4674_v2, %v4474_v10  ;;  %v2162_v27 = vpop.f32.mrb[21].mxu1  ;;  %v3224_v33 = vpop.f32.mrb[19].mxu0  ;;  %v3493_v13 = vsel %vm411_vm0, %v3445_v44, 0.0 }
 0x214   : > { %v3491_v25 = vsel %vm411_vm0, %v3444_v6, 0.0  ;;  %v4714_v36 = vadd.f32 %v3224_v33, %v2152_v24 }
 0x215   : > { %v3492_v39 = vadd.f32 %v3491_v25, %v3490_v48  ;;  %3344 = vst.msk [vmem:[%s6332_s9 + $0x98] sm:$0xff] %vm411_vm0, %v4713_v31  ;;  %v3391_v63 = vadd.f32 %v3390_v16, %v3389_v18  ;;  %v3447_v38 = vmul.f32 %v4713_v31, %v4713_v31  ;;  %v3394_v15 = vsel %vm411_vm0, %v4713_v31, 0.0 }
 0x216   : > { %3343 = vst.msk [vmem:[%s6332_s9 + $0x90] sm:$0xff] %vm411_vm0, %v4714_v36  ;;  %v3392_v17 = vsel %vm411_vm0, %v4714_v36, 0.0  ;;  %v3446_v43 = vmul.f32 %v4714_v36, %v4714_v36  ;;  %v4480_v28 = vpop.f32.mrb[22].mxu1  ;;  %v4677_v34 = vpop.f32.mrb[20].mxu0 }
 0x217   : > { %v3393_v57 = vadd.f32 %v3392_v17, %v3391_v63  ;;  %v3494_v30 = vadd.f32 %v3493_v13, %v3492_v39  ;;  %v4715_v4 = vadd.f32 %v4677_v34, %v4477_v8  ;;  %v2172_v50 = vpop.f32.mrb[23].mxu1  ;;  %v3234_v12 = vpop.f32.mrb[21].mxu0  ;;  %v3497_v23 = vsel %vm411_vm0, %v3447_v38, 0.0 }
 0x218   : > { %v3495_v45 = vsel %vm411_vm0, %v3446_v43, 0.0  ;;  %v4716_v46 = vadd.f32 %v3234_v12, %v2162_v27 }
 0x219   : > { %v3496_v40 = vadd.f32 %v3495_v45, %v3494_v30  ;;  %3346 = vst.msk [vmem:[%s6332_s9 + $0xa8] sm:$0xff] %vm411_vm0, %v4715_v4  ;;  %v3395_v21 = vadd.f32 %v3394_v15, %v3393_v57  ;;  %v3449_v53 = vmul.f32 %v4715_v4, %v4715_v4  ;;  %v3398_v41 = vsel %vm411_vm0, %v4715_v4, 0.0 }
 0x21a   : > { %3345 = vst.msk [vmem:[%s6332_s9 + $0xa0] sm:$0xff] %vm411_vm0, %v4716_v46  ;;  %v3396_v3 = vsel %vm411_vm0, %v4716_v46, 0.0  ;;  %v3448_v61 = vmul.f32 %v4716_v46, %v4716_v46  ;;  %v4483_v56 = vpop.f32.mrb[24].mxu1  ;;  %v4680_v60 = vpop.f32.mrb[22].mxu0 }
 0x21b   : > { %v3397_v1 = vadd.f32 %v3396_v3, %v3395_v21  ;;  %v3498_v11 = vadd.f32 %v3497_v23, %v3496_v40  ;;  %v4717_v29 = vadd.f32 %v4680_v60, %v4480_v28  ;;  %v2182_v19 = vpop.f32.mrb[25].mxu1  ;;  %v3244_v37 = vpop.f32.mrb[23].mxu0  ;;  %v3501_v52 = vsel %vm411_vm0, %v3449_v53, 0.0 }
 0x21c   : > { %v3499_v55 = vsel %vm411_vm0, %v3448_v61, 0.0  ;;  %v4718_v51 = vadd.f32 %v3244_v37, %v2172_v50 }
 0x21d   : > { %v3500_v42 = vadd.f32 %v3499_v55, %v3498_v11  ;;  %3348 = vst.msk [vmem:[%s6332_s9 + $0xb8] sm:$0xff] %vm411_vm0, %v4717_v29  ;;  %v3399_v49 = vadd.f32 %v3398_v41, %v3397_v1  ;;  %v3451_v59 = vmul.f32 %v4717_v29, %v4717_v29  ;;  %v3402_v47 = vsel %vm411_vm0, %v4717_v29, 0.0 }
 0x21e   : > { %3347 = vst.msk [vmem:[%s6332_s9 + $0xb0] sm:$0xff] %vm411_vm0, %v4718_v51  ;;  %v3400_v62 = vsel %vm411_vm0, %v4718_v51, 0.0  ;;  %v3450_v0 = vmul.f32 %v4718_v51, %v4718_v51  ;;  %v4486_v10 = vpop.f32.mrb[26].mxu1  ;;  %v4683_v54 = vpop.f32.mrb[24].mxu0 }
 0x21f   : > { %v3401_v14 = vadd.f32 %v3400_v62, %v3399_v49  ;;  %v3502_v26 = vadd.f32 %v3501_v52, %v3500_v42  ;;  %v4719_v9 = vadd.f32 %v4683_v54, %v4483_v56  ;;  %v2192_v24 = vpop.f32.mrb[27].mxu1  ;;  %v3254_v7 = vpop.f32.mrb[25].mxu0  ;;  %v3505_v5 = vsel %vm411_vm0, %v3451_v59, 0.0 }
 0x220   : > { %v3503_v22 = vsel %vm411_vm0, %v3450_v0, 0.0  ;;  %v4720_v35 = vadd.f32 %v3254_v7, %v2182_v19 }
 0x221   : > { %v3504_v20 = vadd.f32 %v3503_v22, %v3502_v26  ;;  %3350 = vst.msk [vmem:[%s6332_s9 + $0xc8] sm:$0xff] %vm411_vm0, %v4719_v9  ;;  %v3403_v58 = vadd.f32 %v3402_v47, %v3401_v14  ;;  %v3453_v44 = vmul.f32 %v4719_v9, %v4719_v9  ;;  %v3406_v16 = vsel %vm411_vm0, %v4719_v9, 0.0 }
 0x222   : > { %3349 = vst.msk [vmem:[%s6332_s9 + $0xc0] sm:$0xff] %vm411_vm0, %v4720_v35  ;;  %v3404_v32 = vsel %vm411_vm0, %v4720_v35, 0.0  ;;  %v3452_v6 = vmul.f32 %v4720_v35, %v4720_v35  ;;  %v4489_v8 = vpop.f32.mrb[28].mxu1  ;;  %v4686_v2 = vpop.f32.mrb[26].mxu0 }
 0x223   : > { %v3405_v18 = vadd.f32 %v3404_v32, %v3403_v58  ;;  %v3506_v48 = vadd.f32 %v3505_v5, %v3504_v20  ;;  %v4721_v31 = vadd.f32 %v4686_v2, %v4486_v10  ;;  %v2202_v27 = vpop.f32.mrb[29].mxu1  ;;  %v3264_v33 = vpop.f32.mrb[27].mxu0  ;;  %v3509_v13 = vsel %vm411_vm0, %v3453_v44, 0.0 }
 0x224   : > { %v3507_v25 = vsel %vm411_vm0, %v3452_v6, 0.0  ;;  %v4722_v36 = vadd.f32 %v3264_v33, %v2192_v24 }
 0x225   : > { %v3508_v39 = vadd.f32 %v3507_v25, %v3506_v48  ;;  %3352 = vst.msk [vmem:[%s6332_s9 + $0xd8] sm:$0xff] %vm411_vm0, %v4721_v31  ;;  %v3407_v63 = vadd.f32 %v3406_v16, %v3405_v18  ;;  %v3455_v38 = vmul.f32 %v4721_v31, %v4721_v31  ;;  %v3410_v15 = vsel %vm411_vm0, %v4721_v31, 0.0 }
 0x226   : > { %3351 = vst.msk [vmem:[%s6332_s9 + $0xd0] sm:$0xff] %vm411_vm0, %v4722_v36  ;;  %v3408_v17 = vsel %vm411_vm0, %v4722_v36, 0.0  ;;  %v3454_v43 = vmul.f32 %v4722_v36, %v4722_v36  ;;  %v4492_v28 = vpop.f32.mrb[30].mxu1  ;;  %v4689_v34 = vpop.f32.mrb[28].mxu0 }
 0x227   : > { %v3409_v57 = vadd.f32 %v3408_v17, %v3407_v63  ;;  %v3510_v30 = vadd.f32 %v3509_v13, %v3508_v39  ;;  %v4723_v4 = vadd.f32 %v4689_v34, %v4489_v8  ;;  %v2212_v50 = vpop.f32.mrb[31].mxu1  ;;  %v3274_v12 = vpop.f32.mrb[29].mxu0  ;;  %v3513_v23 = vsel %vm411_vm0, %v3455_v38, 0.0 }
 0x228   : > { %v3511_v45 = vsel %vm411_vm0, %v3454_v43, 0.0  ;;  %v4724_v46 = vadd.f32 %v3274_v12, %v2202_v27 }
 0x229   : > { %v3512_v40 = vadd.f32 %v3511_v45, %v3510_v30  ;;  %3354 = vst.msk [vmem:[%s6332_s9 + $0xe8] sm:$0xff] %vm411_vm0, %v4723_v4  ;;  %v3411_v21 = vadd.f32 %v3410_v15, %v3409_v57  ;;  %v3457_v53 = vmul.f32 %v4723_v4, %v4723_v4  ;;  %v3414_v19 = vsel %vm411_vm0, %v4723_v4, 0.0 }
 0x22a   : > { %3353 = vst.msk [vmem:[%s6332_s9 + $0xe0] sm:$0xff] %vm411_vm0, %v4724_v46  ;;  %v3412_v3 = vsel %vm411_vm0, %v4724_v46, 0.0  ;;  %v3456_v61 = vmul.f32 %v4724_v46, %v4724_v46  ;;  %v4692_v56 = vpop.f32.mrb[30].mxu0 }
 0x22b   : > { %v3413_v60 = vadd.f32 %v3412_v3, %v3411_v21  ;;  %v3514_v1 = vadd.f32 %v3513_v23, %v3512_v40  ;;  %v4725_v11 = vadd.f32 %v4692_v56, %v4492_v28  ;;  %v3284_v29 = vpop.f32.mrb[31].mxu0  ;;  %v3517_v42 = vsel %vm411_vm0, %v3457_v53, 0.0 }
 0x22c   : > { %v3515_v37 = vsel %vm411_vm0, %v3456_v61, 0.0  ;;  %v4726_v41 = vadd.f32 %v3284_v29, %v2212_v50 }
 0x22d   : > { %v3516_v55 = vadd.f32 %v3515_v37, %v3514_v1  ;;  %3356 = vst.msk [vmem:[%s6332_s9 + $0xf8] sm:$0xff] %vm411_vm0, %v4725_v11  ;;  %v3415_v51 = vadd.f32 %v3414_v19, %v3413_v60  ;;  %v3459_v49 = vmul.f32 %v4725_v11, %v4725_v11  ;;  %v3418_v10 = vsel %vm411_vm0, %v4725_v11, 0.0 }
 0x22e   : > { %3355 = vst.msk [vmem:[%s6332_s9 + $0xf0] sm:$0xff] %vm411_vm0, %v4726_v41  ;;  %v3416_v52 = vsel %vm411_vm0, %v4726_v41, 0.0  ;;  %v3458_v59 = vmul.f32 %v4726_v41, %v4726_v41 }
 0x22f   : > { %v3417_v62 = vadd.f32 %v3416_v52, %v3415_v51  ;;  %v3518_v0 = vadd.f32 %v3517_v42, %v3516_v55  ;;  %v3521_v9 = vsel %vm411_vm0, %v3459_v49, 0.0 }
 0x230   : > { %v3519_v54 = vsel %vm411_vm0, %v3458_v59, 0.0 }
 0x231   : > { %v3419_v14 = vadd.f32 %v3418_v10, %v3417_v62  ;;  %v3520_v26 = vadd.f32 %v3519_v54, %v3518_v0 }
 0x233   : > { %v3420_v24 = vrot.slane %v3419_v14, 4  ;;  %v3522_v7 = vadd.f32 %v3521_v9, %v3520_v26 }
 0x235   : > { %v3421_v47 = vadd.f32 %v3420_v24, %v3419_v14  ;;  %v3523_v22 = vrot.slane %v3522_v7, 4 }
 0x237   : > { %v3422_v35 = vrot.slane %v3421_v47, 2  ;;  %v3524_v20 = vadd.f32 %v3523_v22, %v3522_v7 }
 0x239   : > { %v3423_v58 = vadd.f32 %v3422_v35, %v3421_v47  ;;  %v3525_v5 = vrot.slane %v3524_v20, 2 }
 0x23b   : > { %v3424_v44 = vrot.slane %v3423_v58, 1  ;;  %v3526_v32 = vadd.f32 %v3525_v5, %v3524_v20 }
 0x23d   : > { %v3425_v6 = vadd.f32 %v3424_v44, %v3423_v58  ;;  %v3527_v8 = vrot.slane %v3526_v32, 1 }
 0x23f   : > { %3427 = vst.msk [vmem:[%s265_s11] sm:$0x1] %vm3426_vm3, %v3425_v6  ;;  %v3528_v2 = vadd.f32 %v3527_v8, %v3526_v32 }
 0x241   : > { %3529 = vst.msk [vmem:[%s268_s14] sm:$0x1] %vm3426_vm3, %v3528_v2 }
 0x242 PF: > { %s17_s21 = sadd.s32 1, %s4967_s21  }
 0x243   : > { %p14_p4 = scmp.ge.s32.totalorder %s17_s21, 4  }
 0x245   :  { %16 = sbr.rel (!%p14_p4) target bundleno = 1 (0x1), region = 99 }

</bundles_post_ra>
